<compile_context>
chip_gen: v6e
topology: v6e:2x2x1
jax: 0.10.0
libtpu: 0.0.40
codegen_flags: <defaults>
</compile_context>

<pallas_src>
import numpy as np
import jax
import jax.numpy as jnp
from jax import lax
from jax.experimental import pallas as pl
from jax.experimental.pallas import tpu as pltpu


# ---------------------------------------------------------------------------
# Fused kernel (one grid step == TB images)
# ---------------------------------------------------------------------------
def _make_kernel(tb):
    f32 = jnp.float32
    bf16 = jnp.bfloat16

    def mm(a, w):
        # bf16 x bf16 MXU matmul with f32 accumulation.
        return jnp.dot(a.astype(bf16), w, preferred_element_type=f32)

    def kernel(xc_ref, w1_ref, b1_ref, w2_ref, b2_ref,
               wfc_ref, bfc_ref, wout_ref, bout_ref, out_ref):
        # xc_ref  : (1, 4, 6*tb, 140) f32   row-im2col input
        #           xc[0, t, q*tb + b, kh*28 + i] = x[b, 4q + t + kh, i]
        # w1_ref  : (2, 140, 192) bf16      conv1 banded weights, [col parity]
        #           w1[par, kh*28+i, j*16+oc] = conv1_w[oc,0,kh, i-(2j+par)]
        # w2_ref  : (2, 5, 192, 128) bf16   conv2 banded weights, [col parity, kh]
        #           w2[par, kh, j*16+c, m*32+oc] = conv2_w[oc,c,kh, j-(2m+par)]
        # wfc_ref : (4, 128, 512) bf16      fc weights packed per pooled row
        # wout_ref: (512, 128) bf16         output weights zero-padded to 128 lanes
        # biases  : (1, N) f32 (pre-tiled to the lane layouts above)
        # out_ref : (tb, 128) f32           lane-dense logits slab

        # ---- conv1 (5x5, 1->16) + bias + ReLU + 2x2/2 max-pool ---------------
        # Accumulator for (row phase t, column parity par) holds conv rows 4q+t,
        # columns 2j+par.  max over {t0,t1} x {even,odd} == the 2x2 pool.
        def conv1_pool(t0, t1):
            m = None
            for t in (t0, t1):
                lhs = xc_ref[0, t]                        # (6*tb, 140)
                for par in range(2):
                    a = mm(lhs, w1_ref[par])              # (6*tb, 192)
                    m = a if m is None else jnp.maximum(m, a)
            return jnp.maximum(m + b1_ref[...], 0.0)      # (6*tb, 192)

        p1e = conv1_pool(0, 1)   # pool1 rows 0,2,...,10 ; row = q*tb+b ; lane = j*16+c
        p1o = conv1_pool(2, 3)   # pool1 rows 1,3,...,11

        # ---- conv2 (5x5, 16->32) + bias + ReLU + 2x2/2 max-pool --------------
        def rows(x, k):          # pooled-row slab q = k..k+3 for all tb images
            return x[k * tb:(k + 4) * tb, :]

        # conv2 row 2s needs pool1 rows 2s+kh; row 2s+1 needs 2s+1+kh.
        lhs_even = (rows(p1e, 0), rows(p1o, 0), rows(p1e, 1), rows(p1o, 1), rows(p1e, 2))
        lhs_odd = (rows(p1o, 0), rows(p1e, 1), rows(p1o, 1), rows(p1e, 2), rows(p1o, 2))

        def conv2_rows(lhs, par):
            acc = mm(lhs[0], w2_ref[par, 0])
            for kh in range(1, 5):
                acc = acc + mm(lhs[kh], w2_ref[par, kh])
            return acc                                    # (4*tb, 128)

        m2 = jnp.maximum(
            jnp.maximum(conv2_rows(lhs_even, 0), conv2_rows(lhs_even, 1)),
            jnp.maximum(conv2_rows(lhs_odd, 0), conv2_rows(lhs_odd, 1)))
        p2 = jnp.maximum(m2 + b2_ref[...], 0.0)           # (4*tb, 128); lane = m*32+oc

        # ---- fc (512 -> 512) + ReLU: 4 matmuls of (tb,128)x(128,512) ----------
        acc = mm(p2[0:tb, :], wfc_ref[0])
        for s in range(1, 4):
            acc = acc + mm(p2[s * tb:(s + 1) * tb, :], wfc_ref[s])
        h = jnp.maximum(acc + bfc_ref[...], 0.0)          # (tb, 512)

        # ---- output layer, padded to 128 lanes (unmasked store) ---------------
        out_ref[...] = mm(h, wout_ref[...]) + bout_ref[...]

    return kernel


# ---------------------------------------------------------------------------
# Parameter preparation (PyTorch layout -> kernel layout, done once at init)
# ---------------------------------------------------------------------------
def init_params(key):
    """PyTorch-layout parameters with PyTorch-like uniform(+-1/sqrt(fan_in)) init."""
    ks = jax.random.split(key, 8)

    def u(k, shape, fan_in):
        bound = 1.0 / np.sqrt(float(fan_in))
        return jax.random.uniform(k, shape, jnp.float32, -bound, bound)

    return {
        "conv1_w": u(ks[0], (16, 1, 5, 5), 25),
        "conv1_b": u(ks[1], (16,), 25),
        "conv2_w": u(ks[2], (32, 16, 5, 5), 400),
        "conv2_b": u(ks[3], (32,), 400),
        "fc_w":    u(ks[4], (512, 512), 512),   # (out, in), in = c*16 + h*4 + w
        "fc_b":    u(ks[5], (512,), 512),
        "out_w":   u(ks[6], (10, 512), 512),
        "out_b":   u(ks[7], (10,), 512),
    }


def prepare_params(p, compute_dtype=jnp.bfloat16):
    """Fold all layout permutations, conv banding, pooling parity split, the
    PyTorch NCHW flatten order and the output-lane padding into the weights."""
    w1 = np.asarray(p["conv1_w"], np.float32)
    b1 = np.asarray(p["conv1_b"], np.float32)
    w2 = np.asarray(p["conv2_w"], np.float32)
    b2 = np.asarray(p["conv2_b"], np.float32)
    fcw = np.asarray(p["fc_w"], np.float32)
    fcb = np.asarray(p["fc_b"], np.float32)
    ow = np.asarray(p["out_w"], np.float32)
    ob = np.asarray(p["out_b"], np.float32)

    # conv1 banded weights: lane = j*16 + oc (j = pooled col pair), split by
    # output-column parity.  Row index = kh*28 + i (matches the row-im2col lhs).
    w1band = np.zeros((2, 140, 192), np.float32)
    for par in range(2):
        for kh in range(5):
            for i in range(28):
                for j in range(12):
                    kw = i - (2 * j + par)
                    if 0 <= kw <= 4:
                        w1band[par, kh * 28 + i, j * 16:(j + 1) * 16] = w1[:, 0, kh, kw]

    # conv2 banded weights over the pool1 lane layout (j*16 + c) -> (m*32 + oc).
    w2band = np.zeros((2, 5, 192, 128), np.float32)
    for par in range(2):
        for kh in range(5):
            for j in range(12):
                for m in range(4):
                    kw = j - (2 * m + par)
                    if 0 <= kw <= 4:
                        w2band[par, kh, j * 16:(j + 1) * 16, m * 32:(m + 1) * 32] = \
                            w2[:, :, kh, kw].T          # (c, oc)

    # fc weights packed per pooled row s; pool2 lane order is m*32 + c.
    # PyTorch flatten index = c*16 + s*4 + m.
    wfc = np.zeros((4, 128, 512), np.float32)
    for s in range(4):
        for m in range(4):
            for c in range(32):
                wfc[s, m * 32 + c, :] = fcw[:, c * 16 + s * 4 + m]

    # Output layer padded to 128 lanes (wrapper slices [:, :10]).
    woutp = np.zeros((512, 128), np.float32)
    woutp[:, :10] = ow.T
    boutp = np.zeros((1, 128), np.float32)
    boutp[0, :10] = ob

    return {
        "w1":   jnp.asarray(w1band, compute_dtype),
        "b1":   jnp.asarray(np.tile(b1, 12).reshape(1, 192)),
        "w2":   jnp.asarray(w2band, compute_dtype),
        "b2":   jnp.asarray(np.tile(b2, 4).reshape(1, 128)),
        "wfc":  jnp.asarray(wfc, compute_dtype),
        "bfc":  jnp.asarray(fcb.reshape(1, 512)),
        "wout": jnp.asarray(woutp, compute_dtype),
        "bout": jnp.asarray(boutp),
    }


# ---------------------------------------------------------------------------
# Forward pass
# ---------------------------------------------------------------------------
def _round_up(n, m):
    return ((n + m - 1) // m) * m


@jax.jit
def model0_forward(x_nchw, kp):
    B = x_nchw.shape[0]
    tb = min(32, _round_up(B, 8))          # batch tile (multiple of 8)
    Bp = _round_up(B, tb)
    nblk = Bp // tb

    x = x_nchw.reshape(B, 28, 28).astype(jnp.float32)
    if Bp != B:
        x = jnp.pad(x, ((0, Bp - B), (0, 0), (0, 0)))

    # Row-im2col in plain XLA: xc[t, b, q, kh*28 + i] = x[b, 4q + t + kh, i].
    phases = []
    for t in range(4):
        per_kh = [x[:, t + kh::4, :][:, :6, :] for kh in range(5)]   # (Bp, 6, 28)
        phases.append(jnp.concatenate(per_kh, axis=-1))              # (Bp, 6, 140)
    xc = jnp.stack(phases, axis=0)                                   # (4, Bp, 6, 140)
    # Per-batch-block slabs with row index q*tb + b_local.
    xc = (xc.reshape(4, nblk, tb, 6, 140)
            .transpose(1, 0, 3, 2, 4)
            .reshape(nblk, 4, 6 * tb, 140))

    flops = 2 * nblk * (8 * (6 * tb) * 140 * 192        # conv1
                        + 20 * (4 * tb) * 192 * 128     # conv2
                        + 4 * tb * 128 * 512            # fc
                        + tb * 512 * 128)               # output layer
    bytes_accessed = (4 * xc.size
                      + sum(int(np.prod(v.shape)) * v.dtype.itemsize for v in kp.values())
                      + 4 * Bp * 128)

    kernel = _make_kernel(tb)
    out = pl.pallas_call(
        kernel,
        out_shape=jax.ShapeDtypeStruct((Bp, 128), jnp.float32),
        grid_spec=pltpu.PrefetchScalarGridSpec(
            num_scalar_prefetch=0,
            grid=(nblk,),
            in_specs=[
                pl.BlockSpec((1, 4, 6 * tb, 140), lambda b: (b, 0, 0, 0)),
                pl.BlockSpec((2, 140, 192),       lambda b: (0, 0, 0)),
                pl.BlockSpec((1, 192),            lambda b: (0, 0)),
                pl.BlockSpec((2, 5, 192, 128),    lambda b: (0, 0, 0, 0)),
                pl.BlockSpec((1, 128),            lambda b: (0, 0)),
                pl.BlockSpec((4, 128, 512),       lambda b: (0, 0, 0)),
                pl.BlockSpec((1, 512),            lambda b: (0, 0)),
                pl.BlockSpec((512, 128),          lambda b: (0, 0)),
                pl.BlockSpec((1, 128),            lambda b: (0, 0)),
            ],
            out_specs=pl.BlockSpec((tb, 128), lambda b: (b, 0)),
        ),
        compiler_params=pltpu.CompilerParams(
            dimension_semantics=("parallel",),
            vmem_limit_bytes=32 * 1024 * 1024,
        ),
        cost_estimate=pl.CostEstimate(
            flops=flops, transcendentals=0, bytes_accessed=bytes_accessed),
    )(xc, kp["w1"], kp["b1"], kp["w2"], kp["b2"],
      kp["wfc"], kp["bfc"], kp["wout"], kp["bout"])
    return out[:B, :10]


# ---------------------------------------------------------------------------
# Pure-JAX reference (PyTorch semantics) for a sanity check
# ---------------------------------------------------------------------------
def model0_reference(x, p):
    dn = ("NCHW", "OIHW", "NCHW")
    hi = lax.Precision.HIGHEST
    y = lax.conv_general_dilated(x, p["conv1_w"], (1, 1), "VALID",
                                 dimension_numbers=dn, precision=hi)
    y = jax.nn.relu(y + p["conv1_b"][None, :, None, None])
    y = lax.reduce_window(y, -jnp.inf, lax.max, (1, 1, 2, 2), (1, 1, 2, 2), "VALID")
    y = lax.conv_general_dilated(y, p["conv2_w"], (1, 1), "VALID",
                                 dimension_numbers=dn, precision=hi)
    y = jax.nn.relu(y + p["conv2_b"][None, :, None, None])
    y = lax.reduce_window(y, -jnp.inf, lax.max, (1, 1, 2, 2), (1, 1, 2, 2), "VALID")
    y = y.reshape(x.shape[0], 512)
    y = jax.nn.relu(jnp.dot(y, p["fc_w"].T, precision=hi) + p["fc_b"])
    return jnp.dot(y, p["out_w"].T, precision=hi) + p["out_b"]


if __name__ == "__main__":
    key = jax.random.PRNGKey(0)
    xk, pk = jax.random.split(key)
    # MNIST-style input implied by the 32*4*4 flatten: (B, 1, 28, 28)
    x = jax.random.normal(xk, (2, 1, 28, 28), jnp.float32)
    params = init_params(pk)
    kparams = prepare_params(params)

    out = model0_forward(x, kparams)
    out = jax.block_until_ready(out)
    assert out.shape == (2, 10) and out.dtype == jnp.float32

    ref = jax.block_until_ready(model0_reference(x, params))
    err = float(jnp.max(jnp.abs(out - ref)))
    assert np.isfinite(err) and err < 5e-2, f"max abs error vs reference: {err}"
    print("KERNEL_OK")
</pallas_src>

<mosaic_0001>
module attributes {stable_mosaic.version = 11 : i64} {
  func.func @kernel(%arg0: i32, %arg1: memref<1x4x48x140xf32, #tpu.memory_space<vmem>>, %arg2: memref<2x140x192xbf16, #tpu.memory_space<vmem>>, %arg3: memref<1x192xf32, #tpu.memory_space<vmem>>, %arg4: memref<2x5x192x128xbf16, #tpu.memory_space<vmem>>, %arg5: memref<1x128xf32, #tpu.memory_space<vmem>>, %arg6: memref<4x128x512xbf16, #tpu.memory_space<vmem>>, %arg7: memref<1x512xf32, #tpu.memory_space<vmem>>, %arg8: memref<512x128xbf16, #tpu.memory_space<vmem>>, %arg9: memref<1x128xf32, #tpu.memory_space<vmem>>, %arg10: memref<8x128xf32, #tpu.memory_space<vmem>>) attributes {dimension_semantics = [#tpu.dimension_semantics<parallel>], iteration_bounds = array<i64: 1>, scalar_prefetch = 0 : i64, scratch_operands = 0 : i64, tpu.core_type = #tpu.core_type<tc>, window_params = [{transform_indices = @transform_0, window_bounds = array<i64: 1, 4, 48, 140>}, {pipeline_mode = #tpu.pipeline_mode<synchronous>, transform_indices = @transform_1, window_bounds = array<i64: 2, 140, 192>}, {pipeline_mode = #tpu.pipeline_mode<synchronous>, transform_indices = @transform_2, window_bounds = array<i64: 1, 192>}, {pipeline_mode = #tpu.pipeline_mode<synchronous>, transform_indices = @transform_3, window_bounds = array<i64: 2, 5, 192, 128>}, {pipeline_mode = #tpu.pipeline_mode<synchronous>, transform_indices = @transform_4, window_bounds = array<i64: 1, 128>}, {pipeline_mode = #tpu.pipeline_mode<synchronous>, transform_indices = @transform_5, window_bounds = array<i64: 4, 128, 512>}, {pipeline_mode = #tpu.pipeline_mode<synchronous>, transform_indices = @transform_6, window_bounds = array<i64: 1, 512>}, {pipeline_mode = #tpu.pipeline_mode<synchronous>, transform_indices = @transform_7, window_bounds = array<i64: 512, 128>}, {pipeline_mode = #tpu.pipeline_mode<synchronous>, transform_indices = @transform_8, window_bounds = array<i64: 1, 128>}, {transform_indices = @transform_9, window_bounds = array<i64: 8, 128>}]} {
    %c0 = arith.constant 0 : index
    %c0_0 = arith.constant 0 : index
    %c0_1 = arith.constant 0 : index
    %c0_2 = arith.constant 0 : index
    %0 = vector.load %arg1[%c0, %c0_0, %c0_1, %c0_2] : memref<1x4x48x140xf32, #tpu.memory_space<vmem>>, vector<1x1x48x140xf32>
    %1 = vector.shape_cast %0 : vector<1x1x48x140xf32> to vector<48x140xf32>
    %c0_3 = arith.constant 0 : index
    %c0_4 = arith.constant 0 : index
    %c0_5 = arith.constant 0 : index
    %2 = vector.load %arg2[%c0_3, %c0_4, %c0_5] : memref<2x140x192xbf16, #tpu.memory_space<vmem>>, vector<1x140x192xbf16>
    %3 = vector.shape_cast %2 : vector<1x140x192xbf16> to vector<140x192xbf16>
    %4 = arith.truncf %1 : vector<48x140xf32> to vector<48x140xbf16>
    %cst = arith.constant dense<0.000000e+00> : vector<48x192xf32>
    %5 = tpu.matmul %4, %3, %cst {dimension_numbers = #tpu.dot_dimension_numbers<[1], [0], [0], [1], [0, 0, 1, 1], [], []>} : vector<48x140xbf16>, vector<140x192xbf16>, vector<48x192xf32> -> vector<48x192xf32>
    %c1 = arith.constant 1 : index
    %c0_6 = arith.constant 0 : index
    %c0_7 = arith.constant 0 : index
    %6 = vector.load %arg2[%c1, %c0_6, %c0_7] : memref<2x140x192xbf16, #tpu.memory_space<vmem>>, vector<1x140x192xbf16>
    %7 = vector.shape_cast %6 : vector<1x140x192xbf16> to vector<140x192xbf16>
    %8 = arith.truncf %1 : vector<48x140xf32> to vector<48x140xbf16>
    %cst_8 = arith.constant dense<0.000000e+00> : vector<48x192xf32>
    %9 = tpu.matmul %8, %7, %cst_8 {dimension_numbers = #tpu.dot_dimension_numbers<[1], [0], [0], [1], [0, 0, 1, 1], [], []>} : vector<48x140xbf16>, vector<140x192xbf16>, vector<48x192xf32> -> vector<48x192xf32>
    %10 = arith.maximumf %5, %9 : vector<48x192xf32>
    %c0_9 = arith.constant 0 : index
    %c1_10 = arith.constant 1 : index
    %c0_11 = arith.constant 0 : index
    %c0_12 = arith.constant 0 : index
    %11 = vector.load %arg1[%c0_9, %c1_10, %c0_11, %c0_12] : memref<1x4x48x140xf32, #tpu.memory_space<vmem>>, vector<1x1x48x140xf32>
    %12 = vector.shape_cast %11 : vector<1x1x48x140xf32> to vector<48x140xf32>
    %c0_13 = arith.constant 0 : index
    %c0_14 = arith.constant 0 : index
    %c0_15 = arith.constant 0 : index
    %13 = vector.load %arg2[%c0_13, %c0_14, %c0_15] : memref<2x140x192xbf16, #tpu.memory_space<vmem>>, vector<1x140x192xbf16>
    %14 = vector.shape_cast %13 : vector<1x140x192xbf16> to vector<140x192xbf16>
    %15 = arith.truncf %12 : vector<48x140xf32> to vector<48x140xbf16>
    %cst_16 = arith.constant dense<0.000000e+00> : vector<48x192xf32>
    %16 = tpu.matmul %15, %14, %cst_16 {dimension_numbers = #tpu.dot_dimension_numbers<[1], [0], [0], [1], [0, 0, 1, 1], [], []>} : vector<48x140xbf16>, vector<140x192xbf16>, vector<48x192xf32> -> vector<48x192xf32>
    %17 = arith.maximumf %10, %16 : vector<48x192xf32>
    %c1_17 = arith.constant 1 : index
    %c0_18 = arith.constant 0 : index
    %c0_19 = arith.constant 0 : index
    %18 = vector.load %arg2[%c1_17, %c0_18, %c0_19] : memref<2x140x192xbf16, #tpu.memory_space<vmem>>, vector<1x140x192xbf16>
    %19 = vector.shape_cast %18 : vector<1x140x192xbf16> to vector<140x192xbf16>
    %20 = arith.truncf %12 : vector<48x140xf32> to vector<48x140xbf16>
    %cst_20 = arith.constant dense<0.000000e+00> : vector<48x192xf32>
    %21 = tpu.matmul %20, %19, %cst_20 {dimension_numbers = #tpu.dot_dimension_numbers<[1], [0], [0], [1], [0, 0, 1, 1], [], []>} : vector<48x140xbf16>, vector<140x192xbf16>, vector<48x192xf32> -> vector<48x192xf32>
    %22 = arith.maximumf %17, %21 : vector<48x192xf32>
    %c0_21 = arith.constant 0 : index
    %c0_22 = arith.constant 0 : index
    %23 = vector.load %arg3[%c0_21, %c0_22] : memref<1x192xf32, #tpu.memory_space<vmem>>, vector<1x192xf32>
    %24 = vector.broadcast %23 : vector<1x192xf32> to vector<48x192xf32>
    %25 = arith.addf %22, %24 : vector<48x192xf32>
    %cst_23 = arith.constant 0.000000e+00 : f32
    %26 = vector.broadcast %cst_23 : f32 to vector<48x192xf32>
    %27 = arith.maximumf %25, %26 : vector<48x192xf32>
    %c0_24 = arith.constant 0 : index
    %c2 = arith.constant 2 : index
    %c0_25 = arith.constant 0 : index
    %c0_26 = arith.constant 0 : index
    %28 = vector.load %arg1[%c0_24, %c2, %c0_25, %c0_26] : memref<1x4x48x140xf32, #tpu.memory_space<vmem>>, vector<1x1x48x140xf32>
    %29 = vector.shape_cast %28 : vector<1x1x48x140xf32> to vector<48x140xf32>
    %c0_27 = arith.constant 0 : index
    %c0_28 = arith.constant 0 : index
    %c0_29 = arith.constant 0 : index
    %30 = vector.load %arg2[%c0_27, %c0_28, %c0_29] : memref<2x140x192xbf16, #tpu.memory_space<vmem>>, vector<1x140x192xbf16>
    %31 = vector.shape_cast %30 : vector<1x140x192xbf16> to vector<140x192xbf16>
    %32 = arith.truncf %29 : vector<48x140xf32> to vector<48x140xbf16>
    %cst_30 = arith.constant dense<0.000000e+00> : vector<48x192xf32>
    %33 = tpu.matmul %32, %31, %cst_30 {dimension_numbers = #tpu.dot_dimension_numbers<[1], [0], [0], [1], [0, 0, 1, 1], [], []>} : vector<48x140xbf16>, vector<140x192xbf16>, vector<48x192xf32> -> vector<48x192xf32>
    %c1_31 = arith.constant 1 : index
    %c0_32 = arith.constant 0 : index
    %c0_33 = arith.constant 0 : index
    %34 = vector.load %arg2[%c1_31, %c0_32, %c0_33] : memref<2x140x192xbf16, #tpu.memory_space<vmem>>, vector<1x140x192xbf16>
    %35 = vector.shape_cast %34 : vector<1x140x192xbf16> to vector<140x192xbf16>
    %36 = arith.truncf %29 : vector<48x140xf32> to vector<48x140xbf16>
    %cst_34 = arith.constant dense<0.000000e+00> : vector<48x192xf32>
    %37 = tpu.matmul %36, %35, %cst_34 {dimension_numbers = #tpu.dot_dimension_numbers<[1], [0], [0], [1], [0, 0, 1, 1], [], []>} : vector<48x140xbf16>, vector<140x192xbf16>, vector<48x192xf32> -> vector<48x192xf32>
    %38 = arith.maximumf %33, %37 : vector<48x192xf32>
    %c0_35 = arith.constant 0 : index
    %c3 = arith.constant 3 : index
    %c0_36 = arith.constant 0 : index
    %c0_37 = arith.constant 0 : index
    %39 = vector.load %arg1[%c0_35, %c3, %c0_36, %c0_37] : memref<1x4x48x140xf32, #tpu.memory_space<vmem>>, vector<1x1x48x140xf32>
    %40 = vector.shape_cast %39 : vector<1x1x48x140xf32> to vector<48x140xf32>
    %c0_38 = arith.constant 0 : index
    %c0_39 = arith.constant 0 : index
    %c0_40 = arith.constant 0 : index
    %41 = vector.load %arg2[%c0_38, %c0_39, %c0_40] : memref<2x140x192xbf16, #tpu.memory_space<vmem>>, vector<1x140x192xbf16>
    %42 = vector.shape_cast %41 : vector<1x140x192xbf16> to vector<140x192xbf16>
    %43 = arith.truncf %40 : vector<48x140xf32> to vector<48x140xbf16>
    %cst_41 = arith.constant dense<0.000000e+00> : vector<48x192xf32>
    %44 = tpu.matmul %43, %42, %cst_41 {dimension_numbers = #tpu.dot_dimension_numbers<[1], [0], [0], [1], [0, 0, 1, 1], [], []>} : vector<48x140xbf16>, vector<140x192xbf16>, vector<48x192xf32> -> vector<48x192xf32>
    %45 = arith.maximumf %38, %44 : vector<48x192xf32>
    %c1_42 = arith.constant 1 : index
    %c0_43 = arith.constant 0 : index
    %c0_44 = arith.constant 0 : index
    %46 = vector.load %arg2[%c1_42, %c0_43, %c0_44] : memref<2x140x192xbf16, #tpu.memory_space<vmem>>, vector<1x140x192xbf16>
    %47 = vector.shape_cast %46 : vector<1x140x192xbf16> to vector<140x192xbf16>
    %48 = arith.truncf %40 : vector<48x140xf32> to vector<48x140xbf16>
    %cst_45 = arith.constant dense<0.000000e+00> : vector<48x192xf32>
    %49 = tpu.matmul %48, %47, %cst_45 {dimension_numbers = #tpu.dot_dimension_numbers<[1], [0], [0], [1], [0, 0, 1, 1], [], []>} : vector<48x140xbf16>, vector<140x192xbf16>, vector<48x192xf32> -> vector<48x192xf32>
    %50 = arith.maximumf %45, %49 : vector<48x192xf32>
    %c0_46 = arith.constant 0 : index
    %c0_47 = arith.constant 0 : index
    %51 = vector.load %arg3[%c0_46, %c0_47] : memref<1x192xf32, #tpu.memory_space<vmem>>, vector<1x192xf32>
    %52 = vector.broadcast %51 : vector<1x192xf32> to vector<48x192xf32>
    %53 = arith.addf %50, %52 : vector<48x192xf32>
    %cst_48 = arith.constant 0.000000e+00 : f32
    %54 = vector.broadcast %cst_48 : f32 to vector<48x192xf32>
    %55 = arith.maximumf %53, %54 : vector<48x192xf32>
    %56 = vector.extract_strided_slice %27 {offsets = [0, 0], sizes = [32, 192], strides = [1, 1]} : vector<48x192xf32> to vector<32x192xf32>
    %57 = vector.extract_strided_slice %55 {offsets = [0, 0], sizes = [32, 192], strides = [1, 1]} : vector<48x192xf32> to vector<32x192xf32>
    %58 = vector.extract_strided_slice %27 {offsets = [8, 0], sizes = [32, 192], strides = [1, 1]} : vector<48x192xf32> to vector<32x192xf32>
    %59 = vector.extract_strided_slice %55 {offsets = [8, 0], sizes = [32, 192], strides = [1, 1]} : vector<48x192xf32> to vector<32x192xf32>
    %60 = vector.extract_strided_slice %27 {offsets = [16, 0], sizes = [32, 192], strides = [1, 1]} : vector<48x192xf32> to vector<32x192xf32>
    %61 = vector.extract_strided_slice %55 {offsets = [0, 0], sizes = [32, 192], strides = [1, 1]} : vector<48x192xf32> to vector<32x192xf32>
    %62 = vector.extract_strided_slice %27 {offsets = [8, 0], sizes = [32, 192], strides = [1, 1]} : vector<48x192xf32> to vector<32x192xf32>
    %63 = vector.extract_strided_slice %55 {offsets = [8, 0], sizes = [32, 192], strides = [1, 1]} : vector<48x192xf32> to vector<32x192xf32>
    %64 = vector.extract_strided_slice %27 {offsets = [16, 0], sizes = [32, 192], strides = [1, 1]} : vector<48x192xf32> to vector<32x192xf32>
    %65 = vector.extract_strided_slice %55 {offsets = [16, 0], sizes = [32, 192], strides = [1, 1]} : vector<48x192xf32> to vector<32x192xf32>
    %c0_49 = arith.constant 0 : index
    %c0_50 = arith.constant 0 : index
    %c0_51 = arith.constant 0 : index
    %c0_52 = arith.constant 0 : index
    %66 = vector.load %arg4[%c0_49, %c0_50, %c0_51, %c0_52] : memref<2x5x192x128xbf16, #tpu.memory_space<vmem>>, vector<1x1x192x128xbf16>
    %67 = vector.shape_cast %66 : vector<1x1x192x128xbf16> to vector<192x128xbf16>
    %68 = arith.truncf %56 : vector<32x192xf32> to vector<32x192xbf16>
    %cst_53 = arith.constant dense<0.000000e+00> : vector<32x128xf32>
    %69 = tpu.matmul %68, %67, %cst_53 {dimension_numbers = #tpu.dot_dimension_numbers<[1], [0], [0], [1], [0, 0, 1, 1], [], []>} : vector<32x192xbf16>, vector<192x128xbf16>, vector<32x128xf32> -> vector<32x128xf32>
    %c0_54 = arith.constant 0 : index
    %c1_55 = arith.constant 1 : index
    %c0_56 = arith.constant 0 : index
    %c0_57 = arith.constant 0 : index
    %70 = vector.load %arg4[%c0_54, %c1_55, %c0_56, %c0_57] : memref<2x5x192x128xbf16, #tpu.memory_space<vmem>>, vector<1x1x192x128xbf16>
    %71 = vector.shape_cast %70 : vector<1x1x192x128xbf16> to vector<192x128xbf16>
    %72 = arith.truncf %57 : vector<32x192xf32> to vector<32x192xbf16>
    %cst_58 = arith.constant dense<0.000000e+00> : vector<32x128xf32>
    %73 = tpu.matmul %72, %71, %cst_58 {dimension_numbers = #tpu.dot_dimension_numbers<[1], [0], [0], [1], [0, 0, 1, 1], [], []>} : vector<32x192xbf16>, vector<192x128xbf16>, vector<32x128xf32> -> vector<32x128xf32>
    %74 = arith.addf %69, %73 : vector<32x128xf32>
    %c0_59 = arith.constant 0 : index
    %c2_60 = arith.constant 2 : index
    %c0_61 = arith.constant 0 : index
    %c0_62 = arith.constant 0 : index
    %75 = vector.load %arg4[%c0_59, %c2_60, %c0_61, %c0_62] : memref<2x5x192x128xbf16, #tpu.memory_space<vmem>>, vector<1x1x192x128xbf16>
    %76 = vector.shape_cast %75 : vector<1x1x192x128xbf16> to vector<192x128xbf16>
    %77 = arith.truncf %58 : vector<32x192xf32> to vector<32x192xbf16>
    %cst_63 = arith.constant dense<0.000000e+00> : vector<32x128xf32>
    %78 = tpu.matmul %77, %76, %cst_63 {dimension_numbers = #tpu.dot_dimension_numbers<[1], [0], [0], [1], [0, 0, 1, 1], [], []>} : vector<32x192xbf16>, vector<192x128xbf16>, vector<32x128xf32> -> vector<32x128xf32>
    %79 = arith.addf %74, %78 : vector<32x128xf32>
    %c0_64 = arith.constant 0 : index
    %c3_65 = arith.constant 3 : index
    %c0_66 = arith.constant 0 : index
    %c0_67 = arith.constant 0 : index
    %80 = vector.load %arg4[%c0_64, %c3_65, %c0_66, %c0_67] : memref<2x5x192x128xbf16, #tpu.memory_space<vmem>>, vector<1x1x192x128xbf16>
    %81 = vector.shape_cast %80 : vector<1x1x192x128xbf16> to vector<192x128xbf16>
    %82 = arith.truncf %59 : vector<32x192xf32> to vector<32x192xbf16>
    %cst_68 = arith.constant dense<0.000000e+00> : vector<32x128xf32>
    %83 = tpu.matmul %82, %81, %cst_68 {dimension_numbers = #tpu.dot_dimension_numbers<[1], [0], [0], [1], [0, 0, 1, 1], [], []>} : vector<32x192xbf16>, vector<192x128xbf16>, vector<32x128xf32> -> vector<32x128xf32>
    %84 = arith.addf %79, %83 : vector<32x128xf32>
    %c0_69 = arith.constant 0 : index
    %c4 = arith.constant 4 : index
    %c0_70 = arith.constant 0 : index
    %c0_71 = arith.constant 0 : index
    %85 = vector.load %arg4[%c0_69, %c4, %c0_70, %c0_71] : memref<2x5x192x128xbf16, #tpu.memory_space<vmem>>, vector<1x1x192x128xbf16>
    %86 = vector.shape_cast %85 : vector<1x1x192x128xbf16> to vector<192x128xbf16>
    %87 = arith.truncf %60 : vector<32x192xf32> to vector<32x192xbf16>
    %cst_72 = arith.constant dense<0.000000e+00> : vector<32x128xf32>
    %88 = tpu.matmul %87, %86, %cst_72 {dimension_numbers = #tpu.dot_dimension_numbers<[1], [0], [0], [1], [0, 0, 1, 1], [], []>} : vector<32x192xbf16>, vector<192x128xbf16>, vector<32x128xf32> -> vector<32x128xf32>
    %89 = arith.addf %84, %88 : vector<32x128xf32>
    %c1_73 = arith.constant 1 : index
    %c0_74 = arith.constant 0 : index
    %c0_75 = arith.constant 0 : index
    %c0_76 = arith.constant 0 : index
    %90 = vector.load %arg4[%c1_73, %c0_74, %c0_75, %c0_76] : memref<2x5x192x128xbf16, #tpu.memory_space<vmem>>, vector<1x1x192x128xbf16>
    %91 = vector.shape_cast %90 : vector<1x1x192x128xbf16> to vector<192x128xbf16>
    %92 = arith.truncf %56 : vector<32x192xf32> to vector<32x192xbf16>
    %cst_77 = arith.constant dense<0.000000e+00> : vector<32x128xf32>
    %93 = tpu.matmul %92, %91, %cst_77 {dimension_numbers = #tpu.dot_dimension_numbers<[1], [0], [0], [1], [0, 0, 1, 1], [], []>} : vector<32x192xbf16>, vector<192x128xbf16>, vector<32x128xf32> -> vector<32x128xf32>
    %c1_78 = arith.constant 1 : index
    %c1_79 = arith.constant 1 : index
    %c0_80 = arith.constant 0 : index
    %c0_81 = arith.constant 0 : index
    %94 = vector.load %arg4[%c1_78, %c1_79, %c0_80, %c0_81] : memref<2x5x192x128xbf16, #tpu.memory_space<vmem>>, vector<1x1x192x128xbf16>
    %95 = vector.shape_cast %94 : vector<1x1x192x128xbf16> to vector<192x128xbf16>
    %96 = arith.truncf %57 : vector<32x192xf32> to vector<32x192xbf16>
    %cst_82 = arith.constant dense<0.000000e+00> : vector<32x128xf32>
    %97 = tpu.matmul %96, %95, %cst_82 {dimension_numbers = #tpu.dot_dimension_numbers<[1], [0], [0], [1], [0, 0, 1, 1], [], []>} : vector<32x192xbf16>, vector<192x128xbf16>, vector<32x128xf32> -> vector<32x128xf32>
    %98 = arith.addf %93, %97 : vector<32x128xf32>
    %c1_83 = arith.constant 1 : index
    %c2_84 = arith.constant 2 : index
    %c0_85 = arith.constant 0 : index
    %c0_86 = arith.constant 0 : index
    %99 = vector.load %arg4[%c1_83, %c2_84, %c0_85, %c0_86] : memref<2x5x192x128xbf16, #tpu.memory_space<vmem>>, vector<1x1x192x128xbf16>
    %100 = vector.shape_cast %99 : vector<1x1x192x128xbf16> to vector<192x128xbf16>
    %101 = arith.truncf %58 : vector<32x192xf32> to vector<32x192xbf16>
    %cst_87 = arith.constant dense<0.000000e+00> : vector<32x128xf32>
    %102 = tpu.matmul %101, %100, %cst_87 {dimension_numbers = #tpu.dot_dimension_numbers<[1], [0], [0], [1], [0, 0, 1, 1], [], []>} : vector<32x192xbf16>, vector<192x128xbf16>, vector<32x128xf32> -> vector<32x128xf32>
    %103 = arith.addf %98, %102 : vector<32x128xf32>
    %c1_88 = arith.constant 1 : index
    %c3_89 = arith.constant 3 : index
    %c0_90 = arith.constant 0 : index
    %c0_91 = arith.constant 0 : index
    %104 = vector.load %arg4[%c1_88, %c3_89, %c0_90, %c0_91] : memref<2x5x192x128xbf16, #tpu.memory_space<vmem>>, vector<1x1x192x128xbf16>
    %105 = vector.shape_cast %104 : vector<1x1x192x128xbf16> to vector<192x128xbf16>
    %106 = arith.truncf %59 : vector<32x192xf32> to vector<32x192xbf16>
    %cst_92 = arith.constant dense<0.000000e+00> : vector<32x128xf32>
    %107 = tpu.matmul %106, %105, %cst_92 {dimension_numbers = #tpu.dot_dimension_numbers<[1], [0], [0], [1], [0, 0, 1, 1], [], []>} : vector<32x192xbf16>, vector<192x128xbf16>, vector<32x128xf32> -> vector<32x128xf32>
    %108 = arith.addf %103, %107 : vector<32x128xf32>
    %c1_93 = arith.constant 1 : index
    %c4_94 = arith.constant 4 : index
    %c0_95 = arith.constant 0 : index
    %c0_96 = arith.constant 0 : index
    %109 = vector.load %arg4[%c1_93, %c4_94, %c0_95, %c0_96] : memref<2x5x192x128xbf16, #tpu.memory_space<vmem>>, vector<1x1x192x128xbf16>
    %110 = vector.shape_cast %109 : vector<1x1x192x128xbf16> to vector<192x128xbf16>
    %111 = arith.truncf %60 : vector<32x192xf32> to vector<32x192xbf16>
    %cst_97 = arith.constant dense<0.000000e+00> : vector<32x128xf32>
    %112 = tpu.matmul %111, %110, %cst_97 {dimension_numbers = #tpu.dot_dimension_numbers<[1], [0], [0], [1], [0, 0, 1, 1], [], []>} : vector<32x192xbf16>, vector<192x128xbf16>, vector<32x128xf32> -> vector<32x128xf32>
    %113 = arith.addf %108, %112 : vector<32x128xf32>
    %114 = arith.maximumf %89, %113 : vector<32x128xf32>
    %c0_98 = arith.constant 0 : index
    %c0_99 = arith.constant 0 : index
    %c0_100 = arith.constant 0 : index
    %c0_101 = arith.constant 0 : index
    %115 = vector.load %arg4[%c0_98, %c0_99, %c0_100, %c0_101] : memref<2x5x192x128xbf16, #tpu.memory_space<vmem>>, vector<1x1x192x128xbf16>
    %116 = vector.shape_cast %115 : vector<1x1x192x128xbf16> to vector<192x128xbf16>
    %117 = arith.truncf %61 : vector<32x192xf32> to vector<32x192xbf16>
    %cst_102 = arith.constant dense<0.000000e+00> : vector<32x128xf32>
    %118 = tpu.matmul %117, %116, %cst_102 {dimension_numbers = #tpu.dot_dimension_numbers<[1], [0], [0], [1], [0, 0, 1, 1], [], []>} : vector<32x192xbf16>, vector<192x128xbf16>, vector<32x128xf32> -> vector<32x128xf32>
    %c0_103 = arith.constant 0 : index
    %c1_104 = arith.constant 1 : index
    %c0_105 = arith.constant 0 : index
    %c0_106 = arith.constant 0 : index
    %119 = vector.load %arg4[%c0_103, %c1_104, %c0_105, %c0_106] : memref<2x5x192x128xbf16, #tpu.memory_space<vmem>>, vector<1x1x192x128xbf16>
    %120 = vector.shape_cast %119 : vector<1x1x192x128xbf16> to vector<192x128xbf16>
    %121 = arith.truncf %62 : vector<32x192xf32> to vector<32x192xbf16>
    %cst_107 = arith.constant dense<0.000000e+00> : vector<32x128xf32>
    %122 = tpu.matmul %121, %120, %cst_107 {dimension_numbers = #tpu.dot_dimension_numbers<[1], [0], [0], [1], [0, 0, 1, 1], [], []>} : vector<32x192xbf16>, vector<192x128xbf16>, vector<32x128xf32> -> vector<32x128xf32>
    %123 = arith.addf %118, %122 : vector<32x128xf32>
    %c0_108 = arith.constant 0 : index
    %c2_109 = arith.constant 2 : index
    %c0_110 = arith.constant 0 : index
    %c0_111 = arith.constant 0 : index
    %124 = vector.load %arg4[%c0_108, %c2_109, %c0_110, %c0_111] : memref<2x5x192x128xbf16, #tpu.memory_space<vmem>>, vector<1x1x192x128xbf16>
    %125 = vector.shape_cast %124 : vector<1x1x192x128xbf16> to vector<192x128xbf16>
    %126 = arith.truncf %63 : vector<32x192xf32> to vector<32x192xbf16>
    %cst_112 = arith.constant dense<0.000000e+00> : vector<32x128xf32>
    %127 = tpu.matmul %126, %125, %cst_112 {dimension_numbers = #tpu.dot_dimension_numbers<[1], [0], [0], [1], [0, 0, 1, 1], [], []>} : vector<32x192xbf16>, vector<192x128xbf16>, vector<32x128xf32> -> vector<32x128xf32>
    %128 = arith.addf %123, %127 : vector<32x128xf32>
    %c0_113 = arith.constant 0 : index
    %c3_114 = arith.constant 3 : index
    %c0_115 = arith.constant 0 : index
    %c0_116 = arith.constant 0 : index
    %129 = vector.load %arg4[%c0_113, %c3_114, %c0_115, %c0_116] : memref<2x5x192x128xbf16, #tpu.memory_space<vmem>>, vector<1x1x192x128xbf16>
    %130 = vector.shape_cast %129 : vector<1x1x192x128xbf16> to vector<192x128xbf16>
    %131 = arith.truncf %64 : vector<32x192xf32> to vector<32x192xbf16>
    %cst_117 = arith.constant dense<0.000000e+00> : vector<32x128xf32>
    %132 = tpu.matmul %131, %130, %cst_117 {dimension_numbers = #tpu.dot_dimension_numbers<[1], [0], [0], [1], [0, 0, 1, 1], [], []>} : vector<32x192xbf16>, vector<192x128xbf16>, vector<32x128xf32> -> vector<32x128xf32>
    %133 = arith.addf %128, %132 : vector<32x128xf32>
    %c0_118 = arith.constant 0 : index
    %c4_119 = arith.constant 4 : index
    %c0_120 = arith.constant 0 : index
    %c0_121 = arith.constant 0 : index
    %134 = vector.load %arg4[%c0_118, %c4_119, %c0_120, %c0_121] : memref<2x5x192x128xbf16, #tpu.memory_space<vmem>>, vector<1x1x192x128xbf16>
    %135 = vector.shape_cast %134 : vector<1x1x192x128xbf16> to vector<192x128xbf16>
    %136 = arith.truncf %65 : vector<32x192xf32> to vector<32x192xbf16>
    %cst_122 = arith.constant dense<0.000000e+00> : vector<32x128xf32>
    %137 = tpu.matmul %136, %135, %cst_122 {dimension_numbers = #tpu.dot_dimension_numbers<[1], [0], [0], [1], [0, 0, 1, 1], [], []>} : vector<32x192xbf16>, vector<192x128xbf16>, vector<32x128xf32> -> vector<32x128xf32>
    %138 = arith.addf %133, %137 : vector<32x128xf32>
    %c1_123 = arith.constant 1 : index
    %c0_124 = arith.constant 0 : index
    %c0_125 = arith.constant 0 : index
    %c0_126 = arith.constant 0 : index
    %139 = vector.load %arg4[%c1_123, %c0_124, %c0_125, %c0_126] : memref<2x5x192x128xbf16, #tpu.memory_space<vmem>>, vector<1x1x192x128xbf16>
    %140 = vector.shape_cast %139 : vector<1x1x192x128xbf16> to vector<192x128xbf16>
    %141 = arith.truncf %61 : vector<32x192xf32> to vector<32x192xbf16>
    %cst_127 = arith.constant dense<0.000000e+00> : vector<32x128xf32>
    %142 = tpu.matmul %141, %140, %cst_127 {dimension_numbers = #tpu.dot_dimension_numbers<[1], [0], [0], [1], [0, 0, 1, 1], [], []>} : vector<32x192xbf16>, vector<192x128xbf16>, vector<32x128xf32> -> vector<32x128xf32>
    %c1_128 = arith.constant 1 : index
    %c1_129 = arith.constant 1 : index
    %c0_130 = arith.constant 0 : index
    %c0_131 = arith.constant 0 : index
    %143 = vector.load %arg4[%c1_128, %c1_129, %c0_130, %c0_131] : memref<2x5x192x128xbf16, #tpu.memory_space<vmem>>, vector<1x1x192x128xbf16>
    %144 = vector.shape_cast %143 : vector<1x1x192x128xbf16> to vector<192x128xbf16>
    %145 = arith.truncf %62 : vector<32x192xf32> to vector<32x192xbf16>
    %cst_132 = arith.constant dense<0.000000e+00> : vector<32x128xf32>
    %146 = tpu.matmul %145, %144, %cst_132 {dimension_numbers = #tpu.dot_dimension_numbers<[1], [0], [0], [1], [0, 0, 1, 1], [], []>} : vector<32x192xbf16>, vector<192x128xbf16>, vector<32x128xf32> -> vector<32x128xf32>
    %147 = arith.addf %142, %146 : vector<32x128xf32>
    %c1_133 = arith.constant 1 : index
    %c2_134 = arith.constant 2 : index
    %c0_135 = arith.constant 0 : index
    %c0_136 = arith.constant 0 : index
    %148 = vector.load %arg4[%c1_133, %c2_134, %c0_135, %c0_136] : memref<2x5x192x128xbf16, #tpu.memory_space<vmem>>, vector<1x1x192x128xbf16>
    %149 = vector.shape_cast %148 : vector<1x1x192x128xbf16> to vector<192x128xbf16>
    %150 = arith.truncf %63 : vector<32x192xf32> to vector<32x192xbf16>
    %cst_137 = arith.constant dense<0.000000e+00> : vector<32x128xf32>
    %151 = tpu.matmul %150, %149, %cst_137 {dimension_numbers = #tpu.dot_dimension_numbers<[1], [0], [0], [1], [0, 0, 1, 1], [], []>} : vector<32x192xbf16>, vector<192x128xbf16>, vector<32x128xf32> -> vector<32x128xf32>
    %152 = arith.addf %147, %151 : vector<32x128xf32>
    %c1_138 = arith.constant 1 : index
    %c3_139 = arith.constant 3 : index
    %c0_140 = arith.constant 0 : index
    %c0_141 = arith.constant 0 : index
    %153 = vector.load %arg4[%c1_138, %c3_139, %c0_140, %c0_141] : memref<2x5x192x128xbf16, #tpu.memory_space<vmem>>, vector<1x1x192x128xbf16>
    %154 = vector.shape_cast %153 : vector<1x1x192x128xbf16> to vector<192x128xbf16>
    %155 = arith.truncf %64 : vector<32x192xf32> to vector<32x192xbf16>
    %cst_142 = arith.constant dense<0.000000e+00> : vector<32x128xf32>
    %156 = tpu.matmul %155, %154, %cst_142 {dimension_numbers = #tpu.dot_dimension_numbers<[1], [0], [0], [1], [0, 0, 1, 1], [], []>} : vector<32x192xbf16>, vector<192x128xbf16>, vector<32x128xf32> -> vector<32x128xf32>
    %157 = arith.addf %152, %156 : vector<32x128xf32>
    %c1_143 = arith.constant 1 : index
    %c4_144 = arith.constant 4 : index
    %c0_145 = arith.constant 0 : index
    %c0_146 = arith.constant 0 : index
    %158 = vector.load %arg4[%c1_143, %c4_144, %c0_145, %c0_146] : memref<2x5x192x128xbf16, #tpu.memory_space<vmem>>, vector<1x1x192x128xbf16>
    %159 = vector.shape_cast %158 : vector<1x1x192x128xbf16> to vector<192x128xbf16>
    %160 = arith.truncf %65 : vector<32x192xf32> to vector<32x192xbf16>
    %cst_147 = arith.constant dense<0.000000e+00> : vector<32x128xf32>
    %161 = tpu.matmul %160, %159, %cst_147 {dimension_numbers = #tpu.dot_dimension_numbers<[1], [0], [0], [1], [0, 0, 1, 1], [], []>} : vector<32x192xbf16>, vector<192x128xbf16>, vector<32x128xf32> -> vector<32x128xf32>
    %162 = arith.addf %157, %161 : vector<32x128xf32>
    %163 = arith.maximumf %138, %162 : vector<32x128xf32>
    %164 = arith.maximumf %114, %163 : vector<32x128xf32>
    %c0_148 = arith.constant 0 : index
    %c0_149 = arith.constant 0 : index
    %165 = vector.load %arg5[%c0_148, %c0_149] : memref<1x128xf32, #tpu.memory_space<vmem>>, vector<1x128xf32>
    %166 = vector.broadcast %165 : vector<1x128xf32> to vector<32x128xf32>
    %167 = arith.addf %164, %166 : vector<32x128xf32>
    %cst_150 = arith.constant 0.000000e+00 : f32
    %168 = vector.broadcast %cst_150 : f32 to vector<32x128xf32>
    %169 = arith.maximumf %167, %168 : vector<32x128xf32>
    %170 = vector.extract_strided_slice %169 {offsets = [0, 0], sizes = [8, 128], strides = [1, 1]} : vector<32x128xf32> to vector<8x128xf32>
    %c0_151 = arith.constant 0 : index
    %c0_152 = arith.constant 0 : index
    %c0_153 = arith.constant 0 : index
    %171 = vector.load %arg6[%c0_151, %c0_152, %c0_153] : memref<4x128x512xbf16, #tpu.memory_space<vmem>>, vector<1x128x512xbf16>
    %172 = vector.shape_cast %171 : vector<1x128x512xbf16> to vector<128x512xbf16>
    %173 = arith.truncf %170 : vector<8x128xf32> to vector<8x128xbf16>
    %cst_154 = arith.constant dense<0.000000e+00> : vector<8x512xf32>
    %174 = tpu.matmul %173, %172, %cst_154 {dimension_numbers = #tpu.dot_dimension_numbers<[1], [0], [0], [1], [0, 0, 1, 1], [], []>} : vector<8x128xbf16>, vector<128x512xbf16>, vector<8x512xf32> -> vector<8x512xf32>
    %175 = vector.extract_strided_slice %169 {offsets = [8, 0], sizes = [8, 128], strides = [1, 1]} : vector<32x128xf32> to vector<8x128xf32>
    %c1_155 = arith.constant 1 : index
    %c0_156 = arith.constant 0 : index
    %c0_157 = arith.constant 0 : index
    %176 = vector.load %arg6[%c1_155, %c0_156, %c0_157] : memref<4x128x512xbf16, #tpu.memory_space<vmem>>, vector<1x128x512xbf16>
    %177 = vector.shape_cast %176 : vector<1x128x512xbf16> to vector<128x512xbf16>
    %178 = arith.truncf %175 : vector<8x128xf32> to vector<8x128xbf16>
    %cst_158 = arith.constant dense<0.000000e+00> : vector<8x512xf32>
    %179 = tpu.matmul %178, %177, %cst_158 {dimension_numbers = #tpu.dot_dimension_numbers<[1], [0], [0], [1], [0, 0, 1, 1], [], []>} : vector<8x128xbf16>, vector<128x512xbf16>, vector<8x512xf32> -> vector<8x512xf32>
    %180 = arith.addf %174, %179 : vector<8x512xf32>
    %181 = vector.extract_strided_slice %169 {offsets = [16, 0], sizes = [8, 128], strides = [1, 1]} : vector<32x128xf32> to vector<8x128xf32>
    %c2_159 = arith.constant 2 : index
    %c0_160 = arith.constant 0 : index
    %c0_161 = arith.constant 0 : index
    %182 = vector.load %arg6[%c2_159, %c0_160, %c0_161] : memref<4x128x512xbf16, #tpu.memory_space<vmem>>, vector<1x128x512xbf16>
    %183 = vector.shape_cast %182 : vector<1x128x512xbf16> to vector<128x512xbf16>
    %184 = arith.truncf %181 : vector<8x128xf32> to vector<8x128xbf16>
    %cst_162 = arith.constant dense<0.000000e+00> : vector<8x512xf32>
    %185 = tpu.matmul %184, %183, %cst_162 {dimension_numbers = #tpu.dot_dimension_numbers<[1], [0], [0], [1], [0, 0, 1, 1], [], []>} : vector<8x128xbf16>, vector<128x512xbf16>, vector<8x512xf32> -> vector<8x512xf32>
    %186 = arith.addf %180, %185 : vector<8x512xf32>
    %187 = vector.extract_strided_slice %169 {offsets = [24, 0], sizes = [8, 128], strides = [1, 1]} : vector<32x128xf32> to vector<8x128xf32>
    %c3_163 = arith.constant 3 : index
    %c0_164 = arith.constant 0 : index
    %c0_165 = arith.constant 0 : index
    %188 = vector.load %arg6[%c3_163, %c0_164, %c0_165] : memref<4x128x512xbf16, #tpu.memory_space<vmem>>, vector<1x128x512xbf16>
    %189 = vector.shape_cast %188 : vector<1x128x512xbf16> to vector<128x512xbf16>
    %190 = arith.truncf %187 : vector<8x128xf32> to vector<8x128xbf16>
    %cst_166 = arith.constant dense<0.000000e+00> : vector<8x512xf32>
    %191 = tpu.matmul %190, %189, %cst_166 {dimension_numbers = #tpu.dot_dimension_numbers<[1], [0], [0], [1], [0, 0, 1, 1], [], []>} : vector<8x128xbf16>, vector<128x512xbf16>, vector<8x512xf32> -> vector<8x512xf32>
    %192 = arith.addf %186, %191 : vector<8x512xf32>
    %c0_167 = arith.constant 0 : index
    %c0_168 = arith.constant 0 : index
    %193 = vector.load %arg7[%c0_167, %c0_168] : memref<1x512xf32, #tpu.memory_space<vmem>>, vector<1x512xf32>
    %194 = vector.broadcast %193 : vector<1x512xf32> to vector<8x512xf32>
    %195 = arith.addf %192, %194 : vector<8x512xf32>
    %cst_169 = arith.constant 0.000000e+00 : f32
    %196 = vector.broadcast %cst_169 : f32 to vector<8x512xf32>
    %197 = arith.maximumf %195, %196 : vector<8x512xf32>
    %c0_170 = arith.constant 0 : index
    %c0_171 = arith.constant 0 : index
    %198 = vector.load %arg8[%c0_170, %c0_171] : memref<512x128xbf16, #tpu.memory_space<vmem>>, vector<512x128xbf16>
    %199 = arith.truncf %197 : vector<8x512xf32> to vector<8x512xbf16>
    %cst_172 = arith.constant dense<0.000000e+00> : vector<8x128xf32>
    %200 = tpu.matmul %199, %198, %cst_172 {dimension_numbers = #tpu.dot_dimension_numbers<[1], [0], [0], [1], [0, 0, 1, 1], [], []>} : vector<8x512xbf16>, vector<512x128xbf16>, vector<8x128xf32> -> vector<8x128xf32>
    %c0_173 = arith.constant 0 : index
    %c0_174 = arith.constant 0 : index
    %201 = vector.load %arg9[%c0_173, %c0_174] : memref<1x128xf32, #tpu.memory_space<vmem>>, vector<1x128xf32>
    %202 = vector.broadcast %201 : vector<1x128xf32> to vector<8x128xf32>
    %203 = arith.addf %200, %202 : vector<8x128xf32>
    %c0_175 = arith.constant 0 : index
    %c0_176 = arith.constant 0 : index
    %204 = vector.load %arg10[%c0_175, %c0_176] : memref<8x128xf32, #tpu.memory_space<vmem>>, vector<8x128xf32>
    tpu.vector_store %arg10[%c0_175, %c0_176], %203 {strides = array<i32>} : memref<8x128xf32, #tpu.memory_space<vmem>>, vector<8x128xf32>,
    return
  }
  func.func @transform_0(%arg0: i32) -> (i32, i32, i32, i32) {
    %c0_i32 = arith.constant 0 : i32
    %c0_i32_0 = arith.constant 0 : i32
    %c0_i32_1 = arith.constant 0 : i32
    %c0_i32_2 = arith.constant 0 : i32
    return %arg0, %c0_i32, %c0_i32_0, %c0_i32_1 : i32, i32, i32, i32
  }
  func.func @transform_1(%arg0: i32) -> (i32, i32, i32) {
    %c0_i32 = arith.constant 0 : i32
    %c0_i32_0 = arith.constant 0 : i32
    %c0_i32_1 = arith.constant 0 : i32
    %c0_i32_2 = arith.constant 0 : i32
    return %c0_i32, %c0_i32_0, %c0_i32_1 : i32, i32, i32
  }
  func.func @transform_2(%arg0: i32) -> (i32, i32) {
    %c0_i32 = arith.constant 0 : i32
    %c0_i32_0 = arith.constant 0 : i32
    %c0_i32_1 = arith.constant 0 : i32
    return %c0_i32, %c0_i32_0 : i32, i32
  }
  func.func @transform_3(%arg0: i32) -> (i32, i32, i32, i32) {
    %c0_i32 = arith.constant 0 : i32
    %c0_i32_0 = arith.constant 0 : i32
    %c0_i32_1 = arith.constant 0 : i32
    %c0_i32_2 = arith.constant 0 : i32
    %c0_i32_3 = arith.constant 0 : i32
    return %c0_i32, %c0_i32_0, %c0_i32_1, %c0_i32_2 : i32, i32, i32, i32
  }
  func.func @transform_4(%arg0: i32) -> (i32, i32) {
    %c0_i32 = arith.constant 0 : i32
    %c0_i32_0 = arith.constant 0 : i32
    %c0_i32_1 = arith.constant 0 : i32
    return %c0_i32, %c0_i32_0 : i32, i32
  }
  func.func @transform_5(%arg0: i32) -> (i32, i32, i32) {
    %c0_i32 = arith.constant 0 : i32
    %c0_i32_0 = arith.constant 0 : i32
    %c0_i32_1 = arith.constant 0 : i32
    %c0_i32_2 = arith.constant 0 : i32
    return %c0_i32, %c0_i32_0, %c0_i32_1 : i32, i32, i32
  }
  func.func @transform_6(%arg0: i32) -> (i32, i32) {
    %c0_i32 = arith.constant 0 : i32
    %c0_i32_0 = arith.constant 0 : i32
    %c0_i32_1 = arith.constant 0 : i32
    return %c0_i32, %c0_i32_0 : i32, i32
  }
  func.func @transform_7(%arg0: i32) -> (i32, i32) {
    %c0_i32 = arith.constant 0 : i32
    %c0_i32_0 = arith.constant 0 : i32
    %c0_i32_1 = arith.constant 0 : i32
    return %c0_i32, %c0_i32_0 : i32, i32
  }
  func.func @transform_8(%arg0: i32) -> (i32, i32) {
    %c0_i32 = arith.constant 0 : i32
    %c0_i32_0 = arith.constant 0 : i32
    %c0_i32_1 = arith.constant 0 : i32
    return %c0_i32, %c0_i32_0 : i32, i32
  }
  func.func @transform_9(%arg0: i32) -> (i32, i32) {
    %c0_i32 = arith.constant 0 : i32
    %c0_i32_0 = arith.constant 0 : i32
    return %arg0, %c0_i32 : i32, i32
  }
}

</mosaic_0001>

<bundles_post_ra>
// kernel: model0_forward.1
= control target key start
LH: loop header
LB: loop body
LE: loop exit
PB: predicated region body
PF: predicated region fallthrough
CT: control target
= control target key end

     0   :  { %vm157_vm0 = vcmask 97280   ;;  %vm167_vm1 = vcmask 1045504   ;;  %vm1136_vm2 = vcmask 523264   ;;  %s8384_s1 = inlined_call_operand.vmem [shape: bf16[2,140,192], index: 1, kind: input, shape index: {}]   ;;  %s8385_s0 = inlined_call_operand.vmem [shape: f32[1,4,48,140], index: 0, kind: input, shape index: {}]   ;;  %s8386_s3 = inlined_call_operand.vmem [shape: bf16[2,5,192,128], index: 3, kind: input, shape index: {}]   ;;  %s8387_s2 = inlined_call_operand.vmem [shape: f32[1,192], index: 2, kind: input, shape index: {}]   ;;  %s8388_s5 = inlined_call_operand.vmem [shape: bf16[4,128,512], index: 5, kind: input, shape index: {}]   ;;  %s8389_s4 = inlined_call_operand.vmem [shape: f32[1,128], index: 4, kind: input, shape index: {}]   ;;  %s8390_s7 = inlined_call_operand.vmem [shape: bf16[512,128], index: 7, kind: input, shape index: {}]   ;;  %s8391_s6 = inlined_call_operand.vmem [shape: f32[1,512], index: 6, kind: input, shape index: {}]   ;;  %s8392_s8 = inlined_call_operand.vmem [shape: f32[1,128], index: 8, kind: input, shape index: {}]   ;;  %s8393_s9 = inlined_call_operand.vmem [shape: f32[8,128], index: 9, kind: output, shape index: {}]  }
   0x1   :  { %v5854_v0 = vld [vmem:[%s8384_s1 + $0x74] ss:$8 sps:$4 sm:$0xff]   ;;  %v5859_v1 = vld [vmem:[%s8384_s1 + $0x104] ss:$8 sps:$4 sm:$0xff]   ;;  %v5865_v2 = vld [vmem:[%s8384_s1 + $0x70] ss:$8 sps:$4 sm:$0xff]  }
   0x2   :  { %174 = vmatprep.subr.bf16.mxu0 %v5854_v0  ;;  %v5870_v3 = vld [vmem:[%s8384_s1 + $0x100] ss:$8 sps:$4 sm:$0xff]   ;;  %350 = vmatprep.subr.bf16.mxu1 %v5859_v1  ;;  %v5876_v4 = vld [vmem:[%s8384_s1 + $0x64] ss:$8 sps:$4 sm:$0xff]   ;;  %v5883_v5 = vld [vmem:[%s8384_s1 + $0xf4] ss:$8 sps:$4 sm:$0xff]  }
   0x3   :  { %175 = vmatpush1.bf16.msra.mxu0 %v5865_v2  ;;  %351 = vmatpush1.bf16.msra.mxu1 %v5870_v3  ;;  %v5888_v6 = vld [vmem:[%s8384_s1 + $0x60] ss:$8 sps:$4 sm:$0xff]   ;;  %v5894_v7 = vld [vmem:[%s8384_s1 + $0xf0] ss:$8 sps:$4 sm:$0xff]   ;;  %v5900_v8 = vld [vmem:[%s8384_s1 + $0x54] ss:$8 sps:$4 sm:$0xff]  }
   0x4   :  { %176 = vmatprep.subr.bf16.mxu0 %v5876_v4  ;;  %352 = vmatprep.subr.bf16.mxu1 %v5883_v5  ;;  %v5905_v9 = vld [vmem:[%s8384_s1 + $0xe4] ss:$8 sps:$4 sm:$0xff]   ;;  %v5910_v10 = vld [vmem:[%s8384_s1 + $0x50] ss:$8 sps:$4 sm:$0xff]   ;;  %v5915_v11 = vld [vmem:[%s8384_s1 + $0xe0] ss:$8 sps:$4 sm:$0xff]  }
   0x5   :  { %v5922_v12 = vld [vmem:[%s8384_s1 + $0x44] ss:$8 sps:$4 sm:$0xff]   ;;  %v5929_v13 = vld [vmem:[%s8384_s1 + $0xd4] ss:$8 sps:$4 sm:$0xff]   ;;  %v5934_v14 = vld [vmem:[%s8384_s1 + $0x40] ss:$8 sps:$4 sm:$0xff]  }
   0x6   :  { %v5941_v15 = vld [vmem:[%s8384_s1 + $0xd0] ss:$8 sps:$4 sm:$0xff]   ;;  %v5946_v16 = vld [vmem:[%s8384_s1 + $0x34] ss:$8 sps:$4 sm:$0xff]   ;;  %v5953_v17 = vld [vmem:[%s8384_s1 + $0xc4] ss:$8 sps:$4 sm:$0xff]  }
   0x7   :  { %177 = vmatpush1.bf16.msra.mxu0 %v5888_v6  ;;  %353 = vmatpush1.bf16.msra.mxu1 %v5894_v7  ;;  %v5958_v18 = vld [vmem:[%s8384_s1 + $0x30] ss:$8 sps:$4 sm:$0xff]   ;;  %v5963_v19 = vld [vmem:[%s8384_s1 + $0xc0] ss:$8 sps:$4 sm:$0xff]   ;;  %v5970_v20 = vld [vmem:[%s8384_s1 + $0x24] ss:$8 sps:$4 sm:$0xff]  }
   0x8   :  { %178 = vmatprep.subr.bf16.mxu0 %v5900_v8  ;;  %354 = vmatprep.subr.bf16.mxu1 %v5905_v9  ;;  %v5977_v21 = vld [vmem:[%s8384_s1 + $0xb4] ss:$8 sps:$4 sm:$0xff]   ;;  %v5982_v22 = vld [vmem:[%s8384_s1 + $0x20] ss:$8 sps:$4 sm:$0xff]   ;;  %v5989_v23 = vld [vmem:[%s8384_s1 + $0xb0] ss:$8 sps:$4 sm:$0xff]  }
   0x9   :  { %v5994_v24 = vld [vmem:[%s8384_s1 + $0x14] ss:$8 sps:$4 sm:$0xff]   ;;  %v6001_v25 = vld [vmem:[%s8384_s1 + $0xa4] ss:$8 sps:$4 sm:$0xff]   ;;  %v6006_v26 = vld [vmem:[%s8384_s1 + $0x10] ss:$8 sps:$4 sm:$0xff]  }
   0xa   :  { %v6013_v27 = vld [vmem:[%s8384_s1 + $0xa0] ss:$8 sps:$4 sm:$0xff]   ;;  %v36_v29 = vld [vmem:[%s8385_s0 + $0x18] sm:$0xff]  ;;  %v6026_v30 = vld [vmem:[%s8384_s1 + $0x4] ss:$8 sps:$4 sm:$0xff]  }
   0xb   :  { %179 = vmatpush1.bf16.msra.mxu0 %v5910_v10  ;;  %355 = vmatpush1.bf16.msra.mxu1 %v5915_v11  ;;  %v34_v28 = vld [vmem:[%s8385_s0 + $0x8] sm:$0xff]  ;;  %v6031_v31 = vld [vmem:[%s8384_s1 + $0x94] ss:$8 sps:$4 sm:$0xff]   ;;  %v6041_v34 = vld [vmem:[%s8384_s1 + $0x90] ss:$8 sps:$4 sm:$0xff]  }
   0xc   :  { %180 = vmatprep.subr.bf16.mxu0 %v5922_v12  ;;  %356 = vmatprep.subr.bf16.mxu1 %v5929_v13  ;;  %v64_v32 = vpack.c.bf16 %v36_v29, %v34_v28  ;;  %v6036_v33 = vld [vmem:[%s8384_s1] ss:$8 sps:$4 sm:$0xff]   ;;  %v6050_v35 = vld [vmem:[%s8384_s1 + $0x84] ss:$8 sps:$4 sm:$0x3f]   ;;  %v35_v40 = vld [vmem:[%s8385_s0 + $0x10] sm:$0xff] }
   0xd   :  { %v6055_v36 = vld [vmem:[%s8384_s1 + $0x114] ss:$8 sps:$4 sm:$0x3f]   ;;  %v5428_v37 = vld [vmem:[%s8384_s1 + $0x80] ss:$8 sps:$4 sm:$0x3f]  }
   0xe   :  { %4594 = vmatprep.mubr.msk.bf16.mxu0 %vm157_vm0, %v64_v32  ;;  %4634 = vmatprep.mubr.msk.bf16.mxu1 %vm157_vm0, %v64_v32  ;;  %v5429_v38 = vld [vmem:[%s8384_s1 + $0x110] ss:$8 sps:$4 sm:$0x3f]   ;;  %v33_v39 = vld [vmem:[%s8385_s0] sm:$0xff]  ;;  %v6078_v41 = vsel %vm167_vm1, %v5428_v37, 0  ;;  %v38_v44 = vld [vmem:[%s8385_s0 + $0x28] sm:$0xff] }
   0xf   :  { %181 = vmatpush1.bf16.msra.mxu0 %v5934_v14  ;;  %357 = vmatpush1.bf16.msra.mxu1 %v5941_v15  ;;  %v6081_v42 = vsel %vm167_vm1, %v5429_v38, 0  ;;  %v63_v43 = vpack.c.bf16 %v35_v40, %v33_v39  ;;  %v40_v45 = vld [vmem:[%s8385_s0 + $0x38] sm:$0xff]  ;;  %v37_v47 = vld [vmem:[%s8385_s0 + $0x20] sm:$0xff]  ;;  %v39_v48 = vld [vmem:[%s8385_s0 + $0x30] sm:$0xff] }
  0x10   :  { %182 = vmatprep.subr.bf16.mxu0 %v5946_v16  ;;  %358 = vmatprep.subr.bf16.mxu1 %v5953_v17  ;;  %v66_v46 = vpack.c.bf16 %v40_v45, %v38_v44  ;;  %v65_v49 = vpack.c.bf16 %v39_v48, %v37_v47  ;;  %v42_v50 = vld [vmem:[%s8385_s0 + $0x48] sm:$0xff]  ;;  %v44_v51 = vld [vmem:[%s8385_s0 + $0x58] sm:$0xff]  ;;  %v41_v53 = vld [vmem:[%s8385_s0 + $0x40] sm:$0xff] }
  0x11   :  { %v68_v52 = vpack.c.bf16 %v44_v51, %v42_v50  ;;  %v43_v54 = vld [vmem:[%s8385_s0 + $0x50] sm:$0xff]  ;;  %v4638_v56 = vld [vmem:[%s8385_s0 + $0x68] sm:$0xff]  ;;  %v4640_v57 = vld [vmem:[%s8385_s0 + $0x78] sm:$0xff] }
  0x12   :  { %v67_v55 = vpack.c.bf16 %v43_v54, %v41_v53  ;;  %v439_v58 = vpack.c.bf16 %v4640_v57, %v4638_v56  ;;  %v4637_v59 = vld [vmem:[%s8385_s0 + $0x60] sm:$0xff]  ;;  %v4639_v60 = vld [vmem:[%s8385_s0 + $0x70] sm:$0xff]  ;;  %v4642_v62 = vld [vmem:[%s8385_s0 + $0x88] sm:$0xff] }
  0x13   :  { %183 = vmatpush1.bf16.msra.mxu0 %v5958_v18  ;;  %359 = vmatpush1.bf16.msra.mxu1 %v5963_v19  ;;  %v438_v61 = vpack.c.bf16 %v4639_v60, %v4637_v59  ;;  %v4644_v63 = vld [vmem:[%s8385_s0 + $0x98] sm:$0xff]  ;;  %v4641_v29 = vld [vmem:[%s8385_s0 + $0x80] sm:$0xff]  ;;  %v4643_v32 = vld [vmem:[%s8385_s0 + $0x90] sm:$0xff] }
  0x14   :  { %184 = vmatprep.subr.bf16.mxu0 %v5970_v20  ;;  %360 = vmatprep.subr.bf16.mxu1 %v5977_v21  ;;  %v441_v28 = vpack.c.bf16 %v4644_v63, %v4642_v62  ;;  %v440_v37 = vpack.c.bf16 %v4643_v32, %v4641_v29  ;;  %v4646_v38 = vld [vmem:[%s8385_s0 + $0xa8] sm:$0xff]  ;;  %v4648_v39 = vld [vmem:[%s8385_s0 + $0xb8] sm:$0xff]  ;;  %v4647_v44 = vld [vmem:[%s8385_s0 + $0xb0] sm:$0xff] }
  0x15   :  { %v443_v40 = vpack.c.bf16 %v4648_v39, %v4646_v38  ;;  %v4660_v47 = vld [vmem:[%s8385_s0 + $0xd8] sm:$0xff]  ;;  %v4659_v50 = vld [vmem:[%s8385_s0 + $0xd0] sm:$0xff]  ;;  %v5440_v59 = vld [vmem:[%s8386_s3 + $0x48] sm:$0xff]  }
  0x16   :  { %v4664_v53 = vld [vmem:[%s8385_s0 + $0xf8] sm:$0xff]  ;;  %v4663_v56 = vld [vmem:[%s8385_s0 + $0xf0] sm:$0xff]  ;;  %v5445_v60 = vld [vmem:[%s8386_s3 + $0x88] sm:$0xff]  }
  0x17   :  { %185 = vmatpush1.bf16.msra.mxu0 %v5982_v22  ;;  %361 = vmatpush1.bf16.msra.mxu1 %v5989_v23  ;;  %v5442_v57 = vld [vmem:[%s8386_s3 + $0x98] sm:$0xff]   ;;  %v5447_v62 = vld [vmem:[%s8386_s3 + $0x80] sm:$0xff]   ;;  %v5453_v29 = vld [vmem:[%s8386_s3 + $0x68] sm:$0xff]  }
  0x18   :  { %186 = vmatprep.subr.bf16.mxu0 %v5994_v24  ;;  %362 = vmatprep.subr.bf16.mxu1 %v6001_v25  ;;  %v5449_v63 = vld [vmem:[%s8386_s3 + $0x78] sm:$0xff]   ;;  %v5455_v32 = vld [vmem:[%s8386_s3 + $0x60] sm:$0xff]   ;;  %v5459_v38 = vld [vmem:[%s8386_s3 + $0xb0] sm:$0xff]  }
  0x19   :  { %v5461_v39 = vld [vmem:[%s8386_s3 + $0xa8] sm:$0xff]  }
  0x1b   :  { %187 = vmatpush1.bf16.msra.mxu0 %v6006_v26  ;;  %363 = vmatpush1.bf16.msra.mxu1 %v6013_v27 }
  0x1c   :  { %188 = vmatprep.subr.bf16.mxu0 %v6026_v30  ;;  %364 = vmatprep.subr.bf16.mxu1 %v6031_v31 }
  0x1f   :  { %189 = vmatpush1.bf16.msra.mxu0 %v6036_v33  ;;  %365 = vmatpush1.bf16.msra.mxu1 %v6041_v34 }
  0x20   :  { %4593 = vmatprep.subr.msk.bf16.mxu0 %vm167_vm1, %v6050_v35  ;;  %4633 = vmatprep.subr.msk.bf16.mxu1 %vm167_vm1, %v6055_v36 }
  0x23   :  { %205 = vmatpush2.bf16.msra.mxu0 %v6078_v41  ;;  %381 = vmatpush2.bf16.msra.mxu1 %v6081_v42 }
  0x24   :  { %453 = vmatprep.subr.bf16.mxu0 %v5854_v0  ;;  %528 = vmatprep.subr.bf16.mxu1 %v5859_v1 }
  0x26   :  { %207 = vmatmul.mubr.bf16.vlgmr.msra.gmra.mxu0 %v63_v43  ;;  %383 = vmatmul.mubr.bf16.vlgmr.msra.gmra.mxu1 %v63_v43  ;;  %v4645_v43 = vld [vmem:[%s8385_s0 + $0xa0] sm:$0xff] }
  0x27   :  { %454 = vmatpush1.bf16.msra.mxu0 %v5865_v2  ;;  %529 = vmatpush1.bf16.msra.mxu1 %v5870_v3  ;;  %v442_v45 = vpack.c.bf16 %v4647_v44, %v4645_v43 }
  0x28   :  { %455 = vmatprep.subr.bf16.mxu0 %v5876_v4  ;;  %530 = vmatprep.subr.bf16.mxu1 %v5883_v5 }
  0x29   :  { %4595 = vmatprep.mubr.msk.bf16.mxu0 %vm157_vm0, %v66_v46  ;;  %4635 = vmatprep.mubr.msk.bf16.mxu1 %vm157_vm0, %v66_v46  ;;  %v4658_v46 = vld [vmem:[%s8385_s0 + $0xc8] sm:$0xff] }
  0x2a   :  { %v653_v48 = vpack.c.bf16 %v4660_v47, %v4658_v46 }
  0x2b   :  { %456 = vmatpush1.bf16.msra.mxu0 %v5888_v6  ;;  %531 = vmatpush1.bf16.msra.mxu1 %v5894_v7 }
  0x2c   :  { %457 = vmatprep.subr.bf16.mxu0 %v5900_v8  ;;  %532 = vmatprep.subr.bf16.mxu1 %v5905_v9 }
  0x2e   :  { %217 = vmatmul.mubr.bf16.gmra.mxu0 %v65_v49  ;;  %393 = vmatmul.mubr.bf16.gmra.mxu1 %v65_v49  ;;  %v4657_v49 = vld [vmem:[%s8385_s0 + $0xc0] sm:$0xff] }
  0x2f   :  { %458 = vmatpush1.bf16.msra.mxu0 %v5910_v10  ;;  %533 = vmatpush1.bf16.msra.mxu1 %v5915_v11  ;;  %v652_v51 = vpack.c.bf16 %v4659_v50, %v4657_v49 }
  0x30   :  { %459 = vmatprep.subr.bf16.mxu0 %v5922_v12  ;;  %534 = vmatprep.subr.bf16.mxu1 %v5929_v13 }
  0x31   :  { %4596 = vmatprep.mubr.msk.bf16.mxu0 %vm157_vm0, %v68_v52  ;;  %4636 = vmatprep.mubr.msk.bf16.mxu1 %vm157_vm0, %v68_v52  ;;  %v4662_v52 = vld [vmem:[%s8385_s0 + $0xe8] sm:$0xff] }
  0x32   :  { %v655_v54 = vpack.c.bf16 %v4664_v53, %v4662_v52 }
  0x33   :  { %460 = vmatpush1.bf16.msra.mxu0 %v5934_v14  ;;  %535 = vmatpush1.bf16.msra.mxu1 %v5941_v15 }
  0x34   :  { %461 = vmatprep.subr.bf16.mxu0 %v5946_v16  ;;  %536 = vmatprep.subr.bf16.mxu1 %v5953_v17 }
  0x36   :  { %227 = vmatmul.mubr.bf16.gmra.mxu0 %v67_v55  ;;  %403 = vmatmul.mubr.bf16.gmra.mxu1 %v67_v55  ;;  %v4661_v55 = vld [vmem:[%s8385_s0 + $0xe0] sm:$0xff] }
  0x37   :  { %462 = vmatpush1.bf16.msra.mxu0 %v5958_v18  ;;  %537 = vmatpush1.bf16.msra.mxu1 %v5963_v19 }
  0x38   :  { %463 = vmatprep.subr.bf16.mxu0 %v5970_v20  ;;  %538 = vmatprep.subr.bf16.mxu1 %v5977_v21 }
  0x39   :  { %4650 = vmatprep.mubr.msk.bf16.mxu0 %vm157_vm0, %v439_v58  ;;  %4654 = vmatprep.mubr.msk.bf16.mxu1 %vm157_vm0, %v439_v58  ;;  %v5443_v58 = vld [vmem:[%s8386_s3 + $0x90] sm:$0xff]  }
  0x3b   :  { %464 = vmatpush1.bf16.msra.mxu0 %v5982_v22  ;;  %539 = vmatpush1.bf16.msra.mxu1 %v5989_v23 }
  0x3c   :  { %465 = vmatprep.subr.bf16.mxu0 %v5994_v24  ;;  %540 = vmatprep.subr.bf16.mxu1 %v6001_v25 }
  0x3f   :  { %466 = vmatpush1.bf16.msra.mxu0 %v6006_v26  ;;  %541 = vmatpush1.bf16.msra.mxu1 %v6013_v27 }
  0x40   :  { %467 = vmatprep.subr.bf16.mxu0 %v6026_v30  ;;  %542 = vmatprep.subr.bf16.mxu1 %v6031_v31 }
  0x43   :  { %468 = vmatpush1.bf16.msra.mxu0 %v6036_v33  ;;  %543 = vmatpush1.bf16.msra.mxu1 %v6041_v34 }
  0x44   :  { %4649 = vmatprep.subr.msk.bf16.mxu0 %vm167_vm1, %v6050_v35  ;;  %4653 = vmatprep.subr.msk.bf16.mxu1 %vm167_vm1, %v6055_v36 }
  0x47   :  { %484 = vmatpush2.bf16.msra.mxu0 %v6078_v41  ;;  %559 = vmatpush2.bf16.msra.mxu1 %v6081_v42 }
  0x48   :  { %667 = vmatprep.subr.bf16.mxu0 %v5854_v0  ;;  %730 = vmatprep.subr.bf16.mxu1 %v5859_v1 }
  0x4a   :  { %486 = vmatmul.mubr.bf16.vlgmr.msra.gmra.mxu0 %v438_v61  ;;  %561 = vmatmul.mubr.bf16.vlgmr.msra.gmra.mxu1 %v438_v61  ;;  %v5441_v61 = vld [vmem:[%s8386_s3 + $0x40] sm:$0xff]  }
  0x4b   :  { %668 = vmatpush1.bf16.msra.mxu0 %v5865_v2  ;;  %731 = vmatpush1.bf16.msra.mxu1 %v5870_v3 }
  0x4c   :  { %669 = vmatprep.subr.bf16.mxu0 %v5876_v4  ;;  %732 = vmatprep.subr.bf16.mxu1 %v5883_v5 }
  0x4d   :  { %4651 = vmatprep.mubr.msk.bf16.mxu0 %vm157_vm0, %v441_v28  ;;  %4655 = vmatprep.mubr.msk.bf16.mxu1 %vm157_vm0, %v441_v28  ;;  %v5451_v28 = vld [vmem:[%s8386_s3 + $0x70] sm:$0xff]  }
  0x4f   :  { %670 = vmatpush1.bf16.msra.mxu0 %v5888_v6  ;;  %733 = vmatpush1.bf16.msra.mxu1 %v5894_v7 }
  0x50   :  { %671 = vmatprep.subr.bf16.mxu0 %v5900_v8  ;;  %734 = vmatprep.subr.bf16.mxu1 %v5905_v9 }
  0x52   :  { %496 = vmatmul.mubr.bf16.gmra.mxu0 %v440_v37  ;;  %571 = vmatmul.mubr.bf16.gmra.mxu1 %v440_v37  ;;  %v5457_v37 = vld [vmem:[%s8386_s3 + $0xb8] sm:$0xff]  }
  0x53   :  { %672 = vmatpush1.bf16.msra.mxu0 %v5910_v10  ;;  %735 = vmatpush1.bf16.msra.mxu1 %v5915_v11 }
  0x54   :  { %673 = vmatprep.subr.bf16.mxu0 %v5922_v12  ;;  %736 = vmatprep.subr.bf16.mxu1 %v5929_v13 }
  0x55   :  { %4652 = vmatprep.mubr.msk.bf16.mxu0 %vm157_vm0, %v443_v40  ;;  %4656 = vmatprep.mubr.msk.bf16.mxu1 %vm157_vm0, %v443_v40  ;;  %v5463_v40 = vld [vmem:[%s8386_s3 + $0xa0] sm:$0xff]  }
  0x57   :  { %674 = vmatpush1.bf16.msra.mxu0 %v5934_v14  ;;  %737 = vmatpush1.bf16.msra.mxu1 %v5941_v15 }
  0x58   :  { %675 = vmatprep.subr.bf16.mxu0 %v5946_v16  ;;  %738 = vmatprep.subr.bf16.mxu1 %v5953_v17 }
  0x5a   :  { %506 = vmatmul.mubr.bf16.gmra.mxu0 %v442_v45  ;;  %581 = vmatmul.mubr.bf16.gmra.mxu1 %v442_v45 }
  0x5b   :  { %676 = vmatpush1.bf16.msra.mxu0 %v5958_v18  ;;  %739 = vmatpush1.bf16.msra.mxu1 %v5963_v19 }
  0x5c   :  { %677 = vmatprep.subr.bf16.mxu0 %v5970_v20  ;;  %740 = vmatprep.subr.bf16.mxu1 %v5977_v21 }
  0x5d   :  { %4670 = vmatprep.mubr.msk.bf16.mxu0 %vm157_vm0, %v653_v48  ;;  %4674 = vmatprep.mubr.msk.bf16.mxu1 %vm157_vm0, %v653_v48 }
  0x5f   :  { %678 = vmatpush1.bf16.msra.mxu0 %v5982_v22  ;;  %741 = vmatpush1.bf16.msra.mxu1 %v5989_v23 }
  0x60   :  { %679 = vmatprep.subr.bf16.mxu0 %v5994_v24  ;;  %742 = vmatprep.subr.bf16.mxu1 %v6001_v25 }
  0x63   :  { %680 = vmatpush1.bf16.msra.mxu0 %v6006_v26  ;;  %743 = vmatpush1.bf16.msra.mxu1 %v6013_v27 }
  0x64   :  { %681 = vmatprep.subr.bf16.mxu0 %v6026_v30  ;;  %744 = vmatprep.subr.bf16.mxu1 %v6031_v31 }
  0x67   :  { %682 = vmatpush1.bf16.msra.mxu0 %v6036_v33  ;;  %745 = vmatpush1.bf16.msra.mxu1 %v6041_v34 }
  0x68   :  { %4669 = vmatprep.subr.msk.bf16.mxu0 %vm167_vm1, %v6050_v35  ;;  %4673 = vmatprep.subr.msk.bf16.mxu1 %vm167_vm1, %v6055_v36 }
  0x6b   :  { %698 = vmatpush2.bf16.msra.mxu0 %v6078_v41  ;;  %761 = vmatpush2.bf16.msra.mxu1 %v6081_v42 }
  0x6c   :  { %833 = vmatprep.subr.bf16.mxu0 %v5854_v0  ;;  %908 = vmatprep.subr.bf16.mxu1 %v5859_v1  ;;  %v4666_v0 = vld [vmem:[%s8385_s0 + $0x108] sm:$0xff]  ;;  %v4668_v1 = vld [vmem:[%s8385_s0 + $0x118] sm:$0xff] }
  0x6e   :  { %700 = vmatmul.mubr.bf16.vlgmr.msra.gmra.mxu0 %v652_v51  ;;  %763 = vmatmul.mubr.bf16.vlgmr.msra.gmra.mxu1 %v652_v51 }
  0x6f   :  { %834 = vmatpush1.bf16.msra.mxu0 %v5865_v2  ;;  %909 = vmatpush1.bf16.msra.mxu1 %v5870_v3  ;;  %v654_v2 = vpack.c.bf16 %v4663_v56, %v4661_v55  ;;  %v657_v3 = vpack.c.bf16 %v4668_v1, %v4666_v0 }
  0x70   :  { %835 = vmatprep.subr.bf16.mxu0 %v5876_v4  ;;  %910 = vmatprep.subr.bf16.mxu1 %v5883_v5  ;;  %v4665_v4 = vld [vmem:[%s8385_s0 + $0x100] sm:$0xff]  ;;  %v4667_v5 = vld [vmem:[%s8385_s0 + $0x110] sm:$0xff] }
  0x71   :  { %4671 = vmatprep.mubr.msk.bf16.mxu0 %vm157_vm0, %v655_v54  ;;  %4675 = vmatprep.mubr.msk.bf16.mxu1 %vm157_vm0, %v655_v54 }
  0x73   :  { %836 = vmatpush1.bf16.msra.mxu0 %v5888_v6  ;;  %911 = vmatpush1.bf16.msra.mxu1 %v5894_v7  ;;  %v4678_v6 = vld [vmem:[%s8385_s0 + $0x128] sm:$0xff]  ;;  %v4680_v7 = vld [vmem:[%s8385_s0 + $0x138] sm:$0xff] }
  0x74   :  { %837 = vmatprep.subr.bf16.mxu0 %v5900_v8  ;;  %912 = vmatprep.subr.bf16.mxu1 %v5905_v9  ;;  %v656_v8 = vpack.c.bf16 %v4667_v5, %v4665_v4  ;;  %v819_v9 = vpack.c.bf16 %v4680_v7, %v4678_v6 }
  0x76   :  { %710 = vmatmul.mubr.bf16.gmra.mxu0 %v654_v2  ;;  %773 = vmatmul.mubr.bf16.gmra.mxu1 %v654_v2 }
  0x77   :  { %838 = vmatpush1.bf16.msra.mxu0 %v5910_v10  ;;  %913 = vmatpush1.bf16.msra.mxu1 %v5915_v11  ;;  %v4677_v10 = vld [vmem:[%s8385_s0 + $0x120] sm:$0xff]  ;;  %v4679_v11 = vld [vmem:[%s8385_s0 + $0x130] sm:$0xff] }
  0x78   :  { %839 = vmatprep.subr.bf16.mxu0 %v5922_v12  ;;  %914 = vmatprep.subr.bf16.mxu1 %v5929_v13  ;;  %v4682_v12 = vld [vmem:[%s8385_s0 + $0x148] sm:$0xff]  ;;  %v4684_v13 = vld [vmem:[%s8385_s0 + $0x158] sm:$0xff] }
  0x79   :  { %4672 = vmatprep.mubr.msk.bf16.mxu0 %vm157_vm0, %v657_v3  ;;  %4676 = vmatprep.mubr.msk.bf16.mxu1 %vm157_vm0, %v657_v3 }
  0x7b   :  { %840 = vmatpush1.bf16.msra.mxu0 %v5934_v14  ;;  %915 = vmatpush1.bf16.msra.mxu1 %v5941_v15  ;;  %v818_v14 = vpack.c.bf16 %v4679_v11, %v4677_v10  ;;  %v821_v15 = vpack.c.bf16 %v4684_v13, %v4682_v12  ;;  %v605_v11 = vlaneseq }
  0x7c   :  { %841 = vmatprep.subr.bf16.mxu0 %v5946_v16  ;;  %916 = vmatprep.subr.bf16.mxu1 %v5953_v17  ;;  %v5430_v16 = vld [vmem:[%s8386_s3 + $0x38] sm:$0xff]   ;;  %v8401_v17 = vmov 0  }
  0x7e   :  { %720 = vmatmul.mubr.bf16.gmra.mxu0 %v656_v8  ;;  %783 = vmatmul.mubr.bf16.gmra.mxu1 %v656_v8 }
  0x7f   :  { %842 = vmatpush1.bf16.msra.mxu0 %v5958_v18  ;;  %917 = vmatpush1.bf16.msra.mxu1 %v5963_v19  ;;  %v4681_v18 = vld [vmem:[%s8385_s0 + $0x140] sm:$0xff]  ;;  %v4683_v19 = vld [vmem:[%s8385_s0 + $0x150] sm:$0xff] }
  0x80   :  { %843 = vmatprep.subr.bf16.mxu0 %v5970_v20  ;;  %918 = vmatprep.subr.bf16.mxu1 %v5977_v21  ;;  %v4686_v20 = vld [vmem:[%s8385_s0 + $0x168] sm:$0xff]  ;;  %v4688_v21 = vld [vmem:[%s8385_s0 + $0x178] sm:$0xff] }
  0x81   :  { %4690 = vmatprep.mubr.msk.bf16.mxu0 %vm157_vm0, %v819_v9  ;;  %4694 = vmatprep.mubr.msk.bf16.mxu1 %vm157_vm0, %v819_v9 }
  0x83   :  { %844 = vmatpush1.bf16.msra.mxu0 %v5982_v22  ;;  %919 = vmatpush1.bf16.msra.mxu1 %v5989_v23  ;;  %v5431_v22 = vld [vmem:[%s8386_s3 + $0x30] sm:$0xff]   ;;  %v820_v23 = vpack.c.bf16 %v4683_v19, %v4681_v18 }
  0x84   :  { %845 = vmatprep.subr.bf16.mxu0 %v5994_v24  ;;  %920 = vmatprep.subr.bf16.mxu1 %v6001_v25  ;;  %v823_v24 = vpack.c.bf16 %v4688_v21, %v4686_v20  ;;  %v5432_v25 = vld [vmem:[%s8386_s3 + $0x28] sm:$0xff]  }
  0x87   :  { %846 = vmatpush1.bf16.msra.mxu0 %v6006_v26  ;;  %921 = vmatpush1.bf16.msra.mxu1 %v6013_v27  ;;  %v4685_v26 = vld [vmem:[%s8385_s0 + $0x160] sm:$0xff]  ;;  %v4687_v27 = vld [vmem:[%s8385_s0 + $0x170] sm:$0xff] }
  0x88   :  { %847 = vmatprep.subr.bf16.mxu0 %v6026_v30  ;;  %922 = vmatprep.subr.bf16.mxu1 %v6031_v31  ;;  %v5433_v30 = vld [vmem:[%s8386_s3 + $0x20] sm:$0xff]   ;;  %v822_v31 = vpack.c.bf16 %v4687_v27, %v4685_v26 }
  0x89   :  { %v603_v26 = vld [vmem:[%s8387_s2] sm:$0x3] }
  0x8b   :  { %848 = vmatpush1.bf16.msra.mxu0 %v6036_v33  ;;  %923 = vmatpush1.bf16.msra.mxu1 %v6041_v34  ;;  %v5434_v33 = vld [vmem:[%s8386_s3 + $0x18] sm:$0xff]   ;;  %v5435_v34 = vld [vmem:[%s8386_s3 + $0x10] sm:$0xff]  }
  0x8c   :  { %4689 = vmatprep.subr.msk.bf16.mxu0 %vm167_vm1, %v6050_v35  ;;  %4693 = vmatprep.subr.msk.bf16.mxu1 %vm167_vm1, %v6055_v36  ;;  %v5436_v35 = vld [vmem:[%s8386_s3 + $0x8] sm:$0xff]   ;;  %v5437_v36 = vld [vmem:[%s8386_s3] sm:$0xff]  }
  0x8f   :  { %864 = vmatpush2.bf16.msra.mxu0 %v6078_v41  ;;  %939 = vmatpush2.bf16.msra.mxu1 %v6081_v42  ;;  %v5438_v41 = vld [vmem:[%s8386_s3 + $0x58] sm:$0xff]   ;;  %v5439_v42 = vld [vmem:[%s8386_s3 + $0x50] sm:$0xff]  }
  0x90   :  { %1270 = vmatprep.subr.bf16.mxu1 %v8401_v17  ;;  %1143 = vmatprep.subr.bf16.mxu0 %v8401_v17 }
  0x92   :  { %866 = vmatmul.mubr.bf16.vlgmr.msra.gmra.mxu0 %v818_v14  ;;  %941 = vmatmul.mubr.bf16.vlgmr.msra.gmra.mxu1 %v818_v14  ;;  %v6481_v14 = vshrl.u32 %v605_v11, 7 }
  0x93   :  { %4691 = vmatprep.mubr.msk.bf16.mxu0 %vm157_vm0, %v821_v15  ;;  %4695 = vmatprep.mubr.msk.bf16.mxu1 %vm157_vm0, %v821_v15 }
  0x94   :  { %1271 = vmatpush1.bf16.msra.mxu1 %v5430_v16  ;;  %1144 = vmatpush1.bf16.msra.mxu0 %v5442_v57  ;;  %8469 = vst [vmem:[#allocation2_spill] sm:$0xff] %v6481_v14  ;;  %v8394_v20 = vsub.s32 1, %v6481_v14 }
  0x95   :  { %1272 = vmatprep.subr.bf16.mxu1 %v8401_v17  ;;  %1145 = vmatprep.subr.bf16.mxu0 %v8401_v17 }
  0x98   :  { %1273 = vmatpush1.bf16.msra.mxu1 %v5431_v22  ;;  %1146 = vmatpush1.bf16.msra.mxu0 %v5443_v58  ;;  %v8395_v22 = vsub.s32 0, %v6481_v14 }
  0x99   :  { %1274 = vmatprep.subr.bf16.mxu1 %v8401_v17  ;;  %1147 = vmatprep.subr.bf16.mxu0 %v8401_v17 }
  0x9a   :  { %876 = vmatmul.mubr.bf16.gmra.mxu0 %v820_v23  ;;  %951 = vmatmul.mubr.bf16.gmra.mxu1 %v820_v23 }
  0x9b   :  { %4692 = vmatprep.mubr.msk.bf16.mxu0 %vm157_vm0, %v823_v24  ;;  %4696 = vmatprep.mubr.msk.bf16.mxu1 %vm157_vm0, %v823_v24 }
  0x9c   :  { %1275 = vmatpush1.bf16.msra.mxu1 %v5432_v25  ;;  %1148 = vmatpush1.bf16.msra.mxu0 %v5445_v60 }
  0x9d   :  { %1276 = vmatprep.subr.bf16.mxu1 %v8401_v17  ;;  %1149 = vmatprep.subr.bf16.mxu0 %v8401_v17 }
  0xa0   :  { %1277 = vmatpush1.bf16.msra.mxu1 %v5433_v30  ;;  %1150 = vmatpush1.bf16.msra.mxu0 %v5447_v62 }
  0xa1   :  { %1278 = vmatprep.subr.bf16.mxu1 %v8401_v17  ;;  %1151 = vmatprep.subr.bf16.mxu0 %v8401_v17 }
  0xa2   :  { %886 = vmatmul.mubr.bf16.gmra.mxu0 %v822_v31  ;;  %961 = vmatmul.mubr.bf16.gmra.mxu1 %v822_v31 }
  0xa4   :  { %1279 = vmatpush1.bf16.msra.mxu1 %v5434_v33  ;;  %1152 = vmatpush1.bf16.msra.mxu0 %v5449_v63 }
  0xa5   :  { %1280 = vmatprep.subr.bf16.mxu1 %v8401_v17  ;;  %1153 = vmatprep.subr.bf16.mxu0 %v8401_v17 }
  0xa8   :  { %1281 = vmatpush1.bf16.msra.mxu1 %v5435_v34  ;;  %1154 = vmatpush1.bf16.msra.mxu0 %v5451_v28 }
  0xa9   :  { %1282 = vmatprep.subr.bf16.mxu1 %v8401_v17  ;;  %1155 = vmatprep.subr.bf16.mxu0 %v8401_v17 }
  0xac   :  { %1283 = vmatpush1.bf16.msra.mxu1 %v5436_v35  ;;  %1156 = vmatpush1.bf16.msra.mxu0 %v5453_v29  ;;  %v6490_v35 = vrot.slane %v603_v26, %v8394_v20 }
  0xad   :  { %1284 = vmatprep.subr.bf16.mxu1 %v8401_v17  ;;  %1157 = vmatprep.subr.bf16.mxu0 %v8401_v17 }
  0xae   :  { %8470 = vst [vmem:[#allocation3_spill] sm:$0xff] %v6490_v35 }
  0xb0   :  { %1285 = vmatpush1.bf16.msra.mxu1 %v5437_v36  ;;  %1158 = vmatpush1.bf16.msra.mxu0 %v5455_v32 }
  0xb1   :  { %1294 = vmatprep.subr.bf16.mxu1 %v8401_v17  ;;  %1167 = vmatprep.subr.bf16.mxu0 %v8401_v17 }
  0xb4   :  { %1295 = vmatpush2.bf16.msra.mxu1 %v5438_v41  ;;  %1168 = vmatpush2.bf16.msra.mxu0 %v5457_v37 }
  0xb5   :  { %1296 = vmatprep.subr.bf16.mxu1 %v8401_v17  ;;  %1169 = vmatprep.subr.bf16.mxu0 %v8401_v17 }
  0xb8   :  { %1297 = vmatpush2.bf16.msra.mxu1 %v5439_v42  ;;  %1170 = vmatpush2.bf16.msra.mxu0 %v5459_v38  ;;  %v6494_v42 = vrot.slane %v603_v26, %v8395_v22 }
  0xb9   :  { %1298 = vmatprep.subr.bf16.mxu1 %v8401_v17  ;;  %1171 = vmatprep.subr.bf16.mxu0 %v8401_v17 }
  0xbc   :  { %1299 = vmatpush2.bf16.msra.mxu1 %v5440_v59  ;;  %1172 = vmatpush2.bf16.msra.mxu0 %v5461_v39 }
  0xbd   :  { %1300 = vmatprep.subr.bf16.mxu1 %v8401_v17  ;;  %1173 = vmatprep.subr.bf16.mxu0 %v8401_v17 }
  0xc0   :  { %1301 = vmatpush2.bf16.msra.mxu1 %v5441_v61  ;;  %1174 = vmatpush2.bf16.msra.mxu0 %v5463_v40 }
  0xc1   :  { %1586 = vmatprep.subr.bf16.mxu1 %v8401_v17  ;;  %1426 = vmatprep.subr.bf16.mxu0 %v8401_v17 }
  0xe6   :  { %v208_v43 = vpop.f32.mrf.mxu0  ;;  %v384_v44 = vpop.f32.mrf.mxu1 }
  0xe7   :  { %v413_v15 = vmax.f32 %v208_v43, %v384_v44 }
  0xe8   :  { %v210_v45 = vpop.f32.mrf.mxu0  ;;  %v386_v46 = vpop.f32.mrf.mxu1 }
  0xe9   :  { %v414_v19 = vmax.f32 %v210_v45, %v386_v46 }
  0xea   :  { %v212_v47 = vpop.f32.mrf.mxu0  ;;  %v388_v48 = vpop.f32.mrf.mxu1 }
  0xeb   :  { %v415_v25 = vmax.f32 %v212_v47, %v388_v48 }
  0xec   :  { %v214_v49 = vpop.f32.mrf.mxu0  ;;  %v390_v50 = vpop.f32.mrf.mxu1 }
  0xed   :  { %v416_v33 = vmax.f32 %v214_v49, %v390_v50 }
  0xee   :  { %v218_v51 = vpop.f32.mrf.mxu0  ;;  %v394_v52 = vpop.f32.mrf.mxu1 }
  0xef   :  { %v417_v59 = vmax.f32 %v218_v51, %v394_v52 }
  0xf0   :  { %v220_v53 = vpop.f32.mrf.mxu0  ;;  %v396_v54 = vpop.f32.mrf.mxu1 }
  0xf1   :  { %v418_v62 = vmax.f32 %v220_v53, %v396_v54 }
  0xf2   :  { %v6451_v55 = vpop.f32.mrf.mxu0  ;;  %v6453_v56 = vpop.f32.mrf.mxu1 }
  0xf3   :  { %v419_v44 = vmax.f32 %v6451_v55, %v6453_v56 }
  0xf4   :  { %v6455_v0 = vpop.f32.mrf.mxu0  ;;  %v6457_v1 = vpop.f32.mrf.mxu1 }
  0xf5   :  { %v420_v48 = vmax.f32 %v6455_v0, %v6457_v1  ;;  %v5444_v0 = vld [vmem:[%s8386_s3 + $0x158] sm:$0xff]  }
  0xf6   :  { %v6459_v2 = vpop.f32.mrf.mxu0  ;;  %v6461_v3 = vpop.f32.mrf.mxu1 }
  0xf7   :  { %v421_v4 = vmax.f32 %v6459_v2, %v6461_v3  ;;  %v5446_v2 = vld [vmem:[%s8386_s3 + $0x150] sm:$0xff]  }
  0xf8   :  { %v6465_v5 = vpop.f32.mrf.mxu0  ;;  %v6467_v6 = vpop.f32.mrf.mxu1 }
  0xf9   :  { %v422_v7 = vmax.f32 %v6465_v5, %v6467_v6 }
  0xfa   :  { %v6471_v8 = vpop.f32.mrf.mxu0  ;;  %v6473_v9 = vpop.f32.mrf.mxu1 }
  0xfb   :  { %v423_v10 = vmax.f32 %v6471_v8, %v6473_v9 }
  0xfc   :  { %v6477_v12 = vpop.f32.mrf.mxu0  ;;  %v6479_v13 = vpop.f32.mrf.mxu1 }
 0x10a   :  { %v487_v16 = vpop.f32.mrf.mxu0  ;;  %v562_v18 = vpop.f32.mrf.mxu1 }
 0x10b   :  { %v516_v21 = vmax.f32 %v413_v15, %v487_v16 }
 0x10c   :  { %v489_v23 = vpop.f32.mrf.mxu0  ;;  %v564_v24 = vpop.f32.mrf.mxu1 }
 0x10d   :  { %v517_v27 = vmax.f32 %v414_v19, %v489_v23  ;;  %v591_v41 = vmax.f32 %v516_v21, %v562_v18 }
 0x10e   :  { %v491_v30 = vpop.f32.mrf.mxu0  ;;  %v566_v31 = vpop.f32.mrf.mxu1 }
 0x10f   :  { %v592_v34 = vmax.f32 %v517_v27, %v564_v24  ;;  %v518_v36 = vmax.f32 %v415_v25, %v491_v30  ;;  %v615_v39 = vadd.f32 %v6494_v42, %v591_v41 }
 0x110   :  { %v493_v57 = vpop.f32.mrf.mxu0  ;;  %v568_v58 = vpop.f32.mrf.mxu1 }
 0x111   :  { %v593_v60 = vmax.f32 %v518_v36, %v566_v31  ;;  %v519_v61 = vmax.f32 %v416_v33, %v493_v57  ;;  %v616_v29 = vadd.f32 %v6490_v35, %v592_v34  ;;  %v627_v15 = vmax.f32 %v615_v39, 0.0 }
 0x112   :  { %v497_v63 = vpop.f32.mrf.mxu0  ;;  %v572_v28 = vpop.f32.mrf.mxu1 }
 0x113   :  { %v617_v32 = vadd.f32 %v6494_v42, %v593_v60  ;;  %v594_v37 = vmax.f32 %v519_v61, %v568_v58  ;;  %v520_v38 = vmax.f32 %v417_v59, %v497_v63  ;;  %v628_v52 = vmax.f32 %v616_v29, 0.0 }
 0x114   :  { %v499_v40 = vpop.f32.mrf.mxu0  ;;  %v574_v43 = vpop.f32.mrf.mxu1 }
 0x115   :  { %v618_v45 = vadd.f32 %v6490_v35, %v594_v37  ;;  %v521_v46 = vmax.f32 %v418_v62, %v499_v40  ;;  %v595_v47 = vmax.f32 %v520_v38, %v572_v28  ;;  %v629_v49 = vmax.f32 %v617_v32, 0.0  ;;  %v6541_v32 = vld [vmem:[%s8386_s3 + $0x148] sm:$0xff]   ;;  %v6560_v40 = vld [vmem:[%s8386_s3 + $0x140] sm:$0xff]  }
 0x116   :  { %v501_v50 = vpop.f32.mrf.mxu0  ;;  %v576_v51 = vpop.f32.mrf.mxu1 }
 0x117   :  { %v630_v53 = vmax.f32 %v618_v45, 0.0  ;;  %v619_v54 = vadd.f32 %v6494_v42, %v595_v47  ;;  %v522_v11 = vmax.f32 %v419_v44, %v501_v50  ;;  %v596_v16 = vmax.f32 %v521_v46, %v574_v43  ;;  %v6573_v45 = vld [vmem:[%s8386_s3 + $0x138] sm:$0xff]  }
 0x118   :  { %v503_v18 = vpop.f32.mrf.mxu0  ;;  %v578_v19 = vpop.f32.mrf.mxu1  ;;  %v6510_v1 = vpack.c.bf16 %v629_v49, %v627_v15 }
 0x119   :  { %v6505_v55 = vpack.c.bf16 %v630_v53, %v628_v52  ;;  %v631_v56 = vmax.f32 %v619_v54, 0.0  ;;  %v523_v21 = vmax.f32 %v420_v48, %v503_v18  ;;  %v597_v23 = vmax.f32 %v522_v11, %v576_v51  ;;  %v6584_v48 = vld [vmem:[%s8386_s3 + $0x130] sm:$0xff]   ;;  %v6598_v18 = vld [vmem:[%s8386_s3 + $0x120] sm:$0xff]  }
 0x11a   :  { %v620_v24 = vadd.f32 %v6490_v35, %v596_v16  ;;  %v507_v25 = vpop.f32.mrf.mxu0  ;;  %v582_v26 = vpop.f32.mrf.mxu1  ;;  %8471 = vst [vmem:[#allocation4_spill] sm:$0xff] %v6598_v18 }
 0x11b   :  { %v6513_v27 = vpack.c.bf16 %v631_v56, %v629_v49  ;;  %v621_v30 = vadd.f32 %v6494_v42, %v597_v23  ;;  %v524_v31 = vmax.f32 %v421_v4, %v507_v25  ;;  %v598_v33 = vmax.f32 %v523_v21, %v578_v19  ;;  %4747 = vmatprep.mubr.msk.bf16.mxu1 %vm1136_vm2, %v6505_v55 }
 0x11c   :  { %v632_v34 = vmax.f32 %v620_v24, 0.0  ;;  %v509_v36 = vpop.f32.mrf.mxu0  ;;  %1303 = vmatmul.mubr.bf16.vlgmr.msra.gmra.mxu1 %v6510_v1  ;;  %v584_v41 = vpop.f32.mrf.mxu1 }
 0x11d   :  { %v622_v57 = vadd.f32 %v6490_v35, %v598_v33  ;;  %v525_v58 = vmax.f32 %v422_v7, %v509_v36  ;;  %v599_v59 = vmax.f32 %v524_v31, %v582_v26  ;;  %1587 = vmatpush1.bf16.msra.mxu1 %v5444_v0  ;;  %v633_v4 = vmax.f32 %v621_v30, 0.0  ;;  %v6605_v0 = vld [vmem:[%s8386_s3 + $0x178] sm:$0xff]   ;;  %v6620_v31 = vld [vmem:[%s8386_s3 + $0x170] sm:$0xff]  }
 0x11e   :  { %v6529_v3 = vpack.c.bf16 %v632_v34, %v630_v53  ;;  %v511_v60 = vpop.f32.mrf.mxu0  ;;  %v586_v61 = vpop.f32.mrf.mxu1  ;;  %1588 = vmatprep.subr.bf16.mxu1 %v8401_v17  ;;  %v6591_v53 = vld [vmem:[%s8386_s3 + $0x128] sm:$0xff]   ;;  %8472 = vst [vmem:[#allocation5_spill] sm:$0xff] %v6605_v0  ;;  %8473 = vst [vmem:[#allocation6_spill] sm:$0xff] %v6620_v31 }
 0x11f   :  { %v634_v62 = vmax.f32 %v622_v57, 0.0  ;;  %v623_v63 = vadd.f32 %v6494_v42, %v599_v59  ;;  %v526_v5 = vmax.f32 %v423_v10, %v511_v60  ;;  %v600_v6 = vmax.f32 %v525_v58, %v584_v41  ;;  %v6635_v57 = vld [vmem:[%s8386_s3 + $0x168] sm:$0xff]  }
 0x120   :  { %v6543_v37 = vpack.c.bf16 %v633_v4, %v631_v56  ;;  %v6576_v46 = vpop.f32.mrf.mxu0  ;;  %v6578_v47 = vpop.f32.mrf.mxu1  ;;  %8474 = vst [vmem:[#allocation7_spill] sm:$0xff] %v6635_v57 }
 0x121   :  { %v6536_v7 = vpack.c.bf16 %v634_v62, %v632_v34  ;;  %v635_v28 = vmax.f32 %v623_v63, 0.0  ;;  %v601_v29 = vmax.f32 %v526_v5, %v586_v61  ;;  %1589 = vmatpush1.bf16.msra.mxu1 %v5446_v2  ;;  %v6546_v38 = vadd.f32 %v6490_v35, %v600_v6 }
 0x122   :  { %1590 = vmatprep.subr.bf16.mxu1 %v8401_v17 }
 0x123   :  { %v6549_v8 = vpack.c.bf16 %v635_v28, %v633_v4  ;;  %v625_v9 = vadd.f32 %v6494_v42, %v601_v29  ;;  %4748 = vmatprep.mubr.msk.bf16.mxu1 %vm1136_vm2, %v6536_v7  ;;  %v8396_v10 = vmax.f32 %v6546_v38, 0.0  ;;  %v6648_v4 = vld [vmem:[%s8386_s3 + $0x160] sm:$0xff]  }
 0x124   :  { %1311 = vmatmul.mubr.bf16.gmra.mxu1 %v6543_v37  ;;  %8475 = vst [vmem:[#allocation8_spill] sm:$0xff] %v6648_v4 }
 0x125   :  { %v637_v39 = vmax.f32 %v625_v9, 0.0  ;;  %1591 = vmatpush1.bf16.msra.mxu1 %v6541_v32  ;;  %v6564_v43 = vpack.c.bf16 %v8396_v10, %v634_v62 }
 0x126   :  { %1592 = vmatprep.subr.bf16.mxu1 %v8401_v17 }
 0x127   :  { %v6567_v44 = vpack.c.bf16 %v637_v39, %v635_v28 }
 0x129   :  { %1593 = vmatpush1.bf16.msra.mxu1 %v6560_v40 }
 0x12a   :  { %1594 = vmatprep.subr.bf16.mxu1 %v8401_v17 }
 0x12d   :  { %1595 = vmatpush1.bf16.msra.mxu1 %v6573_v45 }
 0x12e   :  { %v701_v49 = vpop.f32.mrf.mxu0  ;;  %v764_v50 = vpop.f32.mrf.mxu1  ;;  %1596 = vmatprep.subr.bf16.mxu1 %v8401_v17 }
 0x12f   :  { %v793_v62 = vmax.f32 %v701_v49, %v764_v50 }
 0x130   :  { %v703_v51 = vpop.f32.mrf.mxu0  ;;  %v766_v52 = vpop.f32.mrf.mxu1 }
 0x131   :  { %1597 = vmatpush1.bf16.msra.mxu1 %v6584_v48  ;;  %v794_v6 = vmax.f32 %v703_v51, %v766_v52 }
 0x132   :  { %v705_v54 = vpop.f32.mrf.mxu0  ;;  %v768_v11 = vpop.f32.mrf.mxu1  ;;  %1598 = vmatprep.subr.bf16.mxu1 %v8401_v17 }
 0x133   :  { %v795_v39 = vmax.f32 %v705_v54, %v768_v11 }
 0x134   :  { %v707_v15 = vpop.f32.mrf.mxu0  ;;  %v770_v16 = vpop.f32.mrf.mxu1 }
 0x135   :  { %1599 = vmatpush1.bf16.msra.mxu1 %v6591_v53  ;;  %v796_v2 = vmax.f32 %v707_v15, %v770_v16 }
 0x136   :  { %v711_v19 = vpop.f32.mrf.mxu0  ;;  %v774_v56 = vpop.f32.mrf.mxu1  ;;  %1600 = vmatprep.subr.bf16.mxu1 %v8401_v17 }
 0x138   :  { %v713_v21 = vpop.f32.mrf.mxu0  ;;  %v776_v23 = vpop.f32.mrf.mxu1 }
 0x139   :  { %1601 = vmatpush1.bf16.msra.mxu1 %v6598_v18  ;;  %v798_v49 = vmax.f32 %v713_v21, %v776_v23 }
 0x13a   :  { %v6607_v24 = vpop.f32.mrf.mxu0  ;;  %v6609_v25 = vpop.f32.mrf.mxu1  ;;  %1610 = vmatprep.subr.bf16.mxu1 %v8401_v17 }
 0x13c   :  { %v6612_v26 = vpop.f32.mrf.mxu0  ;;  %v6614_v30 = vpop.f32.mrf.mxu1 }
 0x13d   :  { %1611 = vmatpush2.bf16.msra.mxu1 %v6605_v0 }
 0x13e   :  { %v6622_v33 = vpop.f32.mrf.mxu0  ;;  %v6624_v34 = vpop.f32.mrf.mxu1  ;;  %1612 = vmatprep.subr.bf16.mxu1 %v8401_v17 }
 0x140   :  { %v6627_v36 = vpop.f32.mrf.mxu0  ;;  %v6629_v41 = vpop.f32.mrf.mxu1 }
 0x141   :  { %1613 = vmatpush2.bf16.msra.mxu1 %v6620_v31 }
 0x142   :  { %v6637_v58 = vpop.f32.mrf.mxu0  ;;  %v6639_v59 = vpop.f32.mrf.mxu1  ;;  %1614 = vmatprep.subr.bf16.mxu1 %v8401_v17 }
 0x144   :  { %v6653_v60 = vpop.f32.mrf.mxu0  ;;  %v6655_v61 = vpop.f32.mrf.mxu1 }
 0x145   :  { %1615 = vmatpush2.bf16.msra.mxu1 %v6635_v57  ;;  %8476 = vst [vmem:[#allocation9_spill] sm:$0xff] %v6653_v60  ;;  %8477 = vst [vmem:[#allocation10_spill] sm:$0xff] %v6655_v61  ;;  %v797_v60 = vmax.f32 %v711_v19, %v774_v56  ;;  %v800_v19 = vmax.f32 %v6612_v26, %v6614_v30  ;;  %v6673_v26 = vld [vmem:[%s8386_s3 + $0xf8] sm:$0xff]   ;;  %v802_v30 = vmax.f32 %v6627_v36, %v6629_v41 }
 0x146   :  { %1616 = vmatprep.subr.bf16.mxu1 %v8401_v17 }
 0x149   :  { %1617 = vmatpush2.bf16.msra.mxu1 %v6648_v4 }
 0x14a   :  { %1916 = vmatprep.subr.bf16.mxu1 %v8401_v17 }
 0x152   :  { %v867_v63 = vpop.f32.mrf.mxu0  ;;  %v942_v5 = vpop.f32.mrf.mxu1 }
 0x153   :  { %v896_v28 = vmax.f32 %v793_v62, %v867_v63 }
 0x154   :  { %v869_v29 = vpop.f32.mrf.mxu0  ;;  %v944_v9 = vpop.f32.mrf.mxu1 }
 0x155   :  { %v897_v20 = vmax.f32 %v794_v6, %v869_v29  ;;  %v971_v57 = vmax.f32 %v896_v28, %v942_v5 }
 0x156   :  { %v871_v22 = vpop.f32.mrf.mxu0  ;;  %v946_v10 = vpop.f32.mrf.mxu1 }
 0x157   :  { %v972_v14 = vmax.f32 %v897_v20, %v944_v9  ;;  %v898_v4 = vmax.f32 %v795_v39, %v871_v22  ;;  %v983_v62 = vadd.f32 %v971_v57, %v6494_v42  ;;  %v799_v22 = vmax.f32 %v6607_v24, %v6609_v25 }
 0x158   :  { %v873_v17 = vpop.f32.mrf.mxu0  ;;  %v948_v31 = vpop.f32.mrf.mxu1  ;;  %v801_v24 = vmax.f32 %v6622_v33, %v6624_v34 }
 0x159   :  { %v973_v0 = vmax.f32 %v898_v4, %v946_v10  ;;  %v899_v61 = vmax.f32 %v796_v2, %v873_v17  ;;  %v984_v51 = vadd.f32 %v972_v14, %v6490_v35  ;;  %v995_v2 = vmax.f32 %v983_v62, 0.0 }
 0x15a   :  { %v877_v50 = vpop.f32.mrf.mxu0  ;;  %v952_v18 = vpop.f32.mrf.mxu1 }
 0x15b   :  { %v985_v52 = vadd.f32 %v973_v0, %v6494_v42  ;;  %v974_v54 = vmax.f32 %v899_v61, %v948_v31  ;;  %v900_v11 = vmax.f32 %v797_v60, %v877_v50  ;;  %v996_v23 = vmax.f32 %v984_v51, 0.0 }
 0x15c   :  { %v879_v15 = vpop.f32.mrf.mxu0  ;;  %v954_v20 = vpop.f32.mrf.mxu1 }
 0x15d   :  { %v986_v16 = vadd.f32 %v974_v54, %v6490_v35  ;;  %v901_v10 = vmax.f32 %v798_v49, %v879_v15  ;;  %v975_v17 = vmax.f32 %v900_v11, %v952_v18  ;;  %v997_v56 = vmax.f32 %v985_v52, 0.0  ;;  %v6689_v54 = vld [vmem:[%s8386_s3 + $0xf0] sm:$0xff]  }
 0x15e   :  { %v881_v14 = vpop.f32.mrf.mxu0  ;;  %v956_v21 = vpop.f32.mrf.mxu1 }
 0x15f   :  { %v998_v0 = vmax.f32 %v986_v16, 0.0  ;;  %v987_v31 = vadd.f32 %v975_v17, %v6494_v42  ;;  %v902_v57 = vmax.f32 %v799_v22, %v881_v14  ;;  %v976_v4 = vmax.f32 %v901_v10, %v954_v20  ;;  %v6697_v16 = vld [vmem:[%s8386_s3 + $0x278] sm:$0xff]  }
 0x160   :  { %v883_v60 = vpop.f32.mrf.mxu0  ;;  %v958_v61 = vpop.f32.mrf.mxu1  ;;  %v6677_v5 = vpack.c.bf16 %v997_v56, %v995_v2  ;;  %v8480_v20 = vmov 0   ;;  %v8481_v14 = vmax.f32 %v6637_v58, %v6639_v59  ;;  %v6726_v59 = vld [vmem:[%s8386_s3 + $0x270] sm:$0xff]  }
 0x161   :  { %v6668_v25 = vpack.c.bf16 %v998_v0, %v996_v23  ;;  %v903_v18 = vmax.f32 %v800_v19, %v883_v60  ;;  %v977_v63 = vmax.f32 %v902_v57, %v956_v21  ;;  %v988_v6 = vadd.f32 %v976_v4, %v6490_v35 }
 0x162   :  { %8479 = vst [vmem:[#allocation12_spill] sm:$0xff] %v6677_v5  ;;  %v887_v28 = vpop.f32.mrf.mxu0  ;;  %v962_v29 = vpop.f32.mrf.mxu1  ;;  %v999_v9 = vmax.f32 %v987_v31, 0.0 }
 0x163   :  { %8478 = vst [vmem:[#allocation11_spill] sm:$0xff] %v6668_v25  ;;  %v989_v33 = vadd.f32 %v977_v63, %v6494_v42  ;;  %v904_v34 = vmax.f32 %v801_v24, %v887_v28  ;;  %v978_v39 = vmax.f32 %v903_v18, %v958_v61  ;;  %4733 = vmatprep.mubr.msk.bf16.mxu0 %vm1136_vm2, %v6668_v25  ;;  %v1000_v49 = vmax.f32 %v988_v6, 0.0  ;;  %v6740_v24 = vld [vmem:[%s8386_s3 + $0xe0] sm:$0xff]   ;;  %v6751_v18 = vld [vmem:[%s8386_s3 + $0x268] sm:$0xff]   ;;  %v6765_v6 = vld [vmem:[%s8386_s3 + $0xd8] sm:$0xff]  }
 0x164   :  { %v889_v50 = vpop.f32.mrf.mxu0  ;;  %1176 = vmatmul.mubr.bf16.vlgmr.msra.gmra.mxu0 %v6677_v5  ;;  %v964_v51 = vpop.f32.mrf.mxu1  ;;  %v6699_v10 = vpack.c.bf16 %v999_v9, %v997_v56  ;;  %v6714_v56 = vld [vmem:[%s8386_s3 + $0xe8] sm:$0xff]   ;;  %v6773_v28 = vld [vmem:[%s8386_s3 + $0x260] sm:$0xff]  }
 0x165   :  { %v990_v36 = vadd.f32 %v978_v39, %v6490_v35  ;;  %v905_v41 = vmax.f32 %v802_v30, %v889_v50  ;;  %v979_v52 = vmax.f32 %v904_v34, %v962_v29  ;;  %1427 = vmatpush1.bf16.msra.mxu0 %v6673_v26  ;;  %v6691_v11 = vpack.c.bf16 %v1000_v49, %v998_v0  ;;  %v6781_v29 = vld [vmem:[%s8386_s3 + $0xd0] sm:$0xff]   ;;  %v6809_v39 = vld [vmem:[%s8386_s3 + $0xc0] sm:$0xff]   ;;  %v6823_v50 = vld [vmem:[%s8386_s3 + $0x118] sm:$0xff]  }
 0x166   :  { %v1001_v62 = vmax.f32 %v989_v33, 0.0  ;;  %v891_v15 = vpop.f32.mrf.mxu0  ;;  %1428 = vmatprep.subr.bf16.mxu0 %v8480_v20  ;;  %v966_v22 = vpop.f32.mrf.mxu1  ;;  %v6795_v33 = vld [vmem:[%s8386_s3 + $0xc8] sm:$0xff]   ;;  %v6802_v34 = vld [vmem:[%s8386_s3 + $0x250] sm:$0xff]  }
 0x167   :  { %v1002_v17 = vmax.f32 %v990_v36, 0.0  ;;  %v991_v19 = vadd.f32 %v979_v52, %v6494_v42  ;;  %v906_v21 = vmax.f32 %v8481_v14, %v891_v15  ;;  %v980_v23 = vmax.f32 %v905_v41, %v964_v51  ;;  %4823 = vmatprep.mubr.msk.bf16.mxu1 %vm1136_vm2, %v6691_v11  ;;  %v6830_v51 = vld [vmem:[%s8386_s3 + $0x240] sm:$0xff]   ;;  %v6837_v36 = vld [vmem:[%s8386_s3 + $0x110] sm:$0xff]   ;;  %v6844_v41 = vld [vmem:[%s8386_s3 + $0x298] sm:$0xff]  }
 0x168   :  { %1619 = vmatmul.mubr.bf16.vlgmr.msra.gmra.mxu1 %v6699_v10  ;;  %v6716_v57 = vpack.c.bf16 %v1001_v62, %v999_v9  ;;  %v6788_v9 = vld [vmem:[%s8386_s3 + $0x258] sm:$0xff]   ;;  %v6851_v52 = vld [vmem:[%s8386_s3 + $0x108] sm:$0xff]   ;;  %v6865_v15 = vld [vmem:[%s8386_s3 + $0x100] sm:$0xff]  }
 0x169   :  { %v6707_v0 = vpack.c.bf16 %v1002_v17, %v1000_v49  ;;  %v981_v31 = vmax.f32 %v906_v21, %v966_v22  ;;  %1429 = vmatpush1.bf16.msra.mxu0 %v6689_v54  ;;  %v6719_v58 = vadd.f32 %v980_v23, %v6490_v35  ;;  %1917 = vmatpush1.bf16.msra.mxu1 %v6697_v16  ;;  %v1003_v2 = vmax.f32 %v991_v19, 0.0  ;;  %v6816_v49 = vld [vmem:[%s8386_s3 + $0x248] sm:$0xff]   ;;  %v6886_v19 = vld [vmem:[%s8386_s3 + $0x280] sm:$0xff]   ;;  %v6896_v14 = vld [vmem:[%s8386_s3 + $0x1b0] sm:$0xff]  }
 0x16a   :  { %8482 = vst [vmem:[#allocation13_spill] sm:$0xff] %v6716_v57  ;;  %1430 = vmatprep.subr.bf16.mxu0 %v8480_v20  ;;  %1918 = vmatprep.subr.bf16.mxu1 %v8480_v20  ;;  %v6872_v22 = vld [vmem:[%s8386_s3 + $0x288] sm:$0xff]   ;;  %v6903_v21 = vld [vmem:[%s8386_s3 + $0x2d8] sm:$0xff]  }
 0x16b   :  { %8483 = vst [vmem:[#allocation14_spill] sm:$0xff] %v6719_v58  ;;  %v993_v4 = vadd.f32 %v981_v31, %v6494_v42  ;;  %4734 = vmatprep.mubr.msk.bf16.mxu0 %vm1136_vm2, %v6707_v0  ;;  %v8406_v60 = vmax.f32 %v6719_v58, 0.0  ;;  %v6753_v63 = vpack.c.bf16 %v1003_v2, %v1001_v62  ;;  %v6858_v62 = vld [vmem:[%s8386_s3 + $0x290] sm:$0xff]   ;;  %v6911_v23 = vld [vmem:[%s8386_s3 + $0x1a8] sm:$0xff]   ;;  %v6968_v58 = vld [vmem:[%s8386_s3 + $0x2b8] sm:$0xff]  }
 0x16c   :  { %1184 = vmatmul.mubr.bf16.gmra.mxu0 %v6716_v57  ;;  %v6919_v31 = vld [vmem:[%s8386_s3 + $0x2d0] sm:$0xff]   ;;  %8490 = vst [vmem:[#allocation21_spill] sm:$0xff] %v6968_v58 }
 0x16d   :  { %v1005_v61 = vmax.f32 %v993_v4, 0.0  ;;  %1431 = vmatpush1.bf16.msra.mxu0 %v6714_v56  ;;  %4785 = vmatprep.mubr.msk.bf16.mxu0 %vm1136_vm2, %v6529_v3  ;;  %v6744_v42 = vpack.c.bf16 %v8406_v60, %v1002_v17  ;;  %v6879_v17 = vld [vmem:[%s8386_s3 + $0x1b8] sm:$0xff]   ;;  %v6937_v4 = vld [vmem:[%s8386_s3 + $0x2c8] sm:$0xff]   ;;  %v6953_v60 = vld [vmem:[%s8386_s3 + $0x2c0] sm:$0xff]  }
 0x16e   :  { %1919 = vmatpush1.bf16.msra.mxu1 %v6726_v59  ;;  %1432 = vmatprep.subr.bf16.mxu0 %v8480_v20  ;;  %8486 = vst [vmem:[#allocation17_spill] sm:$0xff] %v6937_v4  ;;  %8488 = vst [vmem:[#allocation19_spill] sm:$0xff] %v6953_v60 }
 0x16f   :  { %1920 = vmatprep.subr.bf16.mxu1 %v8480_v20  ;;  %v6756_v30 = vpack.c.bf16 %v1005_v61, %v1003_v2  ;;  %4824 = vmatprep.mubr.msk.bf16.mxu1 %vm1136_vm2, %v6744_v42  ;;  %v6930_v2 = vld [vmem:[%s8386_s3 + $0x1a0] sm:$0xff]   ;;  %v6945_v61 = vld [vmem:[%s8386_s3 + $0x198] sm:$0xff]  }
 0x170   :  { %1627 = vmatmul.mubr.bf16.gmra.mxu1 %v6753_v63  ;;  %8485 = vst [vmem:[#allocation16_spill] sm:$0xff] %v6930_v2  ;;  %8487 = vst [vmem:[#allocation18_spill] sm:$0xff] %v6945_v61 }
 0x171   :  { %8484 = vst [vmem:[#allocation15_spill] sm:$0xff] %v6756_v30  ;;  %1433 = vmatpush1.bf16.msra.mxu0 %v6740_v24  ;;  %4923 = vmatprep.mubr.msk.bf16.mxu1 %vm1136_vm2, %v6668_v25  ;;  %v6961_v30 = vld [vmem:[%s8386_s3 + $0x190] sm:$0xff]  }
 0x172   :  { %1921 = vmatpush1.bf16.msra.mxu1 %v6751_v18  ;;  %1434 = vmatprep.subr.bf16.mxu0 %v8480_v20  ;;  %8489 = vst [vmem:[#allocation20_spill] sm:$0xff] %v6961_v30 }
 0x173   :  { %1922 = vmatprep.subr.bf16.mxu1 %v8480_v20 }
 0x175   :  { %1435 = vmatpush1.bf16.msra.mxu0 %v6765_v6 }
 0x176   :  { %1923 = vmatpush1.bf16.msra.mxu1 %v6773_v28  ;;  %1436 = vmatprep.subr.bf16.mxu0 %v8480_v20 }
 0x177   :  { %1924 = vmatprep.subr.bf16.mxu1 %v8480_v20 }
 0x179   :  { %1437 = vmatpush1.bf16.msra.mxu0 %v6781_v29 }
 0x17a   :  { %1925 = vmatpush1.bf16.msra.mxu1 %v6788_v9  ;;  %1438 = vmatprep.subr.bf16.mxu0 %v8480_v20 }
 0x17b   :  { %1926 = vmatprep.subr.bf16.mxu1 %v8480_v20 }
 0x17d   :  { %1439 = vmatpush1.bf16.msra.mxu0 %v6795_v33 }
 0x17e   :  { %1927 = vmatpush1.bf16.msra.mxu1 %v6802_v34  ;;  %1440 = vmatprep.subr.bf16.mxu0 %v8480_v20 }
 0x17f   :  { %1928 = vmatprep.subr.bf16.mxu1 %v8480_v20 }
 0x181   :  { %1441 = vmatpush1.bf16.msra.mxu0 %v6809_v39 }
 0x182   :  { %1929 = vmatpush1.bf16.msra.mxu1 %v6816_v49  ;;  %1450 = vmatprep.subr.bf16.mxu0 %v8480_v20 }
 0x183   :  { %1930 = vmatprep.subr.bf16.mxu1 %v8480_v20 }
 0x185   :  { %1451 = vmatpush2.bf16.msra.mxu0 %v6823_v50 }
 0x186   :  { %1931 = vmatpush1.bf16.msra.mxu1 %v6830_v51  ;;  %1452 = vmatprep.subr.bf16.mxu0 %v8480_v20 }
 0x187   :  { %1940 = vmatprep.subr.bf16.mxu1 %v8480_v20 }
 0x189   :  { %1453 = vmatpush2.bf16.msra.mxu0 %v6837_v36 }
 0x18a   :  { %1941 = vmatpush2.bf16.msra.mxu1 %v6844_v41  ;;  %1454 = vmatprep.subr.bf16.mxu0 %v8480_v20 }
 0x18b   :  { %1942 = vmatprep.subr.bf16.mxu1 %v8480_v20 }
 0x18d   :  { %1455 = vmatpush2.bf16.msra.mxu0 %v6851_v52 }
 0x18e   :  { %1943 = vmatpush2.bf16.msra.mxu1 %v6858_v62  ;;  %1456 = vmatprep.subr.bf16.mxu0 %v8480_v20 }
 0x18f   :  { %1944 = vmatprep.subr.bf16.mxu1 %v8480_v20 }
 0x191   :  { %1457 = vmatpush2.bf16.msra.mxu0 %v6865_v15 }
 0x192   :  { %1945 = vmatpush2.bf16.msra.mxu1 %v6872_v22  ;;  %1741 = vmatprep.subr.bf16.mxu0 %v8480_v20 }
 0x193   :  { %1946 = vmatprep.subr.bf16.mxu1 %v8480_v20 }
 0x194   :  { %1459 = vmatmul.mubr.bf16.vlgmr.msra.gmra.mxu0 %v6513_v27 }
 0x195   :  { %4786 = vmatprep.mubr.msk.bf16.mxu0 %vm1136_vm2, %v6564_v43  ;;  %1742 = vmatpush1.bf16.msra.mxu0 %v6879_v17 }
 0x196   :  { %1947 = vmatpush2.bf16.msra.mxu1 %v6886_v19  ;;  %1743 = vmatprep.subr.bf16.mxu0 %v8480_v20 }
 0x197   :  { %2183 = vmatprep.subr.bf16.mxu1 %v8480_v20 }
 0x199   :  { %1949 = vmatmul.mubr.bf16.vlgmr.msra.gmra.mxu1 %v6677_v5  ;;  %1744 = vmatpush1.bf16.msra.mxu0 %v6896_v14 }
 0x19a   :  { %4924 = vmatprep.mubr.msk.bf16.mxu1 %vm1136_vm2, %v6707_v0  ;;  %2184 = vmatpush1.bf16.msra.mxu1 %v6903_v21 }
 0x19b   :  { %1745 = vmatprep.subr.bf16.mxu0 %v8480_v20  ;;  %2185 = vmatprep.subr.bf16.mxu1 %v8480_v20 }
 0x19c   :  { %1467 = vmatmul.mubr.bf16.gmra.mxu0 %v6549_v8 }
 0x19d   :  { %1746 = vmatpush1.bf16.msra.mxu0 %v6911_v23  ;;  %4861 = vmatprep.mubr.msk.bf16.mxu0 %vm1136_vm2, %v6536_v7 }
 0x19e   :  { %2186 = vmatpush1.bf16.msra.mxu1 %v6919_v31  ;;  %1747 = vmatprep.subr.bf16.mxu0 %v8480_v20 }
 0x19f   :  { %2187 = vmatprep.subr.bf16.mxu1 %v8480_v20 }
 0x1a1   :  { %1957 = vmatmul.mubr.bf16.gmra.mxu1 %v6716_v57  ;;  %1748 = vmatpush1.bf16.msra.mxu0 %v6930_v2 }
 0x1a2   :  { %2188 = vmatpush1.bf16.msra.mxu1 %v6937_v4  ;;  %4975 = vmatprep.mubr.msk.bf16.mxu1 %vm1136_vm2, %v6529_v3  ;;  %v424_v4 = vmax.f32 %v6477_v12, %v6479_v13  ;;  %v7020_v12 = vld [vmem:[%s8386_s3 + $0x1d0] sm:$0xff]   ;;  %v7027_v13 = vld [vmem:[%s8386_s3 + $0x2f8] sm:$0xff]  }
 0x1a3   :  { %1749 = vmatprep.subr.bf16.mxu0 %v8480_v20  ;;  %2189 = vmatprep.subr.bf16.mxu1 %v8480_v20  ;;  %8497 = vst [vmem:[#allocation28_spill] sm:$0xff] %v7020_v12  ;;  %8498 = vst [vmem:[#allocation29_spill] sm:$0xff] %v7027_v13 }
 0x1a4   :  { %v527_v2 = vmax.f32 %v424_v4, %v6576_v46  ;;  %v7035_v4 = vld [vmem:[%s8386_s3 + $0x1c8] sm:$0xff]  }
 0x1a5   :  { %1750 = vmatpush1.bf16.msra.mxu0 %v6945_v61  ;;  %v6975_v61 = vld [vmem:[%s8386_s3 + $0x188] sm:$0xff]   ;;  %8499 = vst [vmem:[#allocation30_spill] sm:$0xff] %v7035_v4 }
 0x1a6   :  { %2190 = vmatpush1.bf16.msra.mxu1 %v6953_v60  ;;  %1751 = vmatprep.subr.bf16.mxu0 %v8480_v20  ;;  %8491 = vst [vmem:[#allocation22_spill] sm:$0xff] %v6975_v61  ;;  %v6982_v60 = vld [vmem:[%s8386_s3 + $0x2b0] sm:$0xff]   ;;  %v602_v46 = vmax.f32 %v527_v2, %v6578_v47  ;;  %v7050_v2 = vld [vmem:[%s8386_s3 + $0x1c0] sm:$0xff]  }
 0x1a7   :  { %2191 = vmatprep.subr.bf16.mxu1 %v8480_v20  ;;  %8492 = vst [vmem:[#allocation23_spill] sm:$0xff] %v6982_v60  ;;  %8501 = vst [vmem:[#allocation32_spill] sm:$0xff] %v7050_v2 }
 0x1a8   :  { %v626_v47 = vadd.f32 %v6490_v35, %v602_v46  ;;  %v7064_v46 = vld [vmem:[%s8386_s3 + $0x218] sm:$0xff]  }
 0x1a9   :  { %1752 = vmatpush1.bf16.msra.mxu0 %v6961_v30  ;;  %v6989_v30 = vld [vmem:[%s8386_s3 + $0x180] sm:$0xff]   ;;  %8503 = vst [vmem:[#allocation34_spill] sm:$0xff] %v7064_v46 }
 0x1aa   :  { %2192 = vmatpush1.bf16.msra.mxu1 %v6968_v58  ;;  %1753 = vmatprep.subr.bf16.mxu0 %v8480_v20  ;;  %8493 = vst [vmem:[#allocation24_spill] sm:$0xff] %v6989_v30  ;;  %v6996_v58 = vld [vmem:[%s8386_s3 + $0x2a8] sm:$0xff]  }
 0x1ab   :  { %2193 = vmatprep.subr.bf16.mxu1 %v8480_v20  ;;  %8494 = vst [vmem:[#allocation25_spill] sm:$0xff] %v6996_v58 }
 0x1ad   :  { %1754 = vmatpush1.bf16.msra.mxu0 %v6975_v61  ;;  %v7005_v61 = vld [vmem:[%s8386_s3 + $0x1d8] sm:$0xff]  }
 0x1ae   :  { %2194 = vmatpush1.bf16.msra.mxu1 %v6982_v60  ;;  %1755 = vmatprep.subr.bf16.mxu0 %v8480_v20  ;;  %8495 = vst [vmem:[#allocation26_spill] sm:$0xff] %v7005_v61  ;;  %v7012_v60 = vld [vmem:[%s8386_s3 + $0x2a0] sm:$0xff]  }
 0x1af   :  { %2195 = vmatprep.subr.bf16.mxu1 %v8480_v20  ;;  %8496 = vst [vmem:[#allocation27_spill] sm:$0xff] %v7012_v60 }
 0x1b1   :  { %1756 = vmatpush1.bf16.msra.mxu0 %v6989_v30 }
 0x1b2   :  { %2196 = vmatpush1.bf16.msra.mxu1 %v6996_v58  ;;  %1765 = vmatprep.subr.bf16.mxu0 %v8480_v20 }
 0x1b3   :  { %2197 = vmatprep.subr.bf16.mxu1 %v8480_v20 }
 0x1b5   :  { %1766 = vmatpush2.bf16.msra.mxu0 %v7005_v61 }
 0x1b6   :  { %2198 = vmatpush1.bf16.msra.mxu1 %v7012_v60  ;;  %1767 = vmatprep.subr.bf16.mxu0 %v8480_v20  ;;  %v7042_v60 = vld [vmem:[%s8386_s3 + $0x2f0] sm:$0xff]  }
 0x1b7   :  { %2207 = vmatprep.subr.bf16.mxu1 %v8480_v20  ;;  %8500 = vst [vmem:[#allocation31_spill] sm:$0xff] %v7042_v60 }
 0x1b9   :  { %1768 = vmatpush2.bf16.msra.mxu0 %v7020_v12  ;;  %v638_v12 = vmax.f32 %v626_v47, 0.0  ;;  %v8505_v47 = vmax.f32 %v6546_v38, 0.0  ;;  %v7092_v38 = vld [vmem:[%s8386_s3 + $0x398] sm:$0xff]  }
 0x1ba   :  { %2208 = vmatpush2.bf16.msra.mxu1 %v7027_v13  ;;  %1769 = vmatprep.subr.bf16.mxu0 %v8480_v20  ;;  %v7057_v13 = vld [vmem:[%s8386_s3 + $0x2e8] sm:$0xff]   ;;  %8507 = vst [vmem:[#allocation37_spill] sm:$0xff] %v7092_v38 }
 0x1bb   :  { %2209 = vmatprep.subr.bf16.mxu1 %v8480_v20  ;;  %8502 = vst [vmem:[#allocation33_spill] sm:$0xff] %v7057_v13 }
 0x1bd   :  { %1770 = vmatpush2.bf16.msra.mxu0 %v7035_v4  ;;  %v7075_v4 = vpack.c.bf16 %v638_v12, %v8505_v47  ;;  %v7100_v12 = vld [vmem:[%s8386_s3 + $0x208] sm:$0xff]   ;;  %v7108_v47 = vld [vmem:[%s8386_s3 + $0x390] sm:$0xff]  }
 0x1be   :  { %2210 = vmatpush2.bf16.msra.mxu1 %v7042_v60  ;;  %1771 = vmatprep.subr.bf16.mxu0 %v8480_v20  ;;  %v7071_v60 = vld [vmem:[%s8386_s3 + $0x2e0] sm:$0xff]   ;;  %8508 = vst [vmem:[#allocation38_spill] sm:$0xff] %v7100_v12  ;;  %8509 = vst [vmem:[#allocation39_spill] sm:$0xff] %v7108_v47 }
 0x1bf   :  { %2211 = vmatprep.subr.bf16.mxu1 %v8480_v20  ;;  %8504 = vst [vmem:[#allocation35_spill] sm:$0xff] %v7071_v60 }
 0x1c1   :  { %1772 = vmatpush2.bf16.msra.mxu0 %v7050_v2 }
 0x1c2   :  { %2212 = vmatpush2.bf16.msra.mxu1 %v7057_v13  ;;  %2037 = vmatprep.subr.bf16.mxu0 %v8480_v20  ;;  %v7085_v13 = vld [vmem:[%s8386_s3 + $0x210] sm:$0xff]  }
 0x1c3   :  { %2213 = vmatprep.subr.bf16.mxu1 %v8480_v20  ;;  %8506 = vst [vmem:[#allocation36_spill] sm:$0xff] %v7085_v13 }
 0x1c4   :  { %1774 = vmatmul.mubr.bf16.vlgmr.msra.gmra.mxu0 %v6543_v37 }
 0x1c5   :  { %4862 = vmatprep.mubr.msk.bf16.mxu0 %vm1136_vm2, %v7075_v4  ;;  %2038 = vmatpush1.bf16.msra.mxu0 %v7064_v46  ;;  %v7189_v46 = vld [vmem:[%s8386_s3 + $0x368] sm:$0xff]  }
 0x1c6   :  { %2214 = vmatpush2.bf16.msra.mxu1 %v7071_v60  ;;  %2039 = vmatprep.subr.bf16.mxu0 %v8480_v20  ;;  %8520 = vst [vmem:[#allocation50_spill] sm:$0xff] %v7189_v46 }
 0x1c7   :  { %2483 = vmatprep.subr.bf16.mxu1 %v8480_v20 }
 0x1c9   :  { %2216 = vmatmul.mubr.bf16.vlgmr.msra.gmra.mxu1 %v6513_v27  ;;  %2040 = vmatpush1.bf16.msra.mxu0 %v7085_v13  ;;  %v7126_v13 = vld [vmem:[%s8386_s3 + $0x388] sm:$0xff]  }
 0x1ca   :  { %4976 = vmatprep.mubr.msk.bf16.mxu1 %vm1136_vm2, %v6564_v43  ;;  %2484 = vmatpush1.bf16.msra.mxu1 %v7092_v38  ;;  %v7119_v38 = vld [vmem:[%s8386_s3 + $0x200] sm:$0xff]   ;;  %8511 = vst [vmem:[#allocation41_spill] sm:$0xff] %v7126_v13 }
 0x1cb   :  { %2041 = vmatprep.subr.bf16.mxu0 %v8480_v20  ;;  %2485 = vmatprep.subr.bf16.mxu1 %v8480_v20  ;;  %8510 = vst [vmem:[#allocation40_spill] sm:$0xff] %v7119_v38 }
 0x1cc   :  { %1782 = vmatmul.mubr.bf16.gmra.mxu0 %v6567_v44 }
 0x1cd   :  { %2042 = vmatpush1.bf16.msra.mxu0 %v7100_v12  ;;  %4937 = vmatprep.mubr.msk.bf16.mxu0 %vm1136_vm2, %v6505_v55  ;;  %v7134_v55 = vld [vmem:[%s8386_s3 + $0x1f8] sm:$0xff]   ;;  %v7166_v12 = vpop.f32.mrf.mxu1 }
 0x1ce   :  { %2486 = vmatpush1.bf16.msra.mxu1 %v7108_v47  ;;  %2043 = vmatprep.subr.bf16.mxu0 %v8480_v20  ;;  %8512 = vst [vmem:[#allocation42_spill] sm:$0xff] %v7134_v55  ;;  %v7142_v47 = vld [vmem:[%s8386_s3 + $0x380] sm:$0xff]   ;;  %8517 = vst [vmem:[#allocation47_spill] sm:$0xff] %v7166_v12 }
 0x1cf   :  { %2487 = vmatprep.subr.bf16.mxu1 %v8480_v20  ;;  %8513 = vst [vmem:[#allocation43_spill] sm:$0xff] %v7142_v47 }
 0x1d1   :  { %2224 = vmatmul.mubr.bf16.gmra.mxu1 %v6549_v8  ;;  %2044 = vmatpush1.bf16.msra.mxu0 %v7119_v38  ;;  %v7150_v38 = vld [vmem:[%s8386_s3 + $0x1f0] sm:$0xff]  }
 0x1d2   :  { %2488 = vmatpush1.bf16.msra.mxu1 %v7126_v13  ;;  %5051 = vmatprep.mubr.msk.bf16.mxu1 %vm1136_vm2, %v6536_v7  ;;  %8514 = vst [vmem:[#allocation44_spill] sm:$0xff] %v7150_v38  ;;  %v7157_v13 = vld [vmem:[%s8386_s3 + $0x378] sm:$0xff]  }
 0x1d3   :  { %2045 = vmatprep.subr.bf16.mxu0 %v8480_v20  ;;  %2489 = vmatprep.subr.bf16.mxu1 %v8480_v20  ;;  %8515 = vst [vmem:[#allocation45_spill] sm:$0xff] %v7157_v13 }
 0x1d5   :  { %2046 = vmatpush1.bf16.msra.mxu0 %v7134_v55  ;;  %v7164_v55 = vld [vmem:[%s8386_s3 + $0x1e8] sm:$0xff]  }
 0x1d6   :  { %2490 = vmatpush1.bf16.msra.mxu1 %v7142_v47  ;;  %2047 = vmatprep.subr.bf16.mxu0 %v8480_v20  ;;  %8516 = vst [vmem:[#allocation46_spill] sm:$0xff] %v7164_v55  ;;  %v7173_v47 = vld [vmem:[%s8386_s3 + $0x370] sm:$0xff]  }
 0x1d7   :  { %2491 = vmatprep.subr.bf16.mxu1 %v8480_v20  ;;  %8518 = vst [vmem:[#allocation48_spill] sm:$0xff] %v7173_v47 }
 0x1d9   :  { %2048 = vmatpush1.bf16.msra.mxu0 %v7150_v38  ;;  %v7182_v38 = vld [vmem:[%s8386_s3 + $0x1e0] sm:$0xff]  }
 0x1da   :  { %2492 = vmatpush1.bf16.msra.mxu1 %v7157_v13  ;;  %2049 = vmatprep.subr.bf16.mxu0 %v8480_v20  ;;  %8519 = vst [vmem:[#allocation49_spill] sm:$0xff] %v7182_v38 }
 0x1db   :  { %2493 = vmatprep.subr.bf16.mxu1 %v8480_v20 }
 0x1dc   :  { %v7176_v60 = vpop.f32.mrf.mxu1 }
 0x1dd   :  { %2050 = vmatpush1.bf16.msra.mxu0 %v7164_v55  ;;  %v7198_v55 = vld [vmem:[%s8386_s3 + $0x238] sm:$0xff]  }
 0x1de   :  { %2494 = vmatpush1.bf16.msra.mxu1 %v7173_v47  ;;  %v1306_v13 = vpop.f32.mrf.mxu1  ;;  %2051 = vmatprep.subr.bf16.mxu0 %v8480_v20  ;;  %8521 = vst [vmem:[#allocation51_spill] sm:$0xff] %v7198_v55  ;;  %v7205_v47 = vld [vmem:[%s8386_s3 + $0x360] sm:$0xff]  }
 0x1df   :  { %2495 = vmatprep.subr.bf16.mxu1 %v8480_v20  ;;  %8522 = vst [vmem:[#allocation52_spill] sm:$0xff] %v7205_v47 }
 0x1e0   :  { %v7192_v2 = vpop.f32.mrf.mxu1 }
 0x1e1   :  { %2052 = vmatpush1.bf16.msra.mxu0 %v7182_v38  ;;  %v7214_v38 = vld [vmem:[%s8386_s3 + $0x230] sm:$0xff]  }
 0x1e2   :  { %2496 = vmatpush1.bf16.msra.mxu1 %v7189_v46  ;;  %v1309_v13 = vpop.f32.mrf.mxu1  ;;  %2061 = vmatprep.subr.bf16.mxu0 %v8480_v20  ;;  %8523 = vst [vmem:[#allocation53_spill] sm:$0xff] %v7214_v38  ;;  %v7221_v46 = vld [vmem:[%s8386_s3 + $0x3b8] sm:$0xff]  }
 0x1e3   :  { %2497 = vmatprep.subr.bf16.mxu1 %v8480_v20  ;;  %8524 = vst [vmem:[#allocation54_spill] sm:$0xff] %v7221_v46 }
 0x1e4   :  { %v7208_v35 = vpop.f32.mrf.mxu1 }
 0x1e5   :  { %2062 = vmatpush2.bf16.msra.mxu0 %v7198_v55  ;;  %v7230_v55 = vld [vmem:[%s8386_s3 + $0x228] sm:$0xff]  }
 0x1e6   :  { %2498 = vmatpush1.bf16.msra.mxu1 %v7205_v47  ;;  %v1314_v13 = vpop.f32.mrf.mxu1  ;;  %2063 = vmatprep.subr.bf16.mxu0 %v8480_v20  ;;  %8525 = vst [vmem:[#allocation55_spill] sm:$0xff] %v7230_v55  ;;  %v7237_v47 = vld [vmem:[%s8386_s3 + $0x3b0] sm:$0xff]  }
 0x1e7   :  { %2507 = vmatprep.subr.bf16.mxu1 %v8480_v20  ;;  %8526 = vst [vmem:[#allocation56_spill] sm:$0xff] %v7237_v47 }
 0x1e8   :  { %v7224_v12 = vpop.f32.mrf.mxu1 }
 0x1e9   :  { %2064 = vmatpush2.bf16.msra.mxu0 %v7214_v38  ;;  %v7244_v38 = vld [vmem:[%s8386_s3 + $0x220] sm:$0xff]  }
 0x1ea   :  { %2508 = vmatpush2.bf16.msra.mxu1 %v7221_v46  ;;  %v1317_v13 = vpop.f32.mrf.mxu1  ;;  %2065 = vmatprep.subr.bf16.mxu0 %v8480_v20  ;;  %8527 = vst [vmem:[#allocation57_spill] sm:$0xff] %v7244_v38 }
 0x1eb   :  { %2509 = vmatprep.subr.bf16.mxu1 %v8480_v20  ;;  %v7251_v13 = vld [vmem:[%s8386_s3 + $0x3a8] sm:$0xff]  }
 0x1ec   :  { %8528 = vst [vmem:[#allocation58_spill] sm:$0xff] %v7251_v13 }
 0x1ed   :  { %2066 = vmatpush2.bf16.msra.mxu0 %v7230_v55  ;;  %v7258_v55 = vld [vmem:[%s8386_s3 + $0x338] sm:$0xff]  }
 0x1ee   :  { %2510 = vmatpush2.bf16.msra.mxu1 %v7237_v47  ;;  %2067 = vmatprep.subr.bf16.mxu0 %v8480_v20  ;;  %8529 = vst [vmem:[#allocation59_spill] sm:$0xff] %v7258_v55  ;;  %v7265_v47 = vld [vmem:[%s8386_s3 + $0x3a0] sm:$0xff]  }
 0x1ef   :  { %2511 = vmatprep.subr.bf16.mxu1 %v8480_v20  ;;  %8530 = vst [vmem:[#allocation60_spill] sm:$0xff] %v7265_v47 }
 0x1f1   :  { %2068 = vmatpush2.bf16.msra.mxu0 %v7244_v38 }
 0x1f2   :  { %2512 = vmatpush2.bf16.msra.mxu1 %v7251_v13  ;;  %2333 = vmatprep.subr.bf16.mxu0 %v8480_v20  ;;  %v7275_v13 = vld [vmem:[%s8386_s3 + $0x330] sm:$0xff]  }
 0x1f3   :  { %2513 = vmatprep.subr.bf16.mxu1 %v8480_v20  ;;  %8531 = vst [vmem:[#allocation61_spill] sm:$0xff] %v7275_v13 }
 0x1f4   :  { %2070 = vmatmul.mubr.bf16.vlgmr.msra.gmra.mxu0 %v6510_v1  ;;  %v7285_v1 = vld [vmem:[%s8386_s3 + $0x328] sm:$0xff]  }
 0x1f5   :  { %4938 = vmatprep.mubr.msk.bf16.mxu0 %vm1136_vm2, %v6536_v7  ;;  %2334 = vmatpush1.bf16.msra.mxu0 %v7258_v55  ;;  %8532 = vst [vmem:[#allocation62_spill] sm:$0xff] %v7285_v1  ;;  %v5776_v55 = vld [vmem:[%s8386_s3 + $0x28] sm:$0xff]  }
 0x1f6   :  { %2514 = vmatpush2.bf16.msra.mxu1 %v7265_v47  ;;  %2335 = vmatprep.subr.bf16.mxu0 %v8480_v20  ;;  %v5774_v47 = vld [vmem:[%s8386_s3 + $0x38] sm:$0xff]  }
 0x1f7   :  { %2589 = vmatprep.subr.bf16.mxu1 %v8480_v20 }
 0x1f9   :  { %2516 = vmatmul.mubr.bf16.vlgmr.msra.gmra.mxu1 %v6543_v37  ;;  %2336 = vmatpush1.bf16.msra.mxu0 %v7275_v13  ;;  %v7301_v13 = vld [vmem:[%s8386_s3 + $0x320] sm:$0xff]  }
 0x1fa   :  { %5052 = vmatprep.mubr.msk.bf16.mxu1 %vm1136_vm2, %v7075_v4  ;;  %2590 = vmatpush1.bf16.msra.mxu1 %v5774_v47  ;;  %8533 = vst [vmem:[#allocation63_spill] sm:$0xff] %v7301_v13  ;;  %v5775_v47 = vld [vmem:[%s8386_s3 + $0x30] sm:$0xff]  }
 0x1fb   :  { %2337 = vmatprep.subr.bf16.mxu0 %v8480_v20  ;;  %2591 = vmatprep.subr.bf16.mxu1 %v8480_v20 }
 0x1fc   :  { %2078 = vmatmul.mubr.bf16.gmra.mxu0 %v6543_v37 }
 0x1fd   :  { %2338 = vmatpush1.bf16.msra.mxu0 %v7285_v1  ;;  %5013 = vmatprep.mubr.msk.bf16.mxu0 %vm1136_vm2, %v6691_v11  ;;  %v7313_v1 = vld [vmem:[%s8386_s3 + $0x318] sm:$0xff]  }
 0x1fe   :  { %2592 = vmatpush1.bf16.msra.mxu1 %v5775_v47  ;;  %2339 = vmatprep.subr.bf16.mxu0 %v8480_v20  ;;  %8534 = vst [vmem:[#allocation64_spill] sm:$0xff] %v7313_v1  ;;  %v7326_v47 = vld [vmem:[%s8386_s3 + $0x310] sm:$0xff]  }
 0x1ff   :  { %2593 = vmatprep.subr.bf16.mxu1 %v8480_v20  ;;  %8535 = vst [vmem:[#allocation65_spill] sm:$0xff] %v7326_v47 }
 0x201   :  { %2524 = vmatmul.mubr.bf16.gmra.mxu1 %v6567_v44  ;;  %2340 = vmatpush1.bf16.msra.mxu0 %v7301_v13  ;;  %v5777_v13 = vld [vmem:[%s8386_s3 + $0x20] sm:$0xff]  }
 0x202   :  { %2594 = vmatpush1.bf16.msra.mxu1 %v5776_v55  ;;  %5055 = vmatprep.mubr.msk.bf16.mxu1 %vm1136_vm2, %v6668_v25  ;;  %v7337_v55 = vld [vmem:[%s8386_s3 + $0x308] sm:$0xff]  }
 0x203   :  { %2341 = vmatprep.subr.bf16.mxu0 %v8480_v20  ;;  %2595 = vmatprep.subr.bf16.mxu1 %v8480_v20  ;;  %8536 = vst [vmem:[#allocation66_spill] sm:$0xff] %v7337_v55 }
 0x205   :  { %2342 = vmatpush1.bf16.msra.mxu0 %v7313_v1  ;;  %v5778_v1 = vld [vmem:[%s8386_s3 + $0x18] sm:$0xff]  }
 0x206   :  { %2596 = vmatpush1.bf16.msra.mxu1 %v5777_v13  ;;  %2343 = vmatprep.subr.bf16.mxu0 %v8480_v20  ;;  %v7348_v13 = vld [vmem:[%s8386_s3 + $0x300] sm:$0xff]  }
 0x207   :  { %2597 = vmatprep.subr.bf16.mxu1 %v8480_v20  ;;  %8537 = vst [vmem:[#allocation67_spill] sm:$0xff] %v7348_v13 }
 0x209   :  { %2344 = vmatpush1.bf16.msra.mxu0 %v7326_v47  ;;  %v5779_v47 = vld [vmem:[%s8386_s3 + $0x10] sm:$0xff]  }
 0x20a   :  { %2598 = vmatpush1.bf16.msra.mxu1 %v5778_v1  ;;  %2345 = vmatprep.subr.bf16.mxu0 %v8480_v20  ;;  %v7359_v1 = vld [vmem:[%s8386_s3 + $0x358] sm:$0xff]  }
 0x20b   :  { %2599 = vmatprep.subr.bf16.mxu1 %v8480_v20  ;;  %8538 = vst [vmem:[#allocation68_spill] sm:$0xff] %v7359_v1 }
 0x20d   :  { %2346 = vmatpush1.bf16.msra.mxu0 %v7337_v55  ;;  %v5780_v55 = vld [vmem:[%s8386_s3 + $0x8] sm:$0xff]  }
 0x20e   :  { %2600 = vmatpush1.bf16.msra.mxu1 %v5779_v47  ;;  %2347 = vmatprep.subr.bf16.mxu0 %v8480_v20  ;;  %v7370_v47 = vld [vmem:[%s8386_s3 + $0x350] sm:$0xff]  }
 0x20f   :  { %2601 = vmatprep.subr.bf16.mxu1 %v8480_v20  ;;  %8539 = vst [vmem:[#allocation69_spill] sm:$0xff] %v7370_v47 }
 0x211   :  { %2348 = vmatpush1.bf16.msra.mxu0 %v7348_v13  ;;  %v5781_v13 = vld [vmem:[%s8386_s3] sm:$0xff]  }
 0x212   :  { %2602 = vmatpush1.bf16.msra.mxu1 %v5780_v55  ;;  %2357 = vmatprep.subr.bf16.mxu0 %v8480_v20  ;;  %v7381_v55 = vld [vmem:[%s8386_s3 + $0x348] sm:$0xff]  }
 0x213   :  { %2603 = vmatprep.subr.bf16.mxu1 %v8480_v20  ;;  %8540 = vst [vmem:[#allocation70_spill] sm:$0xff] %v7381_v55 }
 0x215   :  { %2358 = vmatpush2.bf16.msra.mxu0 %v7359_v1  ;;  %v5782_v1 = vld [vmem:[%s8386_s3 + $0x58] sm:$0xff]  }
 0x216   :  { %2604 = vmatpush1.bf16.msra.mxu1 %v5781_v13  ;;  %2359 = vmatprep.subr.bf16.mxu0 %v8480_v20  ;;  %v7392_v13 = vld [vmem:[%s8386_s3 + $0x340] sm:$0xff]  }
 0x217   :  { %2613 = vmatprep.subr.bf16.mxu1 %v8480_v20  ;;  %8541 = vst [vmem:[#allocation71_spill] sm:$0xff] %v7392_v13 }
 0x219   :  { %2360 = vmatpush2.bf16.msra.mxu0 %v7370_v47  ;;  %v5783_v47 = vld [vmem:[%s8386_s3 + $0x50] sm:$0xff]  }
 0x21a   :  { %2614 = vmatpush2.bf16.msra.mxu1 %v5782_v1  ;;  %2361 = vmatprep.subr.bf16.mxu0 %v8480_v20  ;;  %v7400_v1 = vpop.f32.mrf.mxu0 }
 0x21b   :  { %2615 = vmatprep.subr.bf16.mxu1 %v8480_v20  ;;  %8542 = vst [vmem:[#allocation72_spill] sm:$0xff] %v7400_v1 }
 0x21d   :  { %2362 = vmatpush2.bf16.msra.mxu0 %v7381_v55  ;;  %v5784_v55 = vld [vmem:[%s8386_s3 + $0x48] sm:$0xff]  }
 0x21e   :  { %2616 = vmatpush2.bf16.msra.mxu1 %v5783_v47  ;;  %2363 = vmatprep.subr.bf16.mxu0 %v8480_v20 }
 0x21f   :  { %2617 = vmatprep.subr.bf16.mxu1 %v8480_v20 }
 0x221   :  { %2364 = vmatpush2.bf16.msra.mxu0 %v7392_v13  ;;  %v5785_v13 = vld [vmem:[%s8386_s3 + $0x98] sm:$0xff]  }
 0x222   :  { %2618 = vmatpush2.bf16.msra.mxu1 %v5784_v55  ;;  %2540 = vmatprep.subr.bf16.mxu0 %v8480_v20  ;;  %v5786_v55 = vld [vmem:[%s8386_s3 + $0x40] sm:$0xff]  }
 0x223   :  { %2619 = vmatprep.subr.bf16.mxu1 %v8480_v20 }
 0x224   :  { %2366 = vmatmul.mubr.bf16.vlgmr.msra.gmra.mxu0 %v6699_v10  ;;  %v7408_v47 = vpop.f32.mrf.mxu0 }
 0x225   :  { %5014 = vmatprep.mubr.msk.bf16.mxu0 %vm1136_vm2, %v6744_v42  ;;  %2541 = vmatpush1.bf16.msra.mxu0 %v5785_v13  ;;  %v5787_v13 = vld [vmem:[%s8386_s3 + $0x90] sm:$0xff]  }
 0x226   :  { %2620 = vmatpush2.bf16.msra.mxu1 %v5786_v55  ;;  %v1179_v38 = vpop.f32.mrf.mxu0  ;;  %2542 = vmatprep.subr.bf16.mxu0 %v8480_v20 }
 0x227   :  { %2691 = vmatprep.subr.bf16.mxu1 %v8480_v20  ;;  %v5788_v38 = vld [vmem:[%s8386_s3 + $0x158] sm:$0xff]  }
 0x228   :  { %v7420_v46 = vpop.f32.mrf.mxu0  ;;  %v7423_v25 = vpop.f32.mrf.mxu1 }
 0x229   :  { %2622 = vmatmul.mubr.bf16.vlgmr.msra.gmra.mxu1 %v6677_v5  ;;  %2543 = vmatpush1.bf16.msra.mxu0 %v5787_v13  ;;  %v5789_v13 = vld [vmem:[%s8386_s3 + $0x88] sm:$0xff]  }
 0x22a   :  { %5056 = vmatprep.mubr.msk.bf16.mxu1 %vm1136_vm2, %v6707_v0  ;;  %2692 = vmatpush1.bf16.msra.mxu1 %v5788_v38  ;;  %v1182_v55 = vpop.f32.mrf.mxu0  ;;  %v1622_v61 = vpop.f32.mrf.mxu1 }
 0x22b   :  { %2544 = vmatprep.subr.bf16.mxu0 %v8480_v20  ;;  %2693 = vmatprep.subr.bf16.mxu1 %v8480_v20  ;;  %v5790_v61 = vld [vmem:[%s8386_s3 + $0x150] sm:$0xff]  }
 0x22c   :  { %2374 = vmatmul.mubr.bf16.gmra.mxu0 %v6753_v63  ;;  %v7436_v5 = vpop.f32.mrf.mxu0  ;;  %v7438_v1 = vpop.f32.mrf.mxu1 }
 0x22d   :  { %2545 = vmatpush1.bf16.msra.mxu0 %v5789_v13  ;;  %5053 = vmatprep.mubr.msk.bf16.mxu0 %vm1136_vm2, %v6529_v3  ;;  %v5791_v13 = vld [vmem:[%s8386_s3 + $0x80] sm:$0xff]  }
 0x22e   :  { %2694 = vmatpush1.bf16.msra.mxu1 %v5790_v61  ;;  %v1187_v38 = vpop.f32.mrf.mxu0  ;;  %2546 = vmatprep.subr.bf16.mxu0 %v8480_v20  ;;  %v1625_v55 = vpop.f32.mrf.mxu1 }
 0x22f   :  { %2695 = vmatprep.subr.bf16.mxu1 %v8480_v20 }
 0x230   :  { %v7450_v58 = vpop.f32.mrf.mxu0  ;;  %v7453_v30 = vpop.f32.mrf.mxu1 }
 0x231   :  { %2630 = vmatmul.mubr.bf16.gmra.mxu1 %v6716_v57  ;;  %2547 = vmatpush1.bf16.msra.mxu0 %v5791_v13  ;;  %v5792_v57 = vld [vmem:[%s8386_s3 + $0x78] sm:$0xff]   ;;  %v5793_v13 = vld [vmem:[%s8386_s3 + $0x70] sm:$0xff]  }
 0x232   :  { %2696 = vmatpush1.bf16.msra.mxu1 %v6541_v32  ;;  %5059 = vmatprep.mubr.msk.bf16.mxu1 %vm1136_vm2, %v6536_v7  ;;  %v1190_v61 = vpop.f32.mrf.mxu0  ;;  %v1630_v38 = vpop.f32.mrf.mxu1 }
 0x233   :  { %2548 = vmatprep.subr.bf16.mxu0 %v8480_v20  ;;  %2697 = vmatprep.subr.bf16.mxu1 %v8480_v20  ;;  %v5797_v61 = vld [vmem:[%s8386_s3 + $0xb0] sm:$0xff]   ;;  %v5798_v38 = vld [vmem:[%s8386_s3 + $0xa8] sm:$0xff]  }
 0x234   :  { %v7463_v55 = vpop.f32.mrf.mxu1 }
 0x235   :  { %2549 = vmatpush1.bf16.msra.mxu0 %v5792_v57  ;;  %v5795_v57 = vld [vmem:[%s8386_s3 + $0x60] sm:$0xff]  }
 0x236   :  { %2698 = vmatpush1.bf16.msra.mxu1 %v6560_v40  ;;  %2550 = vmatprep.subr.bf16.mxu0 %v8480_v20  ;;  %v1633_v32 = vpop.f32.mrf.mxu1  ;;  %v5794_v40 = vld [vmem:[%s8386_s3 + $0x68] sm:$0xff]  }
 0x237   :  { %2699 = vmatprep.subr.bf16.mxu1 %v8480_v20  ;;  %v8545_v32 = vld [vmem:[#allocation6_spill] sm:$0xff] }
 0x239   :  { %2551 = vmatpush1.bf16.msra.mxu0 %v5793_v13  ;;  %v5799_v13 = vld [vmem:[%s8386_s3 + $0xa0] sm:$0xff]  }
 0x23a   :  { %2700 = vmatpush1.bf16.msra.mxu1 %v6573_v45  ;;  %2552 = vmatprep.subr.bf16.mxu0 %v8480_v20  ;;  %v5796_v45 = vld [vmem:[%s8386_s3 + $0xb8] sm:$0xff]  }
 0x23b   :  { %2701 = vmatprep.subr.bf16.mxu1 %v8480_v20 }
 0x23d   :  { %2553 = vmatpush1.bf16.msra.mxu0 %v5794_v40  ;;  %v8546_v40 = vld [vmem:[#allocation7_spill] sm:$0xff] }
 0x23e   :  { %2702 = vmatpush1.bf16.msra.mxu1 %v6584_v48  ;;  %2554 = vmatprep.subr.bf16.mxu0 %v8480_v20  ;;  %v8543_v48 = vld [vmem:[#allocation4_spill] sm:$0xff] }
 0x23f   :  { %2703 = vmatprep.subr.bf16.mxu1 %v8480_v20 }
 0x241   :  { %2555 = vmatpush1.bf16.msra.mxu0 %v5795_v57  ;;  %v1305_v57 = vadd.f32 %v7176_v60, %v7408_v47 }
 0x242   :  { %2704 = vmatpush1.bf16.msra.mxu1 %v6591_v53  ;;  %2564 = vmatprep.subr.bf16.mxu0 %v8480_v20  ;;  %v8544_v53 = vld [vmem:[#allocation5_spill] sm:$0xff] }
 0x243   :  { %2705 = vmatprep.subr.bf16.mxu1 %v8480_v20 }
 0x245   :  { %2565 = vmatpush2.bf16.msra.mxu0 %v5796_v45 }
 0x246   :  { %2706 = vmatpush1.bf16.msra.mxu1 %v8543_v48  ;;  %2566 = vmatprep.subr.bf16.mxu0 %v8480_v20 }
 0x247   :  { %2715 = vmatprep.subr.bf16.mxu1 %v8480_v20 }
 0x249   :  { %2567 = vmatpush2.bf16.msra.mxu0 %v5797_v61  ;;  %v8547_v61 = vld [vmem:[#allocation8_spill] sm:$0xff] }
 0x24a   :  { %2716 = vmatpush2.bf16.msra.mxu1 %v8544_v53  ;;  %2568 = vmatprep.subr.bf16.mxu0 %v8480_v20 }
 0x24b   :  { %2717 = vmatprep.subr.bf16.mxu1 %v8480_v20 }
 0x24d   :  { %2569 = vmatpush2.bf16.msra.mxu0 %v5798_v38  ;;  %v1308_v38 = vadd.f32 %v7192_v2, %v7420_v46  ;;  %v1313_v2 = vadd.f32 %v7208_v35, %v7436_v5  ;;  %v1316_v5 = vadd.f32 %v7224_v12, %v7450_v58 }
 0x24e   :  { %2718 = vmatpush2.bf16.msra.mxu1 %v8545_v32  ;;  %2570 = vmatprep.subr.bf16.mxu0 %v8480_v20 }
 0x24f   :  { %2719 = vmatprep.subr.bf16.mxu1 %v8480_v20 }
 0x251   :  { %2571 = vmatpush2.bf16.msra.mxu0 %v5799_v13 }
 0x252   :  { %2720 = vmatpush2.bf16.msra.mxu1 %v8546_v40  ;;  %2638 = vmatprep.subr.bf16.mxu0 %v8480_v20 }
 0x253   :  { %2721 = vmatprep.subr.bf16.mxu1 %v8480_v20 }
 0x254   :  { %v1460_v45 = vpop.f32.mrf.mxu0  ;;  %2573 = vmatmul.mubr.bf16.vlgmr.msra.gmra.mxu0 %v6513_v27 }
 0x255   :  { %v1475_v48 = vadd.f32 %v1460_v45, %v1305_v57  ;;  %5054 = vmatprep.mubr.msk.bf16.mxu0 %vm1136_vm2, %v6564_v43  ;;  %2639 = vmatpush1.bf16.msra.mxu0 %v6673_v26 }
 0x256   :  { %2722 = vmatpush2.bf16.msra.mxu1 %v8547_v61  ;;  %v1462_v53 = vpop.f32.mrf.mxu0  ;;  %2640 = vmatprep.subr.bf16.mxu0 %v8480_v20  ;;  %v8557_v61 = vld [vmem:[#allocation9_spill] sm:$0xff] }
 0x257   :  { %2802 = vmatprep.subr.bf16.mxu1 %v8480_v20  ;;  %v7525_v60 = vadd.f32 %v7423_v25, %v1475_v48 }
 0x258   :  { %v1463_v47 = vpop.f32.mrf.mxu0 }
 0x259   :  { %v1476_v32 = vadd.f32 %v1463_v47, %v1308_v38  ;;  %v7527_v13 = vpop.f32.mrf.mxu1  ;;  %2724 = vmatmul.mubr.bf16.vlgmr.msra.gmra.mxu1 %v6543_v37  ;;  %2641 = vmatpush1.bf16.msra.mxu0 %v6689_v54  ;;  %v8558_v38 = vld [vmem:[#allocation24_spill] sm:$0xff] }
 0x25a   :  { %5060 = vmatprep.mubr.msk.bf16.mxu1 %vm1136_vm2, %v7075_v4  ;;  %2803 = vmatpush1.bf16.msra.mxu1 %v6697_v16  ;;  %v1465_v26 = vpop.f32.mrf.mxu0  ;;  %v8560_v47 = vld [vmem:[#allocation72_spill] sm:$0xff] }
 0x25b   :  { %v1952_v46 = vpop.f32.mrf.mxu1  ;;  %2642 = vmatprep.subr.bf16.mxu0 %v8480_v20  ;;  %2804 = vmatprep.subr.bf16.mxu1 %v8480_v20  ;;  %v7539_v25 = vadd.f32 %v7438_v1, %v1476_v32  ;;  %v8561_v26 = vld [vmem:[#allocation26_spill] sm:$0xff] }
 0x25c   :  { %v1468_v40 = vpop.f32.mrf.mxu0  ;;  %2581 = vmatmul.mubr.bf16.gmra.mxu0 %v6549_v8  ;;  %v8563_v46 = vld [vmem:[#allocation47_spill] sm:$0xff] }
 0x25d   :  { %v1477_v54 = vadd.f32 %v1468_v40, %v1313_v2  ;;  %v7542_v57 = vpop.f32.mrf.mxu1  ;;  %2643 = vmatpush1.bf16.msra.mxu0 %v6714_v56  ;;  %5057 = vmatprep.mubr.msk.bf16.mxu0 %vm1136_vm2, %v6691_v11  ;;  %v8562_v2 = vld [vmem:[#allocation27_spill] sm:$0xff]  ;;  %v8564_v40 = vld [vmem:[#allocation28_spill] sm:$0xff] }
 0x25e   :  { %2805 = vmatpush1.bf16.msra.mxu1 %v6726_v59  ;;  %v1470_v35 = vpop.f32.mrf.mxu0  ;;  %2644 = vmatprep.subr.bf16.mxu0 %v8480_v20 }
 0x25f   :  { %v1955_v16 = vpop.f32.mrf.mxu1  ;;  %2806 = vmatprep.subr.bf16.mxu1 %v8480_v20  ;;  %v7553_v1 = vadd.f32 %v7453_v30, %v1477_v54  ;;  %v8565_v54 = vld [vmem:[#allocation29_spill] sm:$0xff]  ;;  %v8566_v35 = vld [vmem:[#allocation3_spill] sm:$0xff] }
 0x260   :  { %v1471_v45 = vpop.f32.mrf.mxu0  ;;  %v8567_v16 = vld [vmem:[#allocation30_spill] sm:$0xff] }
 0x261   :  { %v1478_v48 = vadd.f32 %v1471_v45, %v1316_v5  ;;  %v7555_v56 = vpop.f32.mrf.mxu1  ;;  %2732 = vmatmul.mubr.bf16.gmra.mxu1 %v6567_v44  ;;  %2645 = vmatpush1.bf16.msra.mxu0 %v6740_v24 }
 0x262   :  { %2807 = vmatpush1.bf16.msra.mxu1 %v6751_v18  ;;  %5063 = vmatprep.mubr.msk.bf16.mxu1 %vm1136_vm2, %v6529_v3  ;;  %v1473_v58 = vpop.f32.mrf.mxu0 }
 0x263   :  { %v1960_v59 = vpop.f32.mrf.mxu1  ;;  %2646 = vmatprep.subr.bf16.mxu0 %v8480_v20  ;;  %2808 = vmatprep.subr.bf16.mxu1 %v8480_v20  ;;  %v7565_v30 = vadd.f32 %v7463_v55, %v1478_v48  ;;  %v8556_v55 = vld [vmem:[#allocation10_spill] sm:$0xff]  ;;  %v8569_v48 = vld [vmem:[#allocation32_spill] sm:$0xff]  ;;  %v8570_v58 = vld [vmem:[#allocation33_spill] sm:$0xff] }
 0x264   :  { %v804_v53 = vmax.f32 %v8557_v61, %v8556_v55  ;;  %v8571_v59 = vld [vmem:[#allocation14_spill] sm:$0xff]  ;;  %v8582_v61 = vld [vmem:[#allocation40_spill] sm:$0xff] }
 0x265   :  { %v7567_v12 = vpop.f32.mrf.mxu1  ;;  %2647 = vmatpush1.bf16.msra.mxu0 %v6765_v6 }
 0x266   :  { %2809 = vmatpush1.bf16.msra.mxu1 %v6773_v28  ;;  %2648 = vmatprep.subr.bf16.mxu0 %v8480_v20  ;;  %v907_v32 = vmax.f32 %v804_v53, %v8560_v47  ;;  %v8583_v53 = vld [vmem:[#allocation41_spill] sm:$0xff]  ;;  %v8584_v47 = vld [vmem:[#allocation42_spill] sm:$0xff] }
 0x267   :  { %v1963_v24 = vpop.f32.mrf.mxu1  ;;  %2810 = vmatprep.subr.bf16.mxu1 %v8480_v20 }
 0x269   :  { %2649 = vmatpush1.bf16.msra.mxu0 %v6781_v29 }
 0x26a   :  { %2811 = vmatpush1.bf16.msra.mxu1 %v6788_v9  ;;  %2650 = vmatprep.subr.bf16.mxu0 %v8480_v20 }
 0x26b   :  { %2812 = vmatprep.subr.bf16.mxu1 %v8480_v20 }
 0x26d   :  { %2651 = vmatpush1.bf16.msra.mxu0 %v6795_v33 }
 0x26e   :  { %2813 = vmatpush1.bf16.msra.mxu1 %v6802_v34  ;;  %2652 = vmatprep.subr.bf16.mxu0 %v8480_v20 }
 0x26f   :  { %2814 = vmatprep.subr.bf16.mxu1 %v8480_v20 }
 0x271   :  { %2653 = vmatpush1.bf16.msra.mxu0 %v6809_v39 }
 0x272   :  { %2815 = vmatpush1.bf16.msra.mxu1 %v6816_v49  ;;  %2662 = vmatprep.subr.bf16.mxu0 %v8480_v20 }
 0x273   :  { %2816 = vmatprep.subr.bf16.mxu1 %v8480_v20 }
 0x275   :  { %2663 = vmatpush2.bf16.msra.mxu0 %v6823_v50 }
 0x276   :  { %2817 = vmatpush1.bf16.msra.mxu1 %v6830_v51  ;;  %2664 = vmatprep.subr.bf16.mxu0 %v8480_v20 }
 0x277   :  { %2826 = vmatprep.subr.bf16.mxu1 %v8480_v20 }
 0x279   :  { %2665 = vmatpush2.bf16.msra.mxu0 %v6837_v36 }
 0x27a   :  { %2827 = vmatpush2.bf16.msra.mxu1 %v6844_v41  ;;  %2666 = vmatprep.subr.bf16.mxu0 %v8480_v20 }
 0x27b   :  { %2828 = vmatprep.subr.bf16.mxu1 %v8480_v20 }
 0x27d   :  { %2667 = vmatpush2.bf16.msra.mxu0 %v6851_v52  ;;  %v8548_v52 = vld [vmem:[#allocation16_spill] sm:$0xff] }
 0x27e   :  { %2829 = vmatpush2.bf16.msra.mxu1 %v6858_v62  ;;  %2668 = vmatprep.subr.bf16.mxu0 %v8480_v20  ;;  %v8549_v62 = vld [vmem:[#allocation17_spill] sm:$0xff] }
 0x27f   :  { %2830 = vmatprep.subr.bf16.mxu1 %v8480_v20 }
 0x281   :  { %2669 = vmatpush2.bf16.msra.mxu0 %v6865_v15 }
 0x282   :  { %2831 = vmatpush2.bf16.msra.mxu1 %v6872_v22  ;;  %2749 = vmatprep.subr.bf16.mxu0 %v8480_v20 }
 0x283   :  { %2832 = vmatprep.subr.bf16.mxu1 %v8480_v20 }
 0x284   :  { %v1775_v3 = vpop.f32.mrf.mxu0  ;;  %2671 = vmatmul.mubr.bf16.vlgmr.msra.gmra.mxu0 %v6699_v10 }
 0x285   :  { %v7603_v18 = vadd.f32 %v1775_v3, %v7525_v60  ;;  %5058 = vmatprep.mubr.msk.bf16.mxu0 %vm1136_vm2, %v6744_v42  ;;  %2750 = vmatpush1.bf16.msra.mxu0 %v6879_v17  ;;  %v8559_v60 = vld [vmem:[#allocation25_spill] sm:$0xff] }
 0x286   :  { %2833 = vmatpush2.bf16.msra.mxu1 %v6886_v19  ;;  %v1777_v6 = vpop.f32.mrf.mxu0  ;;  %2751 = vmatprep.subr.bf16.mxu0 %v8480_v20  ;;  %v8550_v19 = vld [vmem:[#allocation18_spill] sm:$0xff] }
 0x287   :  { %2900 = vmatprep.subr.bf16.mxu1 %v8480_v20  ;;  %v8573_v6 = vld [vmem:[#allocation13_spill] sm:$0xff] }
 0x288   :  { %v1778_v28 = vpop.f32.mrf.mxu0 }
 0x289   :  { %v7612_v29 = vadd.f32 %v1778_v28, %v7539_v25  ;;  %v7614_v9 = vpop.f32.mrf.mxu1  ;;  %2835 = vmatmul.mubr.bf16.vlgmr.msra.gmra.mxu1 %v6513_v27  ;;  %2752 = vmatpush1.bf16.msra.mxu0 %v6896_v14  ;;  %v8551_v14 = vld [vmem:[#allocation19_spill] sm:$0xff]  ;;  %v982_v25 = vmax.f32 %v907_v32, %v8563_v46  ;;  %v8589_v46 = vld [vmem:[#allocation48_spill] sm:$0xff] }
 0x28a   :  { %5064 = vmatprep.mubr.msk.bf16.mxu1 %vm1136_vm2, %v6564_v43  ;;  %2901 = vmatpush1.bf16.msra.mxu1 %v6903_v21  ;;  %v1780_v33 = vpop.f32.mrf.mxu0  ;;  %v8552_v21 = vld [vmem:[#allocation20_spill] sm:$0xff] }
 0x28b   :  { %v2219_v34 = vpop.f32.mrf.mxu1  ;;  %2753 = vmatprep.subr.bf16.mxu0 %v8480_v20  ;;  %2902 = vmatprep.subr.bf16.mxu1 %v8480_v20  ;;  %v994_v5 = vadd.f32 %v982_v25, %v8566_v35  ;;  %v8574_v33 = vld [vmem:[#allocation34_spill] sm:$0xff]  ;;  %v8590_v25 = vld [vmem:[#allocation49_spill] sm:$0xff]  ;;  %v8593_v35 = vld [vmem:[#allocation52_spill] sm:$0xff] }
 0x28c   :  { %v1783_v39 = vpop.f32.mrf.mxu0  ;;  %2679 = vmatmul.mubr.bf16.gmra.mxu0 %v6753_v63  ;;  %v8575_v34 = vld [vmem:[#allocation35_spill] sm:$0xff] }
 0x28d   :  { %v7625_v49 = vadd.f32 %v1783_v39, %v7553_v1  ;;  %v7627_v27 = vpop.f32.mrf.mxu1  ;;  %2754 = vmatpush1.bf16.msra.mxu0 %v6911_v23  ;;  %5061 = vmatprep.mubr.msk.bf16.mxu0 %vm1136_vm2, %v6707_v0  ;;  %v8554_v23 = vld [vmem:[#allocation22_spill] sm:$0xff]  ;;  %v8568_v1 = vld [vmem:[#allocation31_spill] sm:$0xff]  ;;  %v1006_v45 = vmax.f32 %v994_v5, 0.0  ;;  %v8594_v5 = vld [vmem:[#allocation53_spill] sm:$0xff] }
 0x28e   :  { %2903 = vmatpush1.bf16.msra.mxu1 %v6919_v31  ;;  %v1785_v43 = vpop.f32.mrf.mxu0  ;;  %2755 = vmatprep.subr.bf16.mxu0 %v8480_v20  ;;  %v8555_v31 = vld [vmem:[#allocation23_spill] sm:$0xff] }
 0x28f   :  { %v2222_v50 = vpop.f32.mrf.mxu1  ;;  %2904 = vmatprep.subr.bf16.mxu1 %v8480_v20 }
 0x290   :  { %v1786_v51 = vpop.f32.mrf.mxu0 }
 0x291   :  { %v7636_v36 = vadd.f32 %v1786_v51, %v7565_v30  ;;  %v7638_v41 = vpop.f32.mrf.mxu1  ;;  %2843 = vmatmul.mubr.bf16.gmra.mxu1 %v6549_v8  ;;  %2756 = vmatpush1.bf16.msra.mxu0 %v8548_v52  ;;  %v8572_v30 = vmax.f32 %v8571_v59, 0.0 }
 0x292   :  { %2905 = vmatpush1.bf16.msra.mxu1 %v8549_v62  ;;  %5067 = vmatprep.mubr.msk.bf16.mxu1 %vm1136_vm2, %v6691_v11  ;;  %v1788_v15 = vpop.f32.mrf.mxu0  ;;  %v8553_v11 = vld [vmem:[#allocation21_spill] sm:$0xff] }
 0x293   :  { %v2227_v22 = vpop.f32.mrf.mxu1  ;;  %2757 = vmatprep.subr.bf16.mxu0 %v8480_v20  ;;  %2906 = vmatprep.subr.bf16.mxu1 %v8480_v20  ;;  %v7687_v24 = vpack.c.bf16 %v1006_v45, %v8572_v30  ;;  %v8577_v62 = vld [vmem:[#allocation37_spill] sm:$0xff]  ;;  %v8597_v45 = vld [vmem:[#allocation56_spill] sm:$0xff] }
 0x294   :  { %v8600_v30 = vld [vmem:[#allocation12_spill] sm:$0xff] }
 0x295   :  { %v7647_v17 = vpop.f32.mrf.mxu1  ;;  %2758 = vmatpush1.bf16.msra.mxu0 %v8550_v19  ;;  %v8578_v19 = vld [vmem:[#allocation15_spill] sm:$0xff] }
 0x296   :  { %2907 = vmatpush1.bf16.msra.mxu1 %v8551_v14  ;;  %2759 = vmatprep.subr.bf16.mxu0 %v8480_v20 }
 0x297   :  { %v2230_v8 = vpop.f32.mrf.mxu1  ;;  %2908 = vmatprep.subr.bf16.mxu1 %v8480_v20 }
 0x298   :  { %v8579_v8 = vld [vmem:[#allocation38_spill] sm:$0xff] }
 0x299   :  { %2760 = vmatpush1.bf16.msra.mxu0 %v8552_v21  ;;  %v8581_v21 = vld [vmem:[#allocation39_spill] sm:$0xff] }
 0x29a   :  { %2909 = vmatpush1.bf16.msra.mxu1 %v8553_v11  ;;  %2761 = vmatprep.subr.bf16.mxu0 %v8480_v20 }
 0x29b   :  { %2910 = vmatprep.subr.bf16.mxu1 %v8480_v20 }
 0x29d   :  { %2762 = vmatpush1.bf16.msra.mxu0 %v8554_v23 }
 0x29e   :  { %2911 = vmatpush1.bf16.msra.mxu1 %v8555_v31  ;;  %2763 = vmatprep.subr.bf16.mxu0 %v8480_v20 }
 0x29f   :  { %2912 = vmatprep.subr.bf16.mxu1 %v8480_v20 }
 0x2a1   :  { %2764 = vmatpush1.bf16.msra.mxu0 %v8558_v38 }
 0x2a2   :  { %2913 = vmatpush1.bf16.msra.mxu1 %v8559_v60  ;;  %2773 = vmatprep.subr.bf16.mxu0 %v8480_v20 }
 0x2a3   :  { %2914 = vmatprep.subr.bf16.mxu1 %v8480_v20 }
 0x2a5   :  { %2774 = vmatpush2.bf16.msra.mxu0 %v8561_v26  ;;  %v8586_v26 = vld [vmem:[#allocation44_spill] sm:$0xff] }
 0x2a6   :  { %2915 = vmatpush1.bf16.msra.mxu1 %v8562_v2  ;;  %2775 = vmatprep.subr.bf16.mxu0 %v8480_v20  ;;  %v8587_v2 = vld [vmem:[#allocation45_spill] sm:$0xff] }
 0x2a7   :  { %2924 = vmatprep.subr.bf16.mxu1 %v8480_v20 }
 0x2a9   :  { %2776 = vmatpush2.bf16.msra.mxu0 %v8564_v40  ;;  %v8591_v40 = vld [vmem:[#allocation50_spill] sm:$0xff] }
 0x2aa   :  { %2925 = vmatpush2.bf16.msra.mxu1 %v8565_v54  ;;  %2777 = vmatprep.subr.bf16.mxu0 %v8480_v20  ;;  %v8592_v54 = vld [vmem:[#allocation51_spill] sm:$0xff] }
 0x2ab   :  { %2926 = vmatprep.subr.bf16.mxu1 %v8480_v20 }
 0x2ad   :  { %2778 = vmatpush2.bf16.msra.mxu0 %v8567_v16  ;;  %v8595_v16 = vld [vmem:[#allocation54_spill] sm:$0xff] }
 0x2ae   :  { %2927 = vmatpush2.bf16.msra.mxu1 %v8568_v1  ;;  %2779 = vmatprep.subr.bf16.mxu0 %v8480_v20  ;;  %v8596_v1 = vld [vmem:[#allocation55_spill] sm:$0xff] }
 0x2af   :  { %2928 = vmatprep.subr.bf16.mxu1 %v8480_v20 }
 0x2b1   :  { %2780 = vmatpush2.bf16.msra.mxu0 %v8569_v48  ;;  %v8598_v48 = vld [vmem:[#allocation57_spill] sm:$0xff] }
 0x2b2   :  { %2929 = vmatpush2.bf16.msra.mxu1 %v8570_v58  ;;  %2851 = vmatprep.subr.bf16.mxu0 %v8480_v20  ;;  %v8599_v58 = vld [vmem:[#allocation58_spill] sm:$0xff] }
 0x2b3   :  { %2930 = vmatprep.subr.bf16.mxu1 %v8480_v20 }
 0x2b4   :  { %v2071_v3 = vpop.f32.mrf.mxu0  ;;  %2782 = vmatmul.mubr.bf16.vlgmr.msra.gmra.mxu0 %v8573_v6 }
 0x2b5   :  { %v2072_v28 = vadd.f32 %v2071_v3, %v7527_v13  ;;  %5062 = vmatprep.mubr.msk.bf16.mxu0 %vm1136_vm2, %v7687_v24  ;;  %2852 = vmatpush1.bf16.msra.mxu0 %v8574_v33  ;;  %v8576_v13 = vld [vmem:[#allocation36_spill] sm:$0xff] }
 0x2b6   :  { %2931 = vmatpush2.bf16.msra.mxu1 %v8575_v34  ;;  %v2073_v39 = vpop.f32.mrf.mxu0  ;;  %2853 = vmatprep.subr.bf16.mxu0 %v8480_v20  ;;  %v8602_v33 = vld [vmem:[#allocation60_spill] sm:$0xff] }
 0x2b7   :  { %3006 = vmatprep.subr.bf16.mxu1 %v8480_v20  ;;  %v7699_v43 = vadd.f32 %v7614_v9, %v2072_v28  ;;  %v8601_v28 = vld [vmem:[#allocation59_spill] sm:$0xff] }
 0x2b8   :  { %v2074_v50 = vpop.f32.mrf.mxu0 }
 0x2b9   :  { %v2075_v51 = vadd.f32 %v2074_v50, %v7542_v57  ;;  %v7702_v52 = vpop.f32.mrf.mxu1  ;;  %2933 = vmatmul.mubr.bf16.vlgmr.msra.gmra.mxu1 %v6699_v10  ;;  %2854 = vmatpush1.bf16.msra.mxu0 %v8576_v13 }
 0x2ba   :  { %5068 = vmatprep.mubr.msk.bf16.mxu1 %vm1136_vm2, %v6744_v42  ;;  %3007 = vmatpush1.bf16.msra.mxu1 %v8577_v62  ;;  %v2076_v15 = vpop.f32.mrf.mxu0  ;;  %v8580_v42 = vld [vmem:[#allocation11_spill] sm:$0xff] }
 0x2bb   :  { %v2519_v22 = vpop.f32.mrf.mxu1  ;;  %2855 = vmatprep.subr.bf16.mxu0 %v8480_v20  ;;  %3008 = vmatprep.subr.bf16.mxu1 %v8480_v20  ;;  %v7712_v9 = vadd.f32 %v7627_v27, %v2075_v51 }
 0x2bc   :  { %v2079_v57 = vpop.f32.mrf.mxu0  ;;  %2790 = vmatmul.mubr.bf16.gmra.mxu0 %v8578_v19 }
 0x2bd   :  { %v2080_v10 = vadd.f32 %v2079_v57, %v7555_v56  ;;  %v7716_v14 = vpop.f32.mrf.mxu1  ;;  %2856 = vmatpush1.bf16.msra.mxu0 %v8579_v8  ;;  %5065 = vmatprep.mubr.msk.bf16.mxu0 %vm1136_vm2, %v8580_v42  ;;  %v8604_v8 = vld [vmem:[#allocation62_spill] sm:$0xff] }
 0x2be   :  { %3009 = vmatpush1.bf16.msra.mxu1 %v8581_v21  ;;  %v2081_v11 = vpop.f32.mrf.mxu0  ;;  %2857 = vmatprep.subr.bf16.mxu0 %v8480_v20 }
 0x2bf   :  { %v2522_v23 = vpop.f32.mrf.mxu1  ;;  %3010 = vmatprep.subr.bf16.mxu1 %v8480_v20  ;;  %v7725_v27 = vadd.f32 %v7638_v41, %v2080_v10 }
 0x2c0   :  { %v2082_v31 = vpop.f32.mrf.mxu0 }
 0x2c1   :  { %v2083_v56 = vadd.f32 %v2082_v31, %v7567_v12  ;;  %v7728_v55 = vpop.f32.mrf.mxu1  ;;  %2941 = vmatmul.mubr.bf16.gmra.mxu1 %v6753_v63  ;;  %2858 = vmatpush1.bf16.msra.mxu0 %v8582_v61  ;;  %v8585_v63 = vld [vmem:[#allocation43_spill] sm:$0xff] }
 0x2c2   :  { %3011 = vmatpush1.bf16.msra.mxu1 %v8583_v53  ;;  %5071 = vmatprep.mubr.msk.bf16.mxu1 %vm1136_vm2, %v6707_v0  ;;  %v2084_v38 = vpop.f32.mrf.mxu0  ;;  %v8606_v53 = vld [vmem:[#allocation64_spill] sm:$0xff] }
 0x2c3   :  { %v2527_v60 = vpop.f32.mrf.mxu1  ;;  %2859 = vmatprep.subr.bf16.mxu0 %v8480_v20  ;;  %3012 = vmatprep.subr.bf16.mxu1 %v8480_v20  ;;  %v7738_v41 = vadd.f32 %v7647_v17, %v2083_v56  ;;  %v8588_v17 = vld [vmem:[#allocation46_spill] sm:$0xff]  ;;  %v8607_v38 = vld [vmem:[#allocation65_spill] sm:$0xff] }
 0x2c4   :  { %v8608_v60 = vld [vmem:[#allocation66_spill] sm:$0xff] }
 0x2c5   :  { %v7740_v12 = vpop.f32.mrf.mxu1  ;;  %2860 = vmatpush1.bf16.msra.mxu0 %v8584_v47  ;;  %v8611_v47 = vld [vmem:[#allocation69_spill] sm:$0xff] }
 0x2c6   :  { %3013 = vmatpush1.bf16.msra.mxu1 %v8585_v63  ;;  %2861 = vmatprep.subr.bf16.mxu0 %v8480_v20  ;;  %v8612_v63 = vld [vmem:[#allocation70_spill] sm:$0xff] }
 0x2c7   :  { %v2530_v32 = vpop.f32.mrf.mxu1  ;;  %3014 = vmatprep.subr.bf16.mxu1 %v8480_v20 }
 0x2c8   :  { %v8613_v32 = vld [vmem:[#allocation71_spill] sm:$0xff] }
 0x2c9   :  { %2862 = vmatpush1.bf16.msra.mxu0 %v8586_v26 }
 0x2ca   :  { %3015 = vmatpush1.bf16.msra.mxu1 %v8587_v2  ;;  %2863 = vmatprep.subr.bf16.mxu0 %v8480_v20 }
 0x2cb   :  { %3016 = vmatprep.subr.bf16.mxu1 %v8480_v20 }
 0x2cd   :  { %2864 = vmatpush1.bf16.msra.mxu0 %v8588_v17 }
 0x2ce   :  { %3017 = vmatpush1.bf16.msra.mxu1 %v8589_v46  ;;  %2865 = vmatprep.subr.bf16.mxu0 %v8480_v20 }
 0x2cf   :  { %3018 = vmatprep.subr.bf16.mxu1 %v8480_v20 }
 0x2d1   :  { %2866 = vmatpush1.bf16.msra.mxu0 %v8590_v25 }
 0x2d2   :  { %3019 = vmatpush1.bf16.msra.mxu1 %v8591_v40  ;;  %2875 = vmatprep.subr.bf16.mxu0 %v8480_v20 }
 0x2d3   :  { %3020 = vmatprep.subr.bf16.mxu1 %v8480_v20 }
 0x2d5   :  { %2876 = vmatpush2.bf16.msra.mxu0 %v8592_v54 }
 0x2d6   :  { %3021 = vmatpush1.bf16.msra.mxu1 %v8593_v35  ;;  %2877 = vmatprep.subr.bf16.mxu0 %v8480_v20 }
 0x2d7   :  { %3030 = vmatprep.subr.bf16.mxu1 %v8480_v20 }
 0x2d9   :  { %2878 = vmatpush2.bf16.msra.mxu0 %v8594_v5 }
 0x2da   :  { %3031 = vmatpush2.bf16.msra.mxu1 %v8595_v16  ;;  %2879 = vmatprep.subr.bf16.mxu0 %v8480_v20 }
 0x2db   :  { %3032 = vmatprep.subr.bf16.mxu1 %v8480_v20 }
 0x2dd   :  { %2880 = vmatpush2.bf16.msra.mxu0 %v8596_v1 }
 0x2de   :  { %3033 = vmatpush2.bf16.msra.mxu1 %v8597_v45  ;;  %2881 = vmatprep.subr.bf16.mxu0 %v8480_v20 }
 0x2df   :  { %3034 = vmatprep.subr.bf16.mxu1 %v8480_v20 }
 0x2e1   :  { %2882 = vmatpush2.bf16.msra.mxu0 %v8598_v48 }
 0x2e2   :  { %3035 = vmatpush2.bf16.msra.mxu1 %v8599_v58  ;;  %2953 = vmatprep.subr.bf16.mxu0 %v8480_v20 }
 0x2e3   :  { %3036 = vmatprep.subr.bf16.mxu1 %v8480_v20 }
 0x2e4   :  { %v2367_v59 = vpop.f32.mrf.mxu0  ;;  %2884 = vmatmul.mubr.bf16.vlgmr.msra.gmra.mxu0 %v8600_v30 }
 0x2e5   :  { %v2382_v3 = vadd.f32 %v2367_v59, %v7699_v43  ;;  %5066 = vmatprep.mubr.msk.bf16.mxu0 %vm1136_vm2, %v6707_v0  ;;  %2954 = vmatpush1.bf16.msra.mxu0 %v8601_v28  ;;  %v8603_v0 = vld [vmem:[#allocation61_spill] sm:$0xff] }
 0x2e6   :  { %3037 = vmatpush2.bf16.msra.mxu1 %v8602_v33  ;;  %v2369_v34 = vpop.f32.mrf.mxu0  ;;  %2955 = vmatprep.subr.bf16.mxu0 %v8480_v20  ;;  %v5550_v33 = vld [vmem:[%s8388_s5 + $0x1e0] ss:$16 sps:$4 sm:$0xff]  }
 0x2e7   :  { %v7782_v39 = vadd.f32 %v7702_v52, %v2382_v3  ;;  %v5553_v34 = vld [vmem:[%s8388_s5 + $0x1e8] ss:$16 sps:$4 sm:$0xff]  }
 0x2e8   :  { %v2370_v50 = vpop.f32.mrf.mxu0 }
 0x2e9   :  { %v2536_v51 = vmax.f32 %v7603_v18, %v7782_v39  ;;  %v2383_v13 = vadd.f32 %v2370_v50, %v7712_v9  ;;  %v2623_v43 = vpop.f32.mrf.mxu1  ;;  %3039 = vmatmul.mubr.bf16.vlgmr.msra.gmra.mxu1 %v8573_v6  ;;  %2956 = vmatpush1.bf16.msra.mxu0 %v8603_v0  ;;  %v5555_v50 = vld [vmem:[%s8388_s5 + $0x1ec] ss:$16 sps:$4 sm:$0xff]   ;;  %v5559_v0 = vld [vmem:[%s8388_s5 + $0x1c8] ss:$16 sps:$4 sm:$0xff]  }
 0x2ea   :  { %5072 = vmatprep.mubr.msk.bf16.mxu1 %vm1136_vm2, %v7687_v24  ;;  %v2372_v62 = vpop.f32.mrf.mxu0  ;;  %2957 = vmatprep.subr.bf16.mxu0 %v8480_v20 }
 0x2eb   :  { %v7793_v52 = vadd.f32 %v7716_v14, %v2383_v13  ;;  %v2625_v15 = vpop.f32.mrf.mxu1  ;;  %v5556_v13 = vld [vmem:[%s8388_s5 + $0x1c0] ss:$16 sps:$4 sm:$0xff]   ;;  %3350 = vmatprep.subr.bf16.mxu1 %v5555_v50  ;;  %v5561_v62 = vld [vmem:[%s8388_s5 + $0x1cc] ss:$16 sps:$4 sm:$0xff]  }
 0x2ec   :  { %v2375_v22 = vpop.f32.mrf.mxu0  ;;  %2892 = vmatmul.mubr.bf16.gmra.mxu0 %v8573_v6  ;;  %3351 = vmatpush1.bf16.msra.mxu1 %v5553_v34  ;;  %v5564_v15 = vld [vmem:[%s8388_s5 + $0x1a4] ss:$16 sps:$4 sm:$0xff]   ;;  %v5597_v34 = vld [vmem:[%s8388_s5 + $0x10c] ss:$16 sps:$4 sm:$0xff]   ;;  %v5592_v50 = vld [vmem:[%s8388_s5 + $0x100] ss:$16 sps:$4 sm:$0xff]  }
 0x2ed   :  { %v2537_v9 = vmax.f32 %v7612_v29, %v7793_v52  ;;  %v2384_v57 = vadd.f32 %v2375_v22, %v7725_v27  ;;  %v2626_v10 = vpop.f32.mrf.mxu1  ;;  %2958 = vmatpush1.bf16.msra.mxu0 %v8604_v8  ;;  %5069 = vmatprep.mubr.msk.bf16.mxu0 %vm1136_vm2, %v6536_v7  ;;  %v8605_v27 = vld [vmem:[#allocation63_spill] sm:$0xff]  ;;  %v5562_v22 = vld [vmem:[%s8388_s5 + $0x1a0] ss:$16 sps:$4 sm:$0xff]   ;;  %v5570_v8 = vld [vmem:[%s8388_s5 + $0x184] ss:$16 sps:$4 sm:$0xff]  }
 0x2ee   :  { %v2377_v24 = vpop.f32.mrf.mxu0  ;;  %2959 = vmatprep.subr.bf16.mxu0 %v8480_v20  ;;  %3352 = vmatprep.subr.bf16.mxu1 %v5561_v62  ;;  %v5598_v29 = vld [vmem:[%s8388_s5 + $0xe0] ss:$16 sps:$4 sm:$0xff]   ;;  %v5601_v52 = vld [vmem:[%s8388_s5 + $0xe8] ss:$16 sps:$4 sm:$0xff]  }
 0x2ef   :  { %v7804_v14 = vadd.f32 %v7728_v55, %v2384_v57  ;;  %v2628_v42 = vpop.f32.mrf.mxu1  ;;  %v5567_v57 = vld [vmem:[%s8388_s5 + $0x1ac] ss:$16 sps:$4 sm:$0xff]   ;;  %v5568_v24 = vld [vmem:[%s8388_s5 + $0x180] ss:$16 sps:$4 sm:$0xff]  }
 0x2f0   :  { %v2378_v21 = vpop.f32.mrf.mxu0  ;;  %3353 = vmatpush1.bf16.msra.mxu1 %v5559_v0  ;;  %v5573_v42 = vld [vmem:[%s8388_s5 + $0x18c] ss:$16 sps:$4 sm:$0xff]  }
 0x2f1   :  { %v2538_v6 = vmax.f32 %v7625_v49, %v7804_v14  ;;  %v2385_v11 = vadd.f32 %v2378_v21, %v7738_v41  ;;  %v2631_v23 = vpop.f32.mrf.mxu1  ;;  %3047 = vmatmul.mubr.bf16.gmra.mxu1 %v8578_v19  ;;  %2960 = vmatpush1.bf16.msra.mxu0 %v8605_v27  ;;  %v8609_v41 = vld [vmem:[#allocation67_spill] sm:$0xff]  ;;  %v5606_v49 = vld [vmem:[%s8388_s5 + $0xc4] ss:$16 sps:$4 sm:$0xff]  }
 0x2f2   :  { %v2380_v31 = vpop.f32.mrf.mxu0  ;;  %2961 = vmatprep.subr.bf16.mxu0 %v8480_v20  ;;  %3382 = vmatprep.mubr.bf16.mxu1 %v8480_v20  ;;  %v5571_v21 = vld [vmem:[%s8388_s5 + $0x188] ss:$16 sps:$4 sm:$0xff]   ;;  %v5603_v0 = vld [vmem:[%s8388_s5 + $0xec] ss:$16 sps:$4 sm:$0xff]  }
 0x2f3   :  { %v7814_v7 = vadd.f32 %v7740_v12, %v2385_v11  ;;  %v2633_v56 = vpop.f32.mrf.mxu1  ;;  %v8610_v12 = vld [vmem:[#allocation68_spill] sm:$0xff]  ;;  %3354 = vmatprep.subr.bf16.mxu1 %v5567_v57  ;;  %v5609_v14 = vld [vmem:[%s8388_s5 + $0xcc] ss:$16 sps:$4 sm:$0xff]  }
 0x2f5   :  { %v2539_v55 = vmax.f32 %v7636_v36, %v7814_v7  ;;  %v2634_v61 = vpop.f32.mrf.mxu1  ;;  %2962 = vmatpush1.bf16.msra.mxu0 %v8606_v53  ;;  %v5612_v36 = vld [vmem:[%s8388_s5 + $0xa4] ss:$16 sps:$4 sm:$0xff]   ;;  %v5615_v7 = vld [vmem:[%s8388_s5 + $0xac] ss:$16 sps:$4 sm:$0xff]  }
 0x2f6   :  { %2963 = vmatprep.subr.bf16.mxu0 %v8480_v20 }
 0x2f7   :  { %v2636_v19 = vpop.f32.mrf.mxu1 }
 0x2f9   :  { %2964 = vmatpush1.bf16.msra.mxu0 %v8607_v38 }
 0x2fa   :  { %2965 = vmatprep.subr.bf16.mxu0 %v8480_v20 }
 0x2fd   :  { %2966 = vmatpush1.bf16.msra.mxu0 %v8608_v60 }
 0x2fe   :  { %2967 = vmatprep.subr.bf16.mxu0 %v8480_v20 }
 0x301   :  { %2968 = vmatpush1.bf16.msra.mxu0 %v8609_v41 }
 0x302   :  { %2977 = vmatprep.subr.bf16.mxu0 %v8480_v20 }
 0x305   :  { %2978 = vmatpush2.bf16.msra.mxu0 %v8610_v12 }
 0x306   :  { %2979 = vmatprep.subr.bf16.mxu0 %v8480_v20 }
 0x309   :  { %2980 = vmatpush2.bf16.msra.mxu0 %v8611_v47 }
 0x30a   :  { %2981 = vmatprep.subr.bf16.mxu0 %v8480_v20 }
 0x30d   :  { %2982 = vmatpush2.bf16.msra.mxu0 %v8612_v63 }
 0x30e   :  { %2983 = vmatprep.subr.bf16.mxu0 %v8480_v20 }
 0x311   :  { %2984 = vmatpush2.bf16.msra.mxu0 %v8613_v32 }
 0x314   :  { %v2574_v26 = vpop.f32.mrf.mxu0  ;;  %2986 = vmatmul.mubr.bf16.vlgmr.msra.gmra.mxu0 %v6543_v37 }
 0x315   :  { %v2624_v2 = vadd.f32 %v2623_v43, %v2574_v26  ;;  %5070 = vmatprep.mubr.msk.bf16.mxu0 %vm1136_vm2, %v7075_v4  ;;  %v5558_v43 = vld [vmem:[%s8388_s5 + $0x1c4] ss:$16 sps:$4 sm:$0xff]  }
 0x316   :  { %v2576_v17 = vpop.f32.mrf.mxu0 }
 0x318   :  { %v2577_v46 = vpop.f32.mrf.mxu0 }
 0x319   :  { %v2627_v25 = vadd.f32 %v2626_v10, %v2577_v46  ;;  %v2725_v40 = vpop.f32.mrf.mxu1  ;;  %v5565_v10 = vld [vmem:[%s8388_s5 + $0x1a8] ss:$16 sps:$4 sm:$0xff]  }
 0x31a   :  { %v2579_v54 = vpop.f32.mrf.mxu0  ;;  %3355 = vmatpush1.bf16.msra.mxu1 %v5565_v10 }
 0x31b   :  { %v2727_v35 = vpop.f32.mrf.mxu1  ;;  %3356 = vmatprep.subr.bf16.mxu1 %v5573_v42 }
 0x31c   :  { %v2582_v5 = vpop.f32.mrf.mxu0  ;;  %2994 = vmatmul.mubr.bf16.gmra.mxu0 %v6567_v44  ;;  %v5552_v44 = vld [vmem:[%s8388_s5 + $0x1e4] ss:$16 sps:$4 sm:$0xff]  }
 0x31d   :  { %v2632_v16 = vadd.f32 %v2631_v23, %v2582_v5  ;;  %v2728_v1 = vpop.f32.mrf.mxu1  ;;  %3341 = vmatprep.mubr.bf16.mxu0 %v8480_v20  ;;  %3309 = vmatprep.subr.bf16.mxu0 %v5552_v44  ;;  %v5576_v5 = vld [vmem:[%s8388_s5 + $0x164] ss:$16 sps:$4 sm:$0xff]  }
 0x31e   :  { %v2584_v45 = vpop.f32.mrf.mxu0  ;;  %3310 = vmatpush1.bf16.msra.mxu0 %v5550_v33  ;;  %3357 = vmatpush1.bf16.msra.mxu1 %v5571_v21  ;;  %v5589_v33 = vld [vmem:[%s8388_s5 + $0x128] ss:$16 sps:$4 sm:$0xff]   ;;  %v5594_v44 = vld [vmem:[%s8388_s5 + $0x104] ss:$16 sps:$4 sm:$0xff]  }
 0x31f   :  { %v2730_v48 = vpop.f32.mrf.mxu1  ;;  %3311 = vmatprep.subr.bf16.mxu0 %v5558_v43  ;;  %v5577_v45 = vld [vmem:[%s8388_s5 + $0x168] ss:$16 sps:$4 sm:$0xff]   ;;  %v5600_v43 = vld [vmem:[%s8388_s5 + $0xe4] ss:$16 sps:$4 sm:$0xff]  }
 0x320   :  { %v2585_v37 = vpop.f32.mrf.mxu0 }
 0x321   :  { %v2635_v58 = vadd.f32 %v2634_v61, %v2585_v37  ;;  %v2733_v59 = vpop.f32.mrf.mxu1  ;;  %v5582_v37 = vld [vmem:[%s8388_s5 + $0x144] ss:$16 sps:$4 sm:$0xff]  }
 0x322   :  { %v2587_v30 = vpop.f32.mrf.mxu0  ;;  %3312 = vmatpush1.bf16.msra.mxu0 %v5556_v13  ;;  %v5595_v13 = vld [vmem:[%s8388_s5 + $0x108] ss:$16 sps:$4 sm:$0xff]  }
 0x323   :  { %v2735_v4 = vpop.f32.mrf.mxu1  ;;  %3313 = vmatprep.subr.bf16.mxu0 %v5564_v15  ;;  %v5583_v30 = vld [vmem:[%s8388_s5 + $0x148] ss:$16 sps:$4 sm:$0xff]  }
 0x324   :  { %v5588_v4 = vld [vmem:[%s8388_s5 + $0x124] ss:$16 sps:$4 sm:$0xff]  }
 0x325   :  { %v2736_v3 = vpop.f32.mrf.mxu1 }
 0x326   :  { %3314 = vmatpush1.bf16.msra.mxu0 %v5562_v22 }
 0x327   :  { %v2738_v28 = vpop.f32.mrf.mxu1  ;;  %3315 = vmatprep.subr.bf16.mxu0 %v5570_v8 }
 0x328   :  { %v5586_v28 = vld [vmem:[%s8388_s5 + $0x120] ss:$16 sps:$4 sm:$0xff]  }
 0x32a   :  { %3316 = vmatpush1.bf16.msra.mxu0 %v5568_v24 }
 0x32b   :  { %3317 = vmatprep.subr.bf16.mxu0 %v5576_v5 }
 0x344   :  { %v2672_v11 = vpop.f32.mrf.mxu0 }
 0x345   :  { %v2687_v23 = vadd.f32 %v2672_v11, %v2624_v2 }
 0x346   :  { %v2674_v27 = vpop.f32.mrf.mxu0 }
 0x347   :  { %v2740_v31 = vadd.f32 %v2725_v40, %v2687_v23 }
 0x348   :  { %v2675_v56 = vpop.f32.mrf.mxu0 }
 0x349   :  { %v2688_v61 = vadd.f32 %v2675_v56, %v2627_v25  ;;  %v7886_v53 = vpop.f32.mrf.mxu1 }
 0x34a   :  { %v2677_v19 = vpop.f32.mrf.mxu0 }
 0x34b   :  { %v2838_v38 = vpop.f32.mrf.mxu1  ;;  %v2741_v60 = vadd.f32 %v2728_v1, %v2688_v61  ;;  %v5574_v1 = vld [vmem:[%s8388_s5 + $0x160] ss:$16 sps:$4 sm:$0xff]  }
 0x34c   :  { %v2680_v41 = vpop.f32.mrf.mxu0  ;;  %3318 = vmatpush1.bf16.msra.mxu0 %v5574_v1 }
 0x34d   :  { %v2689_v12 = vadd.f32 %v2680_v41, %v2632_v16  ;;  %v7888_v47 = vpop.f32.mrf.mxu1  ;;  %v5579_v16 = vld [vmem:[%s8388_s5 + $0x16c] ss:$16 sps:$4 sm:$0xff]   ;;  %3319 = vmatprep.subr.bf16.mxu0 %v5582_v37 }
 0x34e   :  { %v2682_v63 = vpop.f32.mrf.mxu0  ;;  %3358 = vmatprep.subr.bf16.mxu1 %v5579_v16 }
 0x34f   :  { %v2841_v32 = vpop.f32.mrf.mxu1  ;;  %v2742_v26 = vadd.f32 %v2733_v59, %v2689_v12  ;;  %3359 = vmatpush1.bf16.msra.mxu1 %v5577_v45  ;;  %v5580_v59 = vld [vmem:[%s8388_s5 + $0x140] ss:$16 sps:$4 sm:$0xff]  }
 0x350   :  { %v2683_v2 = vpop.f32.mrf.mxu0  ;;  %3320 = vmatpush1.bf16.msra.mxu0 %v5580_v59 }
 0x351   :  { %v2690_v17 = vadd.f32 %v2683_v2, %v2635_v58  ;;  %v7890_v46 = vpop.f32.mrf.mxu1  ;;  %v5585_v58 = vld [vmem:[%s8388_s5 + $0x14c] ss:$16 sps:$4 sm:$0xff]   ;;  %3321 = vmatprep.subr.bf16.mxu0 %v5588_v4 }
 0x352   :  { %v2685_v40 = vpop.f32.mrf.mxu0  ;;  %3360 = vmatprep.subr.bf16.mxu1 %v5585_v58 }
 0x353   :  { %v2846_v54 = vpop.f32.mrf.mxu1  ;;  %v2743_v25 = vadd.f32 %v2736_v3, %v2690_v17  ;;  %3361 = vmatpush1.bf16.msra.mxu1 %v5583_v30  ;;  %v5591_v3 = vld [vmem:[%s8388_s5 + $0x12c] ss:$16 sps:$4 sm:$0xff]  }
 0x354   :  { %3362 = vmatprep.subr.bf16.mxu1 %v5591_v3  ;;  %3322 = vmatpush1.bf16.msra.mxu0 %v5586_v28 }
 0x355   :  { %v7892_v35 = vpop.f32.mrf.mxu1  ;;  %3323 = vmatprep.subr.bf16.mxu0 %v5594_v44 }
 0x357   :  { %v2849_v48 = vpop.f32.mrf.mxu1  ;;  %3363 = vmatpush1.bf16.msra.mxu1 %v5589_v33 }
 0x358   :  { %3364 = vmatprep.subr.bf16.mxu1 %v5597_v34  ;;  %3324 = vmatpush1.bf16.msra.mxu0 %v5592_v50 }
 0x359   :  { %3551 = vmatprep.subr.bf16.mxu0 %v5600_v43 }
 0x35b   :  { %3365 = vmatpush1.bf16.msra.mxu1 %v5595_v13 }
 0x35c   :  { %3592 = vmatprep.subr.bf16.mxu1 %v5603_v0 }
 0x374   :  { %v2783_v62 = vpop.f32.mrf.mxu0 }
 0x375   :  { %v2798_v15 = vadd.f32 %v2783_v62, %v2740_v31 }
 0x376   :  { %v2785_v22 = vpop.f32.mrf.mxu0 }
 0x378   :  { %v2786_v57 = vpop.f32.mrf.mxu0 }
 0x379   :  { %v2799_v10 = vadd.f32 %v2786_v57, %v2741_v60  ;;  %v2934_v8 = vpop.f32.mrf.mxu1 }
 0x37a   :  { %v2788_v24 = vpop.f32.mrf.mxu0 }
 0x37b   :  { %v2936_v42 = vpop.f32.mrf.mxu1 }
 0x37c   :  { %v2791_v21 = vpop.f32.mrf.mxu0 }
 0x37d   :  { %v2800_v11 = vadd.f32 %v2791_v21, %v2742_v26  ;;  %v2937_v23 = vpop.f32.mrf.mxu1 }
 0x37e   :  { %v2793_v27 = vpop.f32.mrf.mxu0 }
 0x37f   :  { %v2939_v56 = vpop.f32.mrf.mxu1 }
 0x380   :  { %v2794_v61 = vpop.f32.mrf.mxu0 }
 0x381   :  { %v7948_v19 = vadd.f32 %v2794_v61, %v2743_v25  ;;  %v2942_v38 = vpop.f32.mrf.mxu1 }
 0x382   :  { %v2796_v41 = vpop.f32.mrf.mxu0 }
 0x383   :  { %v2944_v12 = vpop.f32.mrf.mxu1 }
 0x385   :  { %v2945_v63 = vpop.f32.mrf.mxu1 }
 0x387   :  { %v2947_v32 = vpop.f32.mrf.mxu1 }
 0x3a4   :  { %v2885_v31 = vpop.f32.mrf.mxu0 }
 0x3a5   :  { %v2886_v2 = vadd.f32 %v2885_v31, %v7886_v53  ;;  %v5613_v31 = vld [vmem:[%s8388_s5 + $0xa8] ss:$16 sps:$4 sm:$0xff]  }
 0x3a6   :  { %v2887_v60 = vpop.f32.mrf.mxu0 }
 0x3a7   :  { %v2949_v17 = vadd.f32 %v2934_v8, %v2886_v2  ;;  %v5618_v2 = vld [vmem:[%s8388_s5 + $0x84] ss:$16 sps:$4 sm:$0xff]   ;;  %v5621_v60 = vld [vmem:[%s8388_s5 + $0x8c] ss:$16 sps:$4 sm:$0xff]  }
 0x3a8   :  { %v2888_v40 = vpop.f32.mrf.mxu0 }
 0x3a9   :  { %v3040_v54 = vpop.f32.mrf.mxu1  ;;  %v2889_v44 = vadd.f32 %v2888_v40, %v7888_v47  ;;  %v5619_v40 = vld [vmem:[%s8388_s5 + $0x88] ss:$16 sps:$4 sm:$0xff]  }
 0x3aa   :  { %v2890_v5 = vpop.f32.mrf.mxu0 }
 0x3ab   :  { %v3042_v26 = vpop.f32.mrf.mxu1  ;;  %v5627_v5 = vld [vmem:[%s8388_s5 + $0x6c] ss:$16 sps:$4 sm:$0xff]  }
 0x3ac   :  { %v2893_v16 = vpop.f32.mrf.mxu0  ;;  %v5622_v26 = vld [vmem:[%s8388_s5 + $0x60] ss:$16 sps:$4 sm:$0xff]  }
 0x3ad   :  { %v2894_v1 = vadd.f32 %v2893_v16, %v7890_v46  ;;  %v3043_v45 = vpop.f32.mrf.mxu1  ;;  %v2950_v46 = vadd.f32 %v2937_v23, %v2889_v44  ;;  %v5625_v16 = vld [vmem:[%s8388_s5 + $0x68] ss:$16 sps:$4 sm:$0xff]  }
 0x3ae   :  { %v2895_v25 = vpop.f32.mrf.mxu0 }
 0x3af   :  { %v3045_v48 = vpop.f32.mrf.mxu1  ;;  %v2951_v37 = vadd.f32 %v2942_v38, %v2894_v1  ;;  %v5630_v1 = vld [vmem:[%s8388_s5 + $0x44] ss:$16 sps:$4 sm:$0xff]   ;;  %v5628_v25 = vld [vmem:[%s8388_s5 + $0x40] ss:$16 sps:$4 sm:$0xff]  }
 0x3b0   :  { %v2896_v58 = vpop.f32.mrf.mxu0  ;;  %v5631_v48 = vld [vmem:[%s8388_s5 + $0x48] ss:$16 sps:$4 sm:$0xff]  }
 0x3b1   :  { %v2897_v59 = vadd.f32 %v2896_v58, %v7892_v35  ;;  %v3048_v30 = vpop.f32.mrf.mxu1  ;;  %v5639_v58 = vld [vmem:[%s8388_s5 + $0x2c] ss:$16 sps:$4 sm:$0xff]  }
 0x3b2   :  { %v2898_v4 = vpop.f32.mrf.mxu0 }
 0x3b3   :  { %v3050_v3 = vpop.f32.mrf.mxu1  ;;  %v2952_v53 = vadd.f32 %v2945_v63, %v2897_v59  ;;  %v5607_v63 = vld [vmem:[%s8388_s5 + $0xc8] ss:$16 sps:$4 sm:$0xff]   ;;  %v5634_v59 = vld [vmem:[%s8388_s5 + $0x20] ss:$16 sps:$4 sm:$0xff]  }
 0x3b4   :  { %v5642_v3 = vld [vmem:[%s8388_s5 + $0x4] ss:$16 sps:$4 sm:$0xff]  }
 0x3b5   :  { %v3051_v28 = vpop.f32.mrf.mxu1 }
 0x3b7   :  { %v3053_v33 = vpop.f32.mrf.mxu1 }
 0x3b8   :  { %v5643_v33 = vld [vmem:[%s8388_s5 + $0x8] ss:$16 sps:$4 sm:$0xff]  }
 0x3d4   :  { %v2987_v34 = vpop.f32.mrf.mxu0 }
 0x3d5   :  { %v3002_v50 = vadd.f32 %v2987_v34, %v2949_v17  ;;  %v5616_v17 = vld [vmem:[%s8388_s5 + $0x80] ss:$16 sps:$4 sm:$0xff]   ;;  %v5648_v34 = vld [vmem:[%s8388_s5 + $0x2e4] ss:$16 sps:$4 sm:$0xff]  }
 0x3d6   :  { %v2989_v13 = vpop.f32.mrf.mxu0 }
 0x3d7   :  { %v3055_v43 = vadd.f32 %v3040_v54, %v3002_v50  ;;  %v5624_v54 = vld [vmem:[%s8388_s5 + $0x64] ss:$16 sps:$4 sm:$0xff]   ;;  %v5651_v50 = vld [vmem:[%s8388_s5 + $0x2ec] ss:$16 sps:$4 sm:$0xff]   ;;  %v5646_v13 = vld [vmem:[%s8388_s5 + $0x2e0] ss:$16 sps:$4 sm:$0xff]  }
 0x3d8   :  { %v2990_v0 = vpop.f32.mrf.mxu0 }
 0x3d9   :  { %v3059_v62 = vmax.f32 %v2798_v15, %v3055_v43  ;;  %v3003_v22 = vadd.f32 %v2990_v0, %v2950_v46  ;;  %v7965_v15 = vld [vmem:[%s8389_s4] ss:$0 sm:$0xff]  ;;  %v5649_v43 = vld [vmem:[%s8388_s5 + $0x2e8] ss:$16 sps:$4 sm:$0xff]   ;;  %v5654_v0 = vld [vmem:[%s8388_s5 + $0x2c4] ss:$16 sps:$4 sm:$0xff]  }
 0x3da   :  { %v2992_v57 = vpop.f32.mrf.mxu0 }
 0x3db   :  { %v7957_v35 = vmax.f32 %v2536_v51, %v3059_v62  ;;  %v3056_v8 = vadd.f32 %v3043_v45, %v3003_v22  ;;  %v5633_v45 = vld [vmem:[%s8388_s5 + $0x4c] ss:$16 sps:$4 sm:$0xff]   ;;  %v5652_v22 = vld [vmem:[%s8388_s5 + $0x2c0] ss:$16 sps:$4 sm:$0xff]   ;;  %v5655_v57 = vld [vmem:[%s8388_s5 + $0x2c8] ss:$16 sps:$4 sm:$0xff]  }
 0x3dc   :  { %v2995_v24 = vpop.f32.mrf.mxu0  ;;  %v5657_v62 = vld [vmem:[%s8388_s5 + $0x2cc] ss:$16 sps:$4 sm:$0xff]  }
 0x3dd   :  { %v3060_v42 = vmax.f32 %v2799_v10, %v3056_v8  ;;  %v3004_v21 = vadd.f32 %v2995_v24, %v2951_v37  ;;  %v5636_v37 = vld [vmem:[%s8388_s5 + $0x24] ss:$16 sps:$4 sm:$0xff]   ;;  %v3074_v4 = vadd.f32 %v7965_v15, %v7957_v35  ;;  %v5663_v8 = vld [vmem:[%s8388_s5 + $0x2ac] ss:$16 sps:$4 sm:$0xff]   ;;  %v5658_v24 = vld [vmem:[%s8388_s5 + $0x2a0] ss:$16 sps:$4 sm:$0xff]  }
 0x3de   :  { %v2997_v27 = vpop.f32.mrf.mxu0  ;;  %v5660_v35 = vld [vmem:[%s8388_s5 + $0x2a4] ss:$16 sps:$4 sm:$0xff]  }
 0x3df   :  { %v3064_v47 = vmax.f32 %v2537_v9, %v3060_v42  ;;  %v3057_v56 = vadd.f32 %v3048_v30, %v3004_v21  ;;  %v5637_v30 = vld [vmem:[%s8388_s5 + $0x28] ss:$16 sps:$4 sm:$0xff]   ;;  %v3078_v44 = vmax.f32 %v3074_v4, 0.0  ;;  %v5666_v21 = vld [vmem:[%s8388_s5 + $0x284] ss:$16 sps:$4 sm:$0xff]  }
 0x3e0   :  { %v2998_v23 = vpop.f32.mrf.mxu0  ;;  %v5661_v42 = vld [vmem:[%s8388_s5 + $0x2a8] ss:$16 sps:$4 sm:$0xff]   ;;  %v5669_v27 = vld [vmem:[%s8388_s5 + $0x28c] ss:$16 sps:$4 sm:$0xff]   ;;  %v5724_v4 = vld [vmem:[%s8388_s5 + $0x340] ss:$16 sps:$4 sm:$0xff]  }
 0x3e1   :  { %v3075_v18 = vadd.f32 %v7965_v15, %v3064_v47  ;;  %v3061_v39 = vmax.f32 %v2800_v11, %v3057_v56  ;;  %v3005_v51 = vadd.f32 %v2998_v23, %v2952_v53  ;;  %v5645_v53 = vld [vmem:[%s8388_s5 + $0xc] ss:$16 sps:$4 sm:$0xff]   ;;  %v3114_v46 = vpack.c.bf16 %v3078_v44, %v3078_v44  ;;  %v5664_v47 = vld [vmem:[%s8388_s5 + $0x280] ss:$16 sps:$4 sm:$0xff]   ;;  %v5667_v56 = vld [vmem:[%s8388_s5 + $0x288] ss:$16 sps:$4 sm:$0xff]  }
 0x3e2   :  { %v3000_v61 = vpop.f32.mrf.mxu0  ;;  %v5675_v23 = vld [vmem:[%s8388_s5 + $0x26c] ss:$16 sps:$4 sm:$0xff]   ;;  %v5733_v44 = vld [vmem:[%s8388_s5 + $0x328] ss:$16 sps:$4 sm:$0xff]  }
 0x3e3   :  { %v3079_v38 = vmax.f32 %v3075_v18, 0.0  ;;  %v3065_v10 = vmax.f32 %v2538_v6, %v3061_v39  ;;  %v3058_v41 = vadd.f32 %v3051_v28, %v3005_v51  ;;  %v5640_v28 = vld [vmem:[%s8388_s5] ss:$16 sps:$4 sm:$0xff]   ;;  %v5673_v39 = vld [vmem:[%s8388_s5 + $0x268] ss:$16 sps:$4 sm:$0xff]  }
 0x3e4   :  { %v5670_v18 = vld [vmem:[%s8388_s5 + $0x260] ss:$16 sps:$4 sm:$0xff]   ;;  %v5678_v51 = vld [vmem:[%s8388_s5 + $0x244] ss:$16 sps:$4 sm:$0xff]   ;;  %v5681_v61 = vld [vmem:[%s8388_s5 + $0x24c] ss:$16 sps:$4 sm:$0xff]  }
 0x3e5   :  { %v3148_v9 = vpack.c.bf16 %v3079_v38, %v3079_v38  ;;  %v7978_v12 = vadd.f32 %v7965_v15, %v3065_v10  ;;  %v3062_v11 = vmax.f32 %v7948_v19, %v3058_v41  ;;  %v5604_v19 = vld [vmem:[%s8388_s5 + $0xc0] ss:$16 sps:$4 sm:$0xff]   ;;  %v5679_v10 = vld [vmem:[%s8388_s5 + $0x248] ss:$16 sps:$4 sm:$0xff]   ;;  %v5684_v41 = vld [vmem:[%s8388_s5 + $0x224] ss:$16 sps:$4 sm:$0xff]  }
 0x3e6   :  { %v5676_v38 = vld [vmem:[%s8388_s5 + $0x240] ss:$16 sps:$4 sm:$0xff]  }
 0x3e7   :  { %v3066_v6 = vmax.f32 %v2539_v55, %v3062_v11  ;;  %3342 = vmatmul.mubr.bf16.vlgmr.msra.gmra.mxu0 %v3148_v9  ;;  %3383 = vmatmul.mubr.bf16.vlgmr.msra.gmra.mxu1 %v3148_v9  ;;  %v5610_v55 = vld [vmem:[%s8388_s5 + $0xa0] ss:$16 sps:$4 sm:$0xff]   ;;  %v5685_v9 = vld [vmem:[%s8388_s5 + $0x228] ss:$16 sps:$4 sm:$0xff]   ;;  %v5690_v11 = vld [vmem:[%s8388_s5 + $0x204] ss:$16 sps:$4 sm:$0xff]  }
 0x3e8   :  { %3552 = vmatpush1.bf16.msra.mxu0 %v5598_v29  ;;  %3593 = vmatpush1.bf16.msra.mxu1 %v5601_v52  ;;  %v5687_v29 = vld [vmem:[%s8388_s5 + $0x22c] ss:$16 sps:$4 sm:$0xff]   ;;  %v5682_v52 = vld [vmem:[%s8388_s5 + $0x220] ss:$16 sps:$4 sm:$0xff]  }
 0x3e9   :  { %v7997_v32 = vadd.f32 %v7965_v15, %v3066_v6  ;;  %3553 = vmatprep.subr.bf16.mxu0 %v5606_v49  ;;  %3594 = vmatprep.subr.bf16.mxu1 %v5609_v14  ;;  %v5672_v15 = vld [vmem:[%s8388_s5 + $0x264] ss:$16 sps:$4 sm:$0xff]   ;;  %v5693_v49 = vld [vmem:[%s8388_s5 + $0x20c] ss:$16 sps:$4 sm:$0xff]   ;;  %v5688_v14 = vld [vmem:[%s8388_s5 + $0x200] ss:$16 sps:$4 sm:$0xff]  }
 0x3ea   :  { %3583 = vmatprep.mubr.bf16.mxu0 %v8480_v20  ;;  %3624 = vmatprep.mubr.bf16.mxu1 %v8480_v20  ;;  %v5691_v6 = vld [vmem:[%s8388_s5 + $0x208] ss:$16 sps:$4 sm:$0xff]  }
 0x3ec   :  { %3554 = vmatpush1.bf16.msra.mxu0 %v5604_v19  ;;  %3595 = vmatpush1.bf16.msra.mxu1 %v5607_v63  ;;  %v3080_v19 = vmax.f32 %v7978_v12, 0.0  ;;  %v5696_v63 = vld [vmem:[%s8388_s5 + $0x3e4] ss:$16 sps:$4 sm:$0xff]   ;;  %v5697_v12 = vld [vmem:[%s8388_s5 + $0x3e8] ss:$16 sps:$4 sm:$0xff]  }
 0x3ed   :  { %3555 = vmatprep.subr.bf16.mxu0 %v5612_v36  ;;  %3596 = vmatprep.subr.bf16.mxu1 %v5615_v7  ;;  %v5699_v36 = vld [vmem:[%s8388_s5 + $0x3ec] ss:$16 sps:$4 sm:$0xff]   ;;  %v5694_v7 = vld [vmem:[%s8388_s5 + $0x3e0] ss:$16 sps:$4 sm:$0xff]  }
 0x3f0   :  { %3556 = vmatpush1.bf16.msra.mxu0 %v5610_v55  ;;  %3597 = vmatpush1.bf16.msra.mxu1 %v5613_v31  ;;  %v3666_v55 = vpack.c.bf16 %v3080_v19, %v3080_v19  ;;  %v5702_v31 = vld [vmem:[%s8388_s5 + $0x3c4] ss:$16 sps:$4 sm:$0xff]  }
 0x3f1   :  { %3557 = vmatprep.subr.bf16.mxu0 %v5618_v2  ;;  %3598 = vmatprep.subr.bf16.mxu1 %v5621_v60  ;;  %v5705_v2 = vld [vmem:[%s8388_s5 + $0x3cc] ss:$16 sps:$4 sm:$0xff]   ;;  %v5700_v60 = vld [vmem:[%s8388_s5 + $0x3c0] ss:$16 sps:$4 sm:$0xff]  }
 0x3f2   :  { %v5770_v19 = vld [vmem:[%s8390_s7 + $0x40] sm:$0xff]  }
 0x3f4   :  { %3558 = vmatpush1.bf16.msra.mxu0 %v5616_v17  ;;  %3599 = vmatpush1.bf16.msra.mxu1 %v5619_v40  ;;  %v5703_v17 = vld [vmem:[%s8388_s5 + $0x3c8] ss:$16 sps:$4 sm:$0xff]   ;;  %v5708_v40 = vld [vmem:[%s8388_s5 + $0x3a4] ss:$16 sps:$4 sm:$0xff]  }
 0x3f5   :  { %3559 = vmatprep.subr.bf16.mxu0 %v5624_v54  ;;  %3600 = vmatprep.subr.bf16.mxu1 %v5627_v5  ;;  %v5711_v54 = vld [vmem:[%s8388_s5 + $0x3ac] ss:$16 sps:$4 sm:$0xff]   ;;  %v5706_v5 = vld [vmem:[%s8388_s5 + $0x3a0] ss:$16 sps:$4 sm:$0xff]  }
 0x3f8   :  { %3560 = vmatpush1.bf16.msra.mxu0 %v5622_v26  ;;  %3601 = vmatpush1.bf16.msra.mxu1 %v5625_v16  ;;  %v5709_v26 = vld [vmem:[%s8388_s5 + $0x3a8] ss:$16 sps:$4 sm:$0xff]   ;;  %v5714_v16 = vld [vmem:[%s8388_s5 + $0x384] ss:$16 sps:$4 sm:$0xff]  }
 0x3f9   :  { %3561 = vmatprep.subr.bf16.mxu0 %v5630_v1  ;;  %3602 = vmatprep.subr.bf16.mxu1 %v5633_v45  ;;  %v5712_v1 = vld [vmem:[%s8388_s5 + $0x380] ss:$16 sps:$4 sm:$0xff]   ;;  %v5715_v45 = vld [vmem:[%s8388_s5 + $0x388] ss:$16 sps:$4 sm:$0xff]  }
 0x3fc   :  { %3562 = vmatpush1.bf16.msra.mxu0 %v5628_v25  ;;  %3603 = vmatpush1.bf16.msra.mxu1 %v5631_v48  ;;  %v5720_v25 = vld [vmem:[%s8388_s5 + $0x364] ss:$16 sps:$4 sm:$0xff]   ;;  %v5723_v48 = vld [vmem:[%s8388_s5 + $0x36c] ss:$16 sps:$4 sm:$0xff]  }
 0x3fd   :  { %3563 = vmatprep.subr.bf16.mxu0 %v5636_v37  ;;  %3604 = vmatprep.subr.bf16.mxu1 %v5639_v58  ;;  %v5718_v37 = vld [vmem:[%s8388_s5 + $0x360] ss:$16 sps:$4 sm:$0xff]   ;;  %v5721_v58 = vld [vmem:[%s8388_s5 + $0x368] ss:$16 sps:$4 sm:$0xff]  }
 0x400   :  { %3564 = vmatpush1.bf16.msra.mxu0 %v5634_v59  ;;  %3605 = vmatpush1.bf16.msra.mxu1 %v5637_v30  ;;  %v5726_v59 = vld [vmem:[%s8388_s5 + $0x344] ss:$16 sps:$4 sm:$0xff]   ;;  %v5729_v30 = vld [vmem:[%s8388_s5 + $0x34c] ss:$16 sps:$4 sm:$0xff]  }
 0x401   :  { %3565 = vmatprep.subr.bf16.mxu0 %v5642_v3  ;;  %3606 = vmatprep.subr.bf16.mxu1 %v5645_v53  ;;  %v5727_v3 = vld [vmem:[%s8388_s5 + $0x348] ss:$16 sps:$4 sm:$0xff]   ;;  %v5732_v53 = vld [vmem:[%s8388_s5 + $0x324] ss:$16 sps:$4 sm:$0xff]  }
 0x404   :  { %3566 = vmatpush1.bf16.msra.mxu0 %v5640_v28  ;;  %3607 = vmatpush1.bf16.msra.mxu1 %v5643_v33  ;;  %v5735_v28 = vld [vmem:[%s8388_s5 + $0x32c] ss:$16 sps:$4 sm:$0xff]   ;;  %v5730_v33 = vld [vmem:[%s8388_s5 + $0x320] ss:$16 sps:$4 sm:$0xff]  }
 0x405   :  { %3827 = vmatprep.subr.bf16.mxu0 %v5648_v34  ;;  %3868 = vmatprep.subr.bf16.mxu1 %v5651_v50  ;;  %v5738_v34 = vld [vmem:[%s8388_s5 + $0x304] ss:$16 sps:$4 sm:$0xff]   ;;  %v5741_v50 = vld [vmem:[%s8388_s5 + $0x30c] ss:$16 sps:$4 sm:$0xff]  }
 0x407   :  { %3584 = vmatmul.mubr.bf16.vlgmr.msra.gmra.mxu0 %v3114_v46  ;;  %3625 = vmatmul.mubr.bf16.vlgmr.msra.gmra.mxu1 %v3114_v46  ;;  %v3081_v46 = vmax.f32 %v7997_v32, 0.0  ;;  %v5744_v32 = vld [vmem:[%s8390_s7 + $0x38] sm:$0xff]  }
 0x408   :  { %3828 = vmatpush1.bf16.msra.mxu0 %v5646_v13  ;;  %3869 = vmatpush1.bf16.msra.mxu1 %v5649_v43  ;;  %v5736_v13 = vld [vmem:[%s8388_s5 + $0x300] ss:$16 sps:$4 sm:$0xff]   ;;  %v5739_v43 = vld [vmem:[%s8388_s5 + $0x308] ss:$16 sps:$4 sm:$0xff]  }
 0x409   :  { %3829 = vmatprep.subr.bf16.mxu0 %v5654_v0  ;;  %3870 = vmatprep.subr.bf16.mxu1 %v5657_v62  ;;  %v3946_v0 = vpack.c.bf16 %v3081_v46, %v3081_v46  ;;  %v5742_v62 = vld [vmem:[%s8390_s7 + $0x78] sm:$0xff]  }
 0x40a   :  { %3859 = vmatprep.mubr.bf16.mxu0 %v8480_v20  ;;  %3900 = vmatprep.mubr.bf16.mxu1 %v8480_v20 }
 0x40c   :  { %3830 = vmatpush1.bf16.msra.mxu0 %v5652_v22  ;;  %3871 = vmatpush1.bf16.msra.mxu1 %v5655_v57  ;;  %v5743_v22 = vld [vmem:[%s8390_s7 + $0xf8] sm:$0xff]  }
 0x40d   :  { %3831 = vmatprep.subr.bf16.mxu0 %v5660_v35  ;;  %3872 = vmatprep.subr.bf16.mxu1 %v5663_v8  ;;  %v5745_v57 = vld [vmem:[%s8390_s7 + $0xb8] sm:$0xff]   ;;  %v5746_v35 = vld [vmem:[%s8390_s7 + $0x70] sm:$0xff]  }
 0x40e   :  { %v5747_v8 = vld [vmem:[%s8390_s7 + $0xf0] sm:$0xff]  }
 0x410   :  { %3832 = vmatpush1.bf16.msra.mxu0 %v5658_v24  ;;  %3873 = vmatpush1.bf16.msra.mxu1 %v5661_v42  ;;  %v5748_v24 = vld [vmem:[%s8390_s7 + $0x30] sm:$0xff]  }
 0x411   :  { %3833 = vmatprep.subr.bf16.mxu0 %v5666_v21  ;;  %3874 = vmatprep.subr.bf16.mxu1 %v5669_v27  ;;  %v5749_v42 = vld [vmem:[%s8390_s7 + $0xb0] sm:$0xff]   ;;  %v5750_v21 = vld [vmem:[%s8390_s7 + $0x68] sm:$0xff]  }
 0x412   :  { %v5751_v27 = vld [vmem:[%s8390_s7 + $0xe8] sm:$0xff]  }
 0x414   :  { %3834 = vmatpush1.bf16.msra.mxu0 %v5664_v47  ;;  %3875 = vmatpush1.bf16.msra.mxu1 %v5667_v56  ;;  %v5752_v47 = vld [vmem:[%s8390_s7 + $0x28] sm:$0xff]  }
 0x415   :  { %3835 = vmatprep.subr.bf16.mxu0 %v5672_v15  ;;  %3876 = vmatprep.subr.bf16.mxu1 %v5675_v23  ;;  %v5753_v56 = vld [vmem:[%s8390_s7 + $0xa8] sm:$0xff]   ;;  %v5754_v15 = vld [vmem:[%s8390_s7 + $0x60] sm:$0xff]  }
 0x416   :  { %v5755_v23 = vld [vmem:[%s8390_s7 + $0xe0] sm:$0xff]  }
 0x418   :  { %3836 = vmatpush1.bf16.msra.mxu0 %v5670_v18  ;;  %3877 = vmatpush1.bf16.msra.mxu1 %v5673_v39  ;;  %v5756_v18 = vld [vmem:[%s8390_s7 + $0x20] sm:$0xff]  }
 0x419   :  { %3837 = vmatprep.subr.bf16.mxu0 %v5678_v51  ;;  %3878 = vmatprep.subr.bf16.mxu1 %v5681_v61  ;;  %v5757_v39 = vld [vmem:[%s8390_s7 + $0xa0] sm:$0xff]   ;;  %v5758_v51 = vld [vmem:[%s8390_s7 + $0x58] sm:$0xff]  }
 0x41a   :  { %v5759_v61 = vld [vmem:[%s8390_s7 + $0xd8] sm:$0xff]  }
 0x41c   :  { %3838 = vmatpush1.bf16.msra.mxu0 %v5676_v38  ;;  %3879 = vmatpush1.bf16.msra.mxu1 %v5679_v10  ;;  %v5760_v38 = vld [vmem:[%s8390_s7 + $0x18] sm:$0xff]  }
 0x41d   :  { %3839 = vmatprep.subr.bf16.mxu0 %v5684_v41  ;;  %3880 = vmatprep.subr.bf16.mxu1 %v5687_v29  ;;  %v5761_v10 = vld [vmem:[%s8390_s7 + $0x98] sm:$0xff]   ;;  %v5762_v41 = vld [vmem:[%s8390_s7 + $0x50] sm:$0xff]  }
 0x41e   :  { %v5763_v29 = vld [vmem:[%s8390_s7 + $0xd0] sm:$0xff]  }
 0x420   :  { %3840 = vmatpush1.bf16.msra.mxu0 %v5682_v52  ;;  %3881 = vmatpush1.bf16.msra.mxu1 %v5685_v9  ;;  %v5764_v52 = vld [vmem:[%s8390_s7 + $0x10] sm:$0xff]  }
 0x421   :  { %3841 = vmatprep.subr.bf16.mxu0 %v5690_v11  ;;  %3882 = vmatprep.subr.bf16.mxu1 %v5693_v49  ;;  %v5765_v9 = vld [vmem:[%s8390_s7 + $0x90] sm:$0xff]   ;;  %v5766_v11 = vld [vmem:[%s8390_s7 + $0x48] sm:$0xff]  }
 0x422   :  { %v5767_v49 = vld [vmem:[%s8390_s7 + $0xc8] sm:$0xff]  }
 0x424   :  { %3842 = vmatpush1.bf16.msra.mxu0 %v5688_v14  ;;  %3883 = vmatpush1.bf16.msra.mxu1 %v5691_v6  ;;  %v5768_v14 = vld [vmem:[%s8390_s7 + $0x8] sm:$0xff]  }
 0x425   :  { %4107 = vmatprep.subr.bf16.mxu0 %v5696_v63  ;;  %4148 = vmatprep.subr.bf16.mxu1 %v5699_v36  ;;  %v5769_v6 = vld [vmem:[%s8390_s7 + $0x88] sm:$0xff]   ;;  %v5771_v63 = vld [vmem:[%s8390_s7 + $0xc0] sm:$0xff]  }
 0x426   :  { %v5772_v36 = vld [vmem:[%s8390_s7] sm:$0xff]  }
 0x427   :  { %3860 = vmatmul.mubr.bf16.vlgmr.msra.gmra.mxu0 %v3666_v55  ;;  %3901 = vmatmul.mubr.bf16.vlgmr.msra.gmra.mxu1 %v3666_v55 }
 0x428   :  { %4108 = vmatpush1.bf16.msra.mxu0 %v5694_v7  ;;  %4149 = vmatpush1.bf16.msra.mxu1 %v5697_v12  ;;  %v5773_v7 = vld [vmem:[%s8390_s7 + $0x80] sm:$0xff]  }
 0x429   :  { %4109 = vmatprep.subr.bf16.mxu0 %v5702_v31  ;;  %4150 = vmatprep.subr.bf16.mxu1 %v5705_v2 }
 0x42a   :  { %4139 = vmatprep.mubr.bf16.mxu0 %v8480_v20  ;;  %4180 = vmatprep.mubr.bf16.mxu1 %v8480_v20  ;;  %v5717_v20 = vld [vmem:[%s8388_s5 + $0x38c] ss:$16 sps:$4 sm:$0xff]  }
 0x42c   :  { %4110 = vmatpush1.bf16.msra.mxu0 %v5700_v60  ;;  %4151 = vmatpush1.bf16.msra.mxu1 %v5703_v17 }
 0x42d   :  { %4111 = vmatprep.subr.bf16.mxu0 %v5708_v40  ;;  %4152 = vmatprep.subr.bf16.mxu1 %v5711_v54 }
 0x430   :  { %4112 = vmatpush1.bf16.msra.mxu0 %v5706_v5  ;;  %4153 = vmatpush1.bf16.msra.mxu1 %v5709_v26 }
 0x431   :  { %4113 = vmatprep.subr.bf16.mxu0 %v5714_v16  ;;  %4154 = vmatprep.subr.bf16.mxu1 %v5717_v20 }
 0x434   :  { %4114 = vmatpush1.bf16.msra.mxu0 %v5712_v1  ;;  %4155 = vmatpush1.bf16.msra.mxu1 %v5715_v45 }
 0x435   :  { %4115 = vmatprep.subr.bf16.mxu0 %v5720_v25  ;;  %4156 = vmatprep.subr.bf16.mxu1 %v5723_v48 }
 0x438   :  { %4116 = vmatpush1.bf16.msra.mxu0 %v5718_v37  ;;  %4157 = vmatpush1.bf16.msra.mxu1 %v5721_v58 }
 0x439   :  { %4117 = vmatprep.subr.bf16.mxu0 %v5726_v59  ;;  %4158 = vmatprep.subr.bf16.mxu1 %v5729_v30 }
 0x43c   :  { %4118 = vmatpush1.bf16.msra.mxu0 %v5724_v4  ;;  %4159 = vmatpush1.bf16.msra.mxu1 %v5727_v3 }
 0x43d   :  { %4119 = vmatprep.subr.bf16.mxu0 %v5732_v53  ;;  %4160 = vmatprep.subr.bf16.mxu1 %v5735_v28 }
 0x440   :  { %4120 = vmatpush1.bf16.msra.mxu0 %v5730_v33  ;;  %4161 = vmatpush1.bf16.msra.mxu1 %v5733_v44  ;;  %v8614_v33 = vld [vmem:[#allocation2_spill] sm:$0xff] }
 0x441   :  { %4121 = vmatprep.subr.bf16.mxu0 %v5738_v34  ;;  %4162 = vmatprep.subr.bf16.mxu1 %v5741_v50  ;;  %v4205_v44 = vsub.s32 2, %v8614_v33  ;;  %v4193_v34 = vld [vmem:[%s8391_s6] sm:$0xf]  ;;  %v4209_v50 = vsub.s32 3, %v8614_v33  ;;  %v8615_v46 = vsub.s32 0, %v8614_v33 }
 0x444   :  { %4122 = vmatpush1.bf16.msra.mxu0 %v5736_v13  ;;  %4163 = vmatpush1.bf16.msra.mxu1 %v5739_v43 }
 0x445   :  { %5331 = vmatprep.subr.bf16.mxu0 %v5742_v62  ;;  %5353 = vmatprep.subr.bf16.mxu1 %v5743_v22  ;;  %v4206_v62 = vrot.slane %v4193_v34, %v4205_v44 }
 0x447   :  { %4140 = vmatmul.mubr.bf16.vlgmr.msra.gmra.mxu0 %v3946_v0  ;;  %4181 = vmatmul.mubr.bf16.vlgmr.msra.gmra.mxu1 %v3946_v0  ;;  %v4198_v0 = vrot.slane %v4193_v34, %v8615_v46 }
 0x448   :  { %5332 = vmatpush3.bf16.msra.mxu0 %v5744_v32  ;;  %5354 = vmatpush3.bf16.msra.mxu1 %v5745_v57 }
 0x449   :  { %5333 = vmatprep.subr.bf16.mxu0 %v5746_v35  ;;  %5355 = vmatprep.subr.bf16.mxu1 %v5747_v8 }
 0x44c   :  { %5334 = vmatpush3.bf16.msra.mxu0 %v5748_v24  ;;  %5356 = vmatpush3.bf16.msra.mxu1 %v5749_v42  ;;  %v8616_v42 = vsub.s32 1, %v8614_v33 }
 0x44d   :  { %5335 = vmatprep.subr.bf16.mxu0 %v5750_v21  ;;  %5357 = vmatprep.subr.bf16.mxu1 %v5751_v27  ;;  %v4210_v27 = vrot.slane %v4193_v34, %v4209_v50 }
 0x44e   :  { %v4202_v21 = vrot.slane %v4193_v34, %v8616_v42 }
 0x450   :  { %5336 = vmatpush3.bf16.msra.mxu0 %v5752_v47  ;;  %5358 = vmatpush3.bf16.msra.mxu1 %v5753_v56 }
 0x451   :  { %5337 = vmatprep.subr.bf16.mxu0 %v5754_v15  ;;  %5359 = vmatprep.subr.bf16.mxu1 %v5755_v23 }
 0x454   :  { %5338 = vmatpush3.bf16.msra.mxu0 %v5756_v18  ;;  %5360 = vmatpush3.bf16.msra.mxu1 %v5757_v39 }
 0x455   :  { %5339 = vmatprep.subr.bf16.mxu0 %v5758_v51  ;;  %5361 = vmatprep.subr.bf16.mxu1 %v5759_v61 }
 0x458   :  { %5340 = vmatpush3.bf16.msra.mxu0 %v5760_v38  ;;  %5362 = vmatpush3.bf16.msra.mxu1 %v5761_v10 }
 0x459   :  { %5341 = vmatprep.subr.bf16.mxu0 %v5762_v41  ;;  %5363 = vmatprep.subr.bf16.mxu1 %v5763_v29 }
 0x45c   :  { %5342 = vmatpush3.bf16.msra.mxu0 %v5764_v52  ;;  %5364 = vmatpush3.bf16.msra.mxu1 %v5765_v9 }
 0x45d   :  { %5343 = vmatprep.subr.bf16.mxu0 %v5766_v11  ;;  %5365 = vmatprep.subr.bf16.mxu1 %v5767_v49 }
 0x460   :  { %5344 = vmatpush3.bf16.msra.mxu0 %v5768_v14  ;;  %5366 = vmatpush3.bf16.msra.mxu1 %v5769_v6 }
 0x461   :  { %5345 = vmatprep.subr.bf16.mxu0 %v5770_v19  ;;  %5367 = vmatprep.subr.bf16.mxu1 %v5771_v63 }
 0x464   :  { %5346 = vmatpush3.bf16.msra.mxu0 %v5772_v36  ;;  %5368 = vmatpush3.bf16.msra.mxu1 %v5773_v7 }
 0x4a7   :  { %v3343_v12 = vpop.f32.mrf.mxu0  ;;  %v3384_v55 = vpop.f32.mrf.mxu1 }
 0x4a9   :  { %v3345_v31 = vpop.f32.mrf.mxu0  ;;  %v3386_v2 = vpop.f32.mrf.mxu1 }
 0x4ab   :  { %v3347_v60 = vpop.f32.mrf.mxu0  ;;  %v3388_v17 = vpop.f32.mrf.mxu1 }
 0x4ac   :  { %v5298_v60 = vld [vmem:[%s8392_s8] ss:$0 sm:$0xff] }
 0x4ad   :  { %v3348_v40 = vpop.f32.mrf.mxu0  ;;  %v3389_v54 = vpop.f32.mrf.mxu1 }
 0x4c7   :  { %v3585_v5 = vpop.f32.mrf.mxu0  ;;  %v3626_v26 = vpop.f32.mrf.mxu1 }
 0x4c8   :  { %v3586_v13 = vadd.f32 %v3585_v5, %v3343_v12  ;;  %v3627_v43 = vadd.f32 %v3626_v26, %v3384_v55 }
 0x4c9   :  { %v3587_v16 = vpop.f32.mrf.mxu0  ;;  %v3628_v20 = vpop.f32.mrf.mxu1 }
 0x4ca   :  { %v3588_v22 = vadd.f32 %v3587_v16, %v3345_v31  ;;  %v3629_v32 = vadd.f32 %v3628_v20, %v3386_v2 }
 0x4cb   :  { %v3589_v1 = vpop.f32.mrf.mxu0  ;;  %v3630_v45 = vpop.f32.mrf.mxu1 }
 0x4cd   :  { %v3590_v25 = vpop.f32.mrf.mxu0  ;;  %v3631_v48 = vpop.f32.mrf.mxu1 }
 0x4e7   :  { %v3861_v37 = vpop.f32.mrf.mxu0  ;;  %v3902_v58 = vpop.f32.mrf.mxu1 }
 0x4e8   :  { %v3909_v57 = vadd.f32 %v3861_v37, %v3586_v13  ;;  %v3911_v35 = vadd.f32 %v3902_v58, %v3627_v43 }
 0x4e9   :  { %v3863_v59 = vpop.f32.mrf.mxu0  ;;  %v3904_v30 = vpop.f32.mrf.mxu1 }
 0x4ea   :  { %v3910_v47 = vadd.f32 %v3863_v59, %v3588_v22  ;;  %v3912_v56 = vadd.f32 %v3904_v30, %v3629_v32 }
 0x4eb   :  { %v3865_v4 = vpop.f32.mrf.mxu0  ;;  %v3906_v3 = vpop.f32.mrf.mxu1 }
 0x4ed   :  { %v3866_v53 = vpop.f32.mrf.mxu0  ;;  %v3907_v28 = vpop.f32.mrf.mxu1 }
 0x507   :  { %v4141_v8 = vpop.f32.mrf.mxu0  ;;  %v4182_v24 = vpop.f32.mrf.mxu1 }
 0x508   :  { %v4189_v15 = vadd.f32 %v4141_v8, %v3909_v57  ;;  %v4191_v23 = vadd.f32 %v4182_v24, %v3911_v35 }
 0x509   :  { %v4143_v18 = vpop.f32.mrf.mxu0  ;;  %v4184_v39 = vpop.f32.mrf.mxu1 }
 0x50a   :  { %v4215_v51 = vadd.f32 %v4198_v0, %v4189_v15  ;;  %v4217_v61 = vadd.f32 %v4206_v62, %v4191_v23  ;;  %v4190_v38 = vadd.f32 %v4143_v18, %v3910_v47  ;;  %v4192_v10 = vadd.f32 %v4184_v39, %v3912_v56 }
 0x50b   :  { %v4145_v41 = vpop.f32.mrf.mxu0  ;;  %v4186_v29 = vpop.f32.mrf.mxu1 }
 0x50c   :  { %v4216_v52 = vadd.f32 %v4202_v21, %v4190_v38  ;;  %v4218_v9 = vadd.f32 %v4210_v27, %v4192_v10  ;;  %v4219_v11 = vmax.f32 %v4215_v51, 0.0  ;;  %v4221_v49 = vmax.f32 %v4217_v61, 0.0 }
 0x50d   :  { %v4146_v14 = vpop.f32.mrf.mxu0  ;;  %v4187_v6 = vpop.f32.mrf.mxu1 }
 0x50e   :  { %v4220_v19 = vmax.f32 %v4216_v52, 0.0  ;;  %v4222_v63 = vmax.f32 %v4218_v9, 0.0  ;;  %v4287_v12 = vpack.c.bf16 %v4219_v11, %v4219_v11  ;;  %v4289_v55 = vpack.c.bf16 %v4221_v49, %v4221_v49 }
 0x510   :  { %v4288_v36 = vpack.c.bf16 %v4220_v19, %v4220_v19  ;;  %v4290_v7 = vpack.c.bf16 %v4222_v63, %v4222_v63 }
 0x512   :  { %4522 = vmatprep.mubr.bf16.mxu0 %v4288_v36  ;;  %4562 = vmatprep.mubr.bf16.mxu1 %v4290_v7 }
 0x513   :  { %4523 = vmatmul.mubr.bf16.vlgmr.msra.gmra.mxu0 %v4287_v12  ;;  %4563 = vmatmul.mubr.bf16.vlgmr.msra.gmra.mxu1 %v4289_v55 }
 0x5d3   :  { %v5347_v31 = vpop.f32.mrf.mxu0  ;;  %v5369_v2 = vpop.f32.mrf.mxu1 }
 0x5d5   :  { %v5348_v17 = vpop.f32.mrf.mxu0  ;;  %v5370_v40 = vpop.f32.mrf.mxu1 }
 0x5d6   :  { %v5349_v54 = vadd.f32 %v5348_v17, %v5347_v31  ;;  %v5371_v20 = vadd.f32 %v5370_v40, %v5369_v2 }
 0x5d7   :  { %v5350_v5 = vpop.f32.mrf.mxu0  ;;  %v5372_v26 = vpop.f32.mrf.mxu1 }
 0x5d8   :  { %v4525_v16 = vadd.f32 %v5349_v54, %v5298_v60 }
 0x5d9   :  { %v5351_v1 = vpop.f32.mrf.mxu0  ;;  %v5373_v45 = vpop.f32.mrf.mxu1 }
 0x5da   :  { %v4565_v25 = vadd.f32 %v5371_v20, %v4525_v16 }
 0x5dc   :  { %4570 = vst [vmem:[%s8393_s9] sm:$0xff] %v4565_v25 }

</bundles_post_ra>
